<compile_context>
chip_gen: v7x
topology: tpu7x:2x2x1
jax: 0.10.0
libtpu: 0.0.40
codegen_flags: <defaults>
</compile_context>

<pallas_src>
import functools

import jax
import jax.numpy as jnp
from jax import lax
from jax.experimental import pallas as pl
from jax.experimental.pallas import tpu as pltpu

_LANES = 128


def _multiconv3d_kernel(x_ref, w_ref, b_ref, o_ref, acc_ref, *, D, H, W, kD, kH):
    """One task: out = sum_{kd,kh} X_shift(kd,kh) @ W[kd,kh] + b.

    x_ref  : [N, Dp, Hp, W, kW*Cin]   W-unfolded, D/H 'same'-padded input
    w_ref  : [kD, kH, kW*Cin, Cpad]
    b_ref  : [1, Cpad]
    o_ref  : [N*D*H*W, Cpad]          lane-dense output slab
    acc_ref: VMEM f32 scratch, same shape as o_ref
    """
    K = x_ref.shape[-1]                       # kW * Cin
    M, Cpad = acc_ref.shape

    acc_ref[...] = jnp.zeros((M, Cpad), jnp.float32)
    for kd in range(kD):
        for kh in range(kH):
            # Leading-dim slices only (no sublane/lane relayout); the reshape
            # merges leading dims into the sublane axis, lanes (K) untouched.
            win = x_ref[:, kd:kd + D, kh:kh + H, :, :]        # [N, D, H, W, K]
            acc_ref[...] += jnp.dot(win.reshape(M, K), w_ref[kd, kh],
                                    preferred_element_type=jnp.float32)
    o_ref[...] = (acc_ref[...] + b_ref[...].astype(jnp.float32)).astype(o_ref.dtype)


def multi_conv3d(inputs, kernel, bias, strides=1, padding='same',
                 compute_dtype=None):
    """Pallas implementation of MultiConv3D.forward.

    inputs : [T, N, Cin, D, H, W]   (stack of the per-task input tensors)
    kernel : [T, Cout, Cin, kD, kH, kW]
    bias   : [T, Cout]
    compute_dtype : optional dtype (e.g. jnp.bfloat16) for the matmul
                    operands; accumulation is always f32.
    Returns a list of T arrays, each [N, Cout, D, H, W].
    """
    # TODO(synk): only stride=1 + padding='same' (the module defaults) are implemented.
    assert strides == 1 and padding == 'same'

    T, N, Cin, D, H, W = inputs.shape
    Tk, Cout, Cin_k, kD, kH, kW = kernel.shape
    assert Tk == T and Cin_k == Cin

    pd, ph, pw = (kD - 1) // 2, (kH - 1) // 2, (kW - 1) // 2
    Dp, Hp = D + kD - 1, H + kH - 1
    K = kW * Cin
    Cpad = ((Cout + _LANES - 1) // _LANES) * _LANES   # lane-dense output width
    M = N * D * H * W

    # --- wrapper-side layout glue (plain JAX, fused by XLA) -----------------
    x = jnp.transpose(inputs, (0, 1, 3, 4, 5, 2))             # [T,N,D,H,W,Cin]
    x_pad = jnp.pad(
        x, ((0, 0), (0, 0),
            (pd, kD - 1 - pd), (ph, kH - 1 - ph), (pw, kW - 1 - pw),
            (0, 0)))
    # unfold the kW taps into the channel axis: last-axis index = kw*Cin + c
    x_unf = jnp.concatenate(
        [x_pad[..., kw:kw + W, :] for kw in range(kW)], axis=-1)  # [T,N,Dp,Hp,W,K]

    # weights: [T,Cout,Cin,kD,kH,kW] -> [T,kD,kH,kW*Cin,Cpad] (kw-major, then Cin)
    w = jnp.transpose(kernel, (0, 3, 4, 5, 2, 1)).reshape(T, kD, kH, K, Cout)
    w = jnp.pad(w, ((0, 0), (0, 0), (0, 0), (0, 0), (0, Cpad - Cout)))
    b = jnp.pad(bias, ((0, 0), (0, Cpad - Cout))).reshape(T, 1, Cpad)

    if compute_dtype is not None:
        x_unf = x_unf.astype(compute_dtype)
        w = w.astype(compute_dtype)

    kfn = functools.partial(_multiconv3d_kernel, D=D, H=H, W=W, kD=kD, kH=kH)

    def _bytes(a):
        return a.size * jnp.dtype(a.dtype).itemsize

    cost = pl.CostEstimate(
        flops=2 * T * M * kD * kH * K * Cpad,
        transcendentals=0,
        bytes_accessed=int(_bytes(x_unf) + _bytes(w) + _bytes(b)
                           + T * M * Cpad * jnp.dtype(inputs.dtype).itemsize))

    out = pl.pallas_call(
        kfn,
        out_shape=jax.ShapeDtypeStruct((T, M, Cpad), inputs.dtype),
        grid_spec=pltpu.PrefetchScalarGridSpec(
            num_scalar_prefetch=0,
            grid=(T,),
            in_specs=[
                pl.BlockSpec((None, N, Dp, Hp, W, K),
                             lambda t: (t, 0, 0, 0, 0, 0)),
                pl.BlockSpec((None, kD, kH, K, Cpad),
                             lambda t: (t, 0, 0, 0, 0)),
                pl.BlockSpec((None, 1, Cpad),
                             lambda t: (t, 0, 0)),
            ],
            out_specs=pl.BlockSpec((None, M, Cpad),
                                   lambda t: (t, 0, 0)),
            scratch_shapes=[pltpu.VMEM((M, Cpad), jnp.float32)],
        ),
        compiler_params=pltpu.CompilerParams(
            dimension_semantics=("parallel",)),
        cost_estimate=cost,
    )(x_unf, w, b)

    # strip Cout padding, back to the PyTorch NCDHW convention, list output
    out = out[:, :, :Cout].reshape(T, N, D, H, W, Cout)
    out_ncdhw = jnp.transpose(out, (0, 1, 5, 2, 3, 4))        # [T,N,Cout,D,H,W]
    return [out_ncdhw[i] for i in range(T)]


def _reference(inputs, kernel, bias):
    """Pure-JAX reference (lax.conv_general_dilated) matching F.conv3d 'same'."""
    T = inputs.shape[0]
    outs = []
    for i in range(T):
        o = lax.conv_general_dilated(
            inputs[i], kernel[i],
            window_strides=(1, 1, 1),
            padding='SAME',
            dimension_numbers=('NCDHW', 'OIDHW', 'NCDHW'))
        o = o + bias[i][None, :, None, None, None]
        outs.append(o)
    return outs


if __name__ == "__main__":
    key = jax.random.PRNGKey(0)
    k1, k2, k3 = jax.random.split(key, 3)

    # Small shapes: 2 tasks, batch 2, Cin=4, Cout=8, spatial 8^3, kernel 3^3.
    T, N, Cin, Cout = 2, 2, 4, 8
    D = H = W = 8
    kD = kH = kW = 3

    inputs = jax.random.normal(k1, (T, N, Cin, D, H, W), dtype=jnp.float32)
    kernel = jax.random.normal(k2, (T, Cout, Cin, kD, kH, kW), dtype=jnp.float32) * 0.1
    bias = jax.random.normal(k3, (T, Cout), dtype=jnp.float32)

    fwd = jax.jit(multi_conv3d)
    outs = fwd(inputs, kernel, bias)
    outs = [jax.block_until_ready(o) for o in outs]

    refs = _reference(inputs, kernel, bias)
    for o, r in zip(outs, refs):
        assert o.shape == r.shape, (o.shape, r.shape)
        err = float(jnp.max(jnp.abs(o - r)))
        assert err < 2e-3, f"mismatch vs reference: {err}"

    print("KERNEL_OK")
</pallas_src>

<mosaic_0001>
module attributes {stable_mosaic.version = 11 : i64} {
  func.func @_multiconv3d_kernel(%arg0: i32, %arg1: memref<1x2x10x10x8x12xf32, #tpu.memory_space<vmem>>, %arg2: memref<1x3x3x12x128xf32, #tpu.memory_space<vmem>>, %arg3: memref<1x1x128xf32, #tpu.memory_space<vmem>>, %arg4: memref<1x1024x128xf32, #tpu.memory_space<vmem>>, %arg5: memref<1024x128xf32, #tpu.memory_space<vmem>>) attributes {dimension_semantics = [#tpu.dimension_semantics<parallel>], iteration_bounds = array<i64: 2>, scalar_prefetch = 0 : i64, scratch_operands = 1 : i64, tpu.core_type = #tpu.core_type<tc>, window_params = [{transform_indices = @transform_0, window_bounds = array<i64: 1, 2, 10, 10, 8, 12>}, {transform_indices = @transform_1, window_bounds = array<i64: 1, 3, 3, 12, 128>}, {transform_indices = @transform_2, window_bounds = array<i64: 1, 1, 128>}, {transform_indices = @transform_3, window_bounds = array<i64: 1, 1024, 128>}]} {
    %cst = arith.constant 0.000000e+00 : f32
    %0 = vector.broadcast %cst : f32 to vector<1024x128xf32>
    %c0 = arith.constant 0 : index
    %c0_0 = arith.constant 0 : index
    %1 = vector.load %arg5[%c0, %c0_0] : memref<1024x128xf32, #tpu.memory_space<vmem>>, vector<1024x128xf32>
    tpu.vector_store %arg5[%c0, %c0_0], %0 {strides = array<i32>} : memref<1024x128xf32, #tpu.memory_space<vmem>>, vector<1024x128xf32>,
    %c0_1 = arith.constant 0 : index
    %c0_2 = arith.constant 0 : index
    %c0_3 = arith.constant 0 : index
    %c0_4 = arith.constant 0 : index
    %c0_5 = arith.constant 0 : index
    %c0_6 = arith.constant 0 : index
    %2 = vector.load %arg1[%c0_1, %c0_2, %c0_3, %c0_4, %c0_5, %c0_6] : memref<1x2x10x10x8x12xf32, #tpu.memory_space<vmem>>, vector<1x2x8x8x8x12xf32>
    %3 = vector.shape_cast %2 : vector<1x2x8x8x8x12xf32> to vector<2x8x8x8x12xf32>
    %c0_7 = arith.constant 0 : index
    %c0_8 = arith.constant 0 : index
    %4 = vector.load %arg5[%c0_7, %c0_8] : memref<1024x128xf32, #tpu.memory_space<vmem>>, vector<1024x128xf32>
    %5 = vector.shape_cast %3 : vector<2x8x8x8x12xf32> to vector<1024x12xf32>
    %c0_9 = arith.constant 0 : index
    %c0_10 = arith.constant 0 : index
    %c0_11 = arith.constant 0 : index
    %c0_12 = arith.constant 0 : index
    %c0_13 = arith.constant 0 : index
    %6 = vector.load %arg2[%c0_9, %c0_10, %c0_11, %c0_12, %c0_13] : memref<1x3x3x12x128xf32, #tpu.memory_space<vmem>>, vector<1x1x1x12x128xf32>
    %7 = vector.shape_cast %6 : vector<1x1x1x12x128xf32> to vector<12x128xf32>
    %cst_14 = arith.constant dense<0.000000e+00> : vector<1024x128xf32>
    %8 = tpu.matmul %5, %7, %cst_14 {dimension_numbers = #tpu.dot_dimension_numbers<[1], [0], [0], [1], [0, 0, 1, 1], [], []>} : vector<1024x12xf32>, vector<12x128xf32>, vector<1024x128xf32> -> vector<1024x128xf32>
    %9 = arith.addf %4, %8 : vector<1024x128xf32>
    %c0_15 = arith.constant 0 : index
    %c0_16 = arith.constant 0 : index
    %10 = vector.load %arg5[%c0_15, %c0_16] : memref<1024x128xf32, #tpu.memory_space<vmem>>, vector<1024x128xf32>
    tpu.vector_store %arg5[%c0_15, %c0_16], %9 {strides = array<i32>} : memref<1024x128xf32, #tpu.memory_space<vmem>>, vector<1024x128xf32>,
    %c0_17 = arith.constant 0 : index
    %c0_18 = arith.constant 0 : index
    %c0_19 = arith.constant 0 : index
    %c1 = arith.constant 1 : index
    %c0_20 = arith.constant 0 : index
    %c0_21 = arith.constant 0 : index
    %11 = vector.load %arg1[%c0_17, %c0_18, %c0_19, %c1, %c0_20, %c0_21] : memref<1x2x10x10x8x12xf32, #tpu.memory_space<vmem>>, vector<1x2x8x8x8x12xf32>
    %12 = vector.shape_cast %11 : vector<1x2x8x8x8x12xf32> to vector<2x8x8x8x12xf32>
    %c0_22 = arith.constant 0 : index
    %c0_23 = arith.constant 0 : index
    %13 = vector.load %arg5[%c0_22, %c0_23] : memref<1024x128xf32, #tpu.memory_space<vmem>>, vector<1024x128xf32>
    %14 = vector.shape_cast %12 : vector<2x8x8x8x12xf32> to vector<1024x12xf32>
    %c0_24 = arith.constant 0 : index
    %c0_25 = arith.constant 0 : index
    %c1_26 = arith.constant 1 : index
    %c0_27 = arith.constant 0 : index
    %c0_28 = arith.constant 0 : index
    %15 = vector.load %arg2[%c0_24, %c0_25, %c1_26, %c0_27, %c0_28] : memref<1x3x3x12x128xf32, #tpu.memory_space<vmem>>, vector<1x1x1x12x128xf32>
    %16 = vector.shape_cast %15 : vector<1x1x1x12x128xf32> to vector<12x128xf32>
    %cst_29 = arith.constant dense<0.000000e+00> : vector<1024x128xf32>
    %17 = tpu.matmul %14, %16, %cst_29 {dimension_numbers = #tpu.dot_dimension_numbers<[1], [0], [0], [1], [0, 0, 1, 1], [], []>} : vector<1024x12xf32>, vector<12x128xf32>, vector<1024x128xf32> -> vector<1024x128xf32>
    %18 = arith.addf %13, %17 : vector<1024x128xf32>
    %c0_30 = arith.constant 0 : index
    %c0_31 = arith.constant 0 : index
    %19 = vector.load %arg5[%c0_30, %c0_31] : memref<1024x128xf32, #tpu.memory_space<vmem>>, vector<1024x128xf32>
    tpu.vector_store %arg5[%c0_30, %c0_31], %18 {strides = array<i32>} : memref<1024x128xf32, #tpu.memory_space<vmem>>, vector<1024x128xf32>,
    %c0_32 = arith.constant 0 : index
    %c0_33 = arith.constant 0 : index
    %c0_34 = arith.constant 0 : index
    %c2 = arith.constant 2 : index
    %c0_35 = arith.constant 0 : index
    %c0_36 = arith.constant 0 : index
    %20 = vector.load %arg1[%c0_32, %c0_33, %c0_34, %c2, %c0_35, %c0_36] : memref<1x2x10x10x8x12xf32, #tpu.memory_space<vmem>>, vector<1x2x8x8x8x12xf32>
    %21 = vector.shape_cast %20 : vector<1x2x8x8x8x12xf32> to vector<2x8x8x8x12xf32>
    %c0_37 = arith.constant 0 : index
    %c0_38 = arith.constant 0 : index
    %22 = vector.load %arg5[%c0_37, %c0_38] : memref<1024x128xf32, #tpu.memory_space<vmem>>, vector<1024x128xf32>
    %23 = vector.shape_cast %21 : vector<2x8x8x8x12xf32> to vector<1024x12xf32>
    %c0_39 = arith.constant 0 : index
    %c0_40 = arith.constant 0 : index
    %c2_41 = arith.constant 2 : index
    %c0_42 = arith.constant 0 : index
    %c0_43 = arith.constant 0 : index
    %24 = vector.load %arg2[%c0_39, %c0_40, %c2_41, %c0_42, %c0_43] : memref<1x3x3x12x128xf32, #tpu.memory_space<vmem>>, vector<1x1x1x12x128xf32>
    %25 = vector.shape_cast %24 : vector<1x1x1x12x128xf32> to vector<12x128xf32>
    %cst_44 = arith.constant dense<0.000000e+00> : vector<1024x128xf32>
    %26 = tpu.matmul %23, %25, %cst_44 {dimension_numbers = #tpu.dot_dimension_numbers<[1], [0], [0], [1], [0, 0, 1, 1], [], []>} : vector<1024x12xf32>, vector<12x128xf32>, vector<1024x128xf32> -> vector<1024x128xf32>
    %27 = arith.addf %22, %26 : vector<1024x128xf32>
    %c0_45 = arith.constant 0 : index
    %c0_46 = arith.constant 0 : index
    %28 = vector.load %arg5[%c0_45, %c0_46] : memref<1024x128xf32, #tpu.memory_space<vmem>>, vector<1024x128xf32>
    tpu.vector_store %arg5[%c0_45, %c0_46], %27 {strides = array<i32>} : memref<1024x128xf32, #tpu.memory_space<vmem>>, vector<1024x128xf32>,
    %c0_47 = arith.constant 0 : index
    %c0_48 = arith.constant 0 : index
    %c1_49 = arith.constant 1 : index
    %c0_50 = arith.constant 0 : index
    %c0_51 = arith.constant 0 : index
    %c0_52 = arith.constant 0 : index
    %29 = vector.load %arg1[%c0_47, %c0_48, %c1_49, %c0_50, %c0_51, %c0_52] : memref<1x2x10x10x8x12xf32, #tpu.memory_space<vmem>>, vector<1x2x8x8x8x12xf32>
    %30 = vector.shape_cast %29 : vector<1x2x8x8x8x12xf32> to vector<2x8x8x8x12xf32>
    %c0_53 = arith.constant 0 : index
    %c0_54 = arith.constant 0 : index
    %31 = vector.load %arg5[%c0_53, %c0_54] : memref<1024x128xf32, #tpu.memory_space<vmem>>, vector<1024x128xf32>
    %32 = vector.shape_cast %30 : vector<2x8x8x8x12xf32> to vector<1024x12xf32>
    %c0_55 = arith.constant 0 : index
    %c1_56 = arith.constant 1 : index
    %c0_57 = arith.constant 0 : index
    %c0_58 = arith.constant 0 : index
    %c0_59 = arith.constant 0 : index
    %33 = vector.load %arg2[%c0_55, %c1_56, %c0_57, %c0_58, %c0_59] : memref<1x3x3x12x128xf32, #tpu.memory_space<vmem>>, vector<1x1x1x12x128xf32>
    %34 = vector.shape_cast %33 : vector<1x1x1x12x128xf32> to vector<12x128xf32>
    %cst_60 = arith.constant dense<0.000000e+00> : vector<1024x128xf32>
    %35 = tpu.matmul %32, %34, %cst_60 {dimension_numbers = #tpu.dot_dimension_numbers<[1], [0], [0], [1], [0, 0, 1, 1], [], []>} : vector<1024x12xf32>, vector<12x128xf32>, vector<1024x128xf32> -> vector<1024x128xf32>
    %36 = arith.addf %31, %35 : vector<1024x128xf32>
    %c0_61 = arith.constant 0 : index
    %c0_62 = arith.constant 0 : index
    %37 = vector.load %arg5[%c0_61, %c0_62] : memref<1024x128xf32, #tpu.memory_space<vmem>>, vector<1024x128xf32>
    tpu.vector_store %arg5[%c0_61, %c0_62], %36 {strides = array<i32>} : memref<1024x128xf32, #tpu.memory_space<vmem>>, vector<1024x128xf32>,
    %c0_63 = arith.constant 0 : index
    %c0_64 = arith.constant 0 : index
    %c1_65 = arith.constant 1 : index
    %c1_66 = arith.constant 1 : index
    %c0_67 = arith.constant 0 : index
    %c0_68 = arith.constant 0 : index
    %38 = vector.load %arg1[%c0_63, %c0_64, %c1_65, %c1_66, %c0_67, %c0_68] : memref<1x2x10x10x8x12xf32, #tpu.memory_space<vmem>>, vector<1x2x8x8x8x12xf32>
    %39 = vector.shape_cast %38 : vector<1x2x8x8x8x12xf32> to vector<2x8x8x8x12xf32>
    %c0_69 = arith.constant 0 : index
    %c0_70 = arith.constant 0 : index
    %40 = vector.load %arg5[%c0_69, %c0_70] : memref<1024x128xf32, #tpu.memory_space<vmem>>, vector<1024x128xf32>
    %41 = vector.shape_cast %39 : vector<2x8x8x8x12xf32> to vector<1024x12xf32>
    %c0_71 = arith.constant 0 : index
    %c1_72 = arith.constant 1 : index
    %c1_73 = arith.constant 1 : index
    %c0_74 = arith.constant 0 : index
    %c0_75 = arith.constant 0 : index
    %42 = vector.load %arg2[%c0_71, %c1_72, %c1_73, %c0_74, %c0_75] : memref<1x3x3x12x128xf32, #tpu.memory_space<vmem>>, vector<1x1x1x12x128xf32>
    %43 = vector.shape_cast %42 : vector<1x1x1x12x128xf32> to vector<12x128xf32>
    %cst_76 = arith.constant dense<0.000000e+00> : vector<1024x128xf32>
    %44 = tpu.matmul %41, %43, %cst_76 {dimension_numbers = #tpu.dot_dimension_numbers<[1], [0], [0], [1], [0, 0, 1, 1], [], []>} : vector<1024x12xf32>, vector<12x128xf32>, vector<1024x128xf32> -> vector<1024x128xf32>
    %45 = arith.addf %40, %44 : vector<1024x128xf32>
    %c0_77 = arith.constant 0 : index
    %c0_78 = arith.constant 0 : index
    %46 = vector.load %arg5[%c0_77, %c0_78] : memref<1024x128xf32, #tpu.memory_space<vmem>>, vector<1024x128xf32>
    tpu.vector_store %arg5[%c0_77, %c0_78], %45 {strides = array<i32>} : memref<1024x128xf32, #tpu.memory_space<vmem>>, vector<1024x128xf32>,
    %c0_79 = arith.constant 0 : index
    %c0_80 = arith.constant 0 : index
    %c1_81 = arith.constant 1 : index
    %c2_82 = arith.constant 2 : index
    %c0_83 = arith.constant 0 : index
    %c0_84 = arith.constant 0 : index
    %47 = vector.load %arg1[%c0_79, %c0_80, %c1_81, %c2_82, %c0_83, %c0_84] : memref<1x2x10x10x8x12xf32, #tpu.memory_space<vmem>>, vector<1x2x8x8x8x12xf32>
    %48 = vector.shape_cast %47 : vector<1x2x8x8x8x12xf32> to vector<2x8x8x8x12xf32>
    %c0_85 = arith.constant 0 : index
    %c0_86 = arith.constant 0 : index
    %49 = vector.load %arg5[%c0_85, %c0_86] : memref<1024x128xf32, #tpu.memory_space<vmem>>, vector<1024x128xf32>
    %50 = vector.shape_cast %48 : vector<2x8x8x8x12xf32> to vector<1024x12xf32>
    %c0_87 = arith.constant 0 : index
    %c1_88 = arith.constant 1 : index
    %c2_89 = arith.constant 2 : index
    %c0_90 = arith.constant 0 : index
    %c0_91 = arith.constant 0 : index
    %51 = vector.load %arg2[%c0_87, %c1_88, %c2_89, %c0_90, %c0_91] : memref<1x3x3x12x128xf32, #tpu.memory_space<vmem>>, vector<1x1x1x12x128xf32>
    %52 = vector.shape_cast %51 : vector<1x1x1x12x128xf32> to vector<12x128xf32>
    %cst_92 = arith.constant dense<0.000000e+00> : vector<1024x128xf32>
    %53 = tpu.matmul %50, %52, %cst_92 {dimension_numbers = #tpu.dot_dimension_numbers<[1], [0], [0], [1], [0, 0, 1, 1], [], []>} : vector<1024x12xf32>, vector<12x128xf32>, vector<1024x128xf32> -> vector<1024x128xf32>
    %54 = arith.addf %49, %53 : vector<1024x128xf32>
    %c0_93 = arith.constant 0 : index
    %c0_94 = arith.constant 0 : index
    %55 = vector.load %arg5[%c0_93, %c0_94] : memref<1024x128xf32, #tpu.memory_space<vmem>>, vector<1024x128xf32>
    tpu.vector_store %arg5[%c0_93, %c0_94], %54 {strides = array<i32>} : memref<1024x128xf32, #tpu.memory_space<vmem>>, vector<1024x128xf32>,
    %c0_95 = arith.constant 0 : index
    %c0_96 = arith.constant 0 : index
    %c2_97 = arith.constant 2 : index
    %c0_98 = arith.constant 0 : index
    %c0_99 = arith.constant 0 : index
    %c0_100 = arith.constant 0 : index
    %56 = vector.load %arg1[%c0_95, %c0_96, %c2_97, %c0_98, %c0_99, %c0_100] : memref<1x2x10x10x8x12xf32, #tpu.memory_space<vmem>>, vector<1x2x8x8x8x12xf32>
    %57 = vector.shape_cast %56 : vector<1x2x8x8x8x12xf32> to vector<2x8x8x8x12xf32>
    %c0_101 = arith.constant 0 : index
    %c0_102 = arith.constant 0 : index
    %58 = vector.load %arg5[%c0_101, %c0_102] : memref<1024x128xf32, #tpu.memory_space<vmem>>, vector<1024x128xf32>
    %59 = vector.shape_cast %57 : vector<2x8x8x8x12xf32> to vector<1024x12xf32>
    %c0_103 = arith.constant 0 : index
    %c2_104 = arith.constant 2 : index
    %c0_105 = arith.constant 0 : index
    %c0_106 = arith.constant 0 : index
    %c0_107 = arith.constant 0 : index
    %60 = vector.load %arg2[%c0_103, %c2_104, %c0_105, %c0_106, %c0_107] : memref<1x3x3x12x128xf32, #tpu.memory_space<vmem>>, vector<1x1x1x12x128xf32>
    %61 = vector.shape_cast %60 : vector<1x1x1x12x128xf32> to vector<12x128xf32>
    %cst_108 = arith.constant dense<0.000000e+00> : vector<1024x128xf32>
    %62 = tpu.matmul %59, %61, %cst_108 {dimension_numbers = #tpu.dot_dimension_numbers<[1], [0], [0], [1], [0, 0, 1, 1], [], []>} : vector<1024x12xf32>, vector<12x128xf32>, vector<1024x128xf32> -> vector<1024x128xf32>
    %63 = arith.addf %58, %62 : vector<1024x128xf32>
    %c0_109 = arith.constant 0 : index
    %c0_110 = arith.constant 0 : index
    %64 = vector.load %arg5[%c0_109, %c0_110] : memref<1024x128xf32, #tpu.memory_space<vmem>>, vector<1024x128xf32>
    tpu.vector_store %arg5[%c0_109, %c0_110], %63 {strides = array<i32>} : memref<1024x128xf32, #tpu.memory_space<vmem>>, vector<1024x128xf32>,
    %c0_111 = arith.constant 0 : index
    %c0_112 = arith.constant 0 : index
    %c2_113 = arith.constant 2 : index
    %c1_114 = arith.constant 1 : index
    %c0_115 = arith.constant 0 : index
    %c0_116 = arith.constant 0 : index
    %65 = vector.load %arg1[%c0_111, %c0_112, %c2_113, %c1_114, %c0_115, %c0_116] : memref<1x2x10x10x8x12xf32, #tpu.memory_space<vmem>>, vector<1x2x8x8x8x12xf32>
    %66 = vector.shape_cast %65 : vector<1x2x8x8x8x12xf32> to vector<2x8x8x8x12xf32>
    %c0_117 = arith.constant 0 : index
    %c0_118 = arith.constant 0 : index
    %67 = vector.load %arg5[%c0_117, %c0_118] : memref<1024x128xf32, #tpu.memory_space<vmem>>, vector<1024x128xf32>
    %68 = vector.shape_cast %66 : vector<2x8x8x8x12xf32> to vector<1024x12xf32>
    %c0_119 = arith.constant 0 : index
    %c2_120 = arith.constant 2 : index
    %c1_121 = arith.constant 1 : index
    %c0_122 = arith.constant 0 : index
    %c0_123 = arith.constant 0 : index
    %69 = vector.load %arg2[%c0_119, %c2_120, %c1_121, %c0_122, %c0_123] : memref<1x3x3x12x128xf32, #tpu.memory_space<vmem>>, vector<1x1x1x12x128xf32>
    %70 = vector.shape_cast %69 : vector<1x1x1x12x128xf32> to vector<12x128xf32>
    %cst_124 = arith.constant dense<0.000000e+00> : vector<1024x128xf32>
    %71 = tpu.matmul %68, %70, %cst_124 {dimension_numbers = #tpu.dot_dimension_numbers<[1], [0], [0], [1], [0, 0, 1, 1], [], []>} : vector<1024x12xf32>, vector<12x128xf32>, vector<1024x128xf32> -> vector<1024x128xf32>
    %72 = arith.addf %67, %71 : vector<1024x128xf32>
    %c0_125 = arith.constant 0 : index
    %c0_126 = arith.constant 0 : index
    %73 = vector.load %arg5[%c0_125, %c0_126] : memref<1024x128xf32, #tpu.memory_space<vmem>>, vector<1024x128xf32>
    tpu.vector_store %arg5[%c0_125, %c0_126], %72 {strides = array<i32>} : memref<1024x128xf32, #tpu.memory_space<vmem>>, vector<1024x128xf32>,
    %c0_127 = arith.constant 0 : index
    %c0_128 = arith.constant 0 : index
    %c2_129 = arith.constant 2 : index
    %c2_130 = arith.constant 2 : index
    %c0_131 = arith.constant 0 : index
    %c0_132 = arith.constant 0 : index
    %74 = vector.load %arg1[%c0_127, %c0_128, %c2_129, %c2_130, %c0_131, %c0_132] : memref<1x2x10x10x8x12xf32, #tpu.memory_space<vmem>>, vector<1x2x8x8x8x12xf32>
    %75 = vector.shape_cast %74 : vector<1x2x8x8x8x12xf32> to vector<2x8x8x8x12xf32>
    %c0_133 = arith.constant 0 : index
    %c0_134 = arith.constant 0 : index
    %76 = vector.load %arg5[%c0_133, %c0_134] : memref<1024x128xf32, #tpu.memory_space<vmem>>, vector<1024x128xf32>
    %77 = vector.shape_cast %75 : vector<2x8x8x8x12xf32> to vector<1024x12xf32>
    %c0_135 = arith.constant 0 : index
    %c2_136 = arith.constant 2 : index
    %c2_137 = arith.constant 2 : index
    %c0_138 = arith.constant 0 : index
    %c0_139 = arith.constant 0 : index
    %78 = vector.load %arg2[%c0_135, %c2_136, %c2_137, %c0_138, %c0_139] : memref<1x3x3x12x128xf32, #tpu.memory_space<vmem>>, vector<1x1x1x12x128xf32>
    %79 = vector.shape_cast %78 : vector<1x1x1x12x128xf32> to vector<12x128xf32>
    %cst_140 = arith.constant dense<0.000000e+00> : vector<1024x128xf32>
    %80 = tpu.matmul %77, %79, %cst_140 {dimension_numbers = #tpu.dot_dimension_numbers<[1], [0], [0], [1], [0, 0, 1, 1], [], []>} : vector<1024x12xf32>, vector<12x128xf32>, vector<1024x128xf32> -> vector<1024x128xf32>
    %81 = arith.addf %76, %80 : vector<1024x128xf32>
    %c0_141 = arith.constant 0 : index
    %c0_142 = arith.constant 0 : index
    %82 = vector.load %arg5[%c0_141, %c0_142] : memref<1024x128xf32, #tpu.memory_space<vmem>>, vector<1024x128xf32>
    tpu.vector_store %arg5[%c0_141, %c0_142], %81 {strides = array<i32>} : memref<1024x128xf32, #tpu.memory_space<vmem>>, vector<1024x128xf32>,
    %c0_143 = arith.constant 0 : index
    %c0_144 = arith.constant 0 : index
    %83 = vector.load %arg5[%c0_143, %c0_144] : memref<1024x128xf32, #tpu.memory_space<vmem>>, vector<1024x128xf32>
    %c0_145 = arith.constant 0 : index
    %c0_146 = arith.constant 0 : index
    %c0_147 = arith.constant 0 : index
    %84 = vector.load %arg3[%c0_145, %c0_146, %c0_147] : memref<1x1x128xf32, #tpu.memory_space<vmem>>, vector<1x1x128xf32>
    %85 = vector.shape_cast %84 : vector<1x1x128xf32> to vector<1x128xf32>
    %86 = vector.broadcast %85 : vector<1x128xf32> to vector<1024x128xf32>
    %87 = arith.addf %83, %86 : vector<1024x128xf32>
    %c0_148 = arith.constant 0 : index
    %c0_149 = arith.constant 0 : index
    %c0_150 = arith.constant 0 : index
    %88 = vector.load %arg4[%c0_148, %c0_149, %c0_150] : memref<1x1024x128xf32, #tpu.memory_space<vmem>>, vector<1x1024x128xf32>
    %89 = vector.shape_cast %88 : vector<1x1024x128xf32> to vector<1024x128xf32>
    %90 = vector.shape_cast %87 : vector<1024x128xf32> to vector<1x1024x128xf32>
    tpu.vector_store %arg4[%c0_148, %c0_149, %c0_150], %90 {strides = array<i32>} : memref<1x1024x128xf32, #tpu.memory_space<vmem>>, vector<1x1024x128xf32>,
    return
  }
  func.func @transform_0(%arg0: i32) -> (i32, i32, i32, i32, i32, i32) {
    %c0_i32 = arith.constant 0 : i32
    %c0_i32_0 = arith.constant 0 : i32
    %c0_i32_1 = arith.constant 0 : i32
    %c0_i32_2 = arith.constant 0 : i32
    %c0_i32_3 = arith.constant 0 : i32
    %c0_i32_4 = arith.constant 0 : i32
    return %arg0, %c0_i32, %c0_i32_0, %c0_i32_1, %c0_i32_2, %c0_i32_3 : i32, i32, i32, i32, i32, i32
  }
  func.func @transform_1(%arg0: i32) -> (i32, i32, i32, i32, i32) {
    %c0_i32 = arith.constant 0 : i32
    %c0_i32_0 = arith.constant 0 : i32
    %c0_i32_1 = arith.constant 0 : i32
    %c0_i32_2 = arith.constant 0 : i32
    %c0_i32_3 = arith.constant 0 : i32
    return %arg0, %c0_i32, %c0_i32_0, %c0_i32_1, %c0_i32_2 : i32, i32, i32, i32, i32
  }
  func.func @transform_2(%arg0: i32) -> (i32, i32, i32) {
    %c0_i32 = arith.constant 0 : i32
    %c0_i32_0 = arith.constant 0 : i32
    %c0_i32_1 = arith.constant 0 : i32
    return %arg0, %c0_i32, %c0_i32_0 : i32, i32, i32
  }
  func.func @transform_3(%arg0: i32) -> (i32, i32, i32) {
    %c0_i32 = arith.constant 0 : i32
    %c0_i32_0 = arith.constant 0 : i32
    %c0_i32_1 = arith.constant 0 : i32
    return %arg0, %c0_i32, %c0_i32_0 : i32, i32, i32
  }
}

</mosaic_0001>

<bundles_post_ra>
// kernel: multi_conv3d.1
= control target key start
LH: loop header
LB: loop body
LE: loop exit
PB: predicated region body
PF: predicated region fallthrough
CT: control target
= control target key end

     0   :  { %s21541_s12 = smov 0   ;;  %s25370_s0 = inlined_call_operand.vmem [shape: f32[2,2,10,10,8,12], index: 0, kind: input, shape index: {}]   ;;  %s25371_s1 = inlined_call_operand.vmem [shape: f32[2,3,3,12,128], index: 1, kind: input, shape index: {}]   ;;  %s25372_s2 = inlined_call_operand.vmem [shape: f32[2,1,128], index: 2, kind: input, shape index: {}]   ;;  %s25373_s3 = inlined_call_operand.vmem [shape: f32[2,1024,128], index: 3, kind: output, shape index: {}]  }
   0x1 LB: > { %s15272_s13 = sadd.s32 4294967295, %s21518_s12   ;;  %p15276_p0 = scmp.ge.s32.totalorder %s21518_s12, 1  ;;  %s21518_s12 = sphi %s21541_s12, %s13_s12  }
   0x2   : > { %p155_p1 = scmp.lt.s32.totalorder %s21518_s12, 3 }
   0x4   : > { %p156_p2 = pnand %p15276_p0, %p155_p1 }
   0x6   : > { %159 = sbr.rel (%p156_p2) target bundleno = 1393 (0x571), region = 32 }
   0xd   : > { %p187_p3 = scmp.lt.s32.totalorder %s15272_s13, 1  ;;  %vm976_vm0 = vcmask 1043456   ;;  %vm21520_vm1 = vmmov 1   ;;  %vm591_vm3 = vcmask 97280  }
   0xe   : > { %vm21558_vm2 = vmpackc.low %vm976_vm0, %vm21520_vm1 }
   0xf   : > { %s25576_s13 = smov (!%p187_p3, %s15272_s13), 1 }
  0x10   : > { %s21501_s14 = smul.u32 144, %s25576_s13  ;;  %s24921_s24 = scalar_lea.vmem %s25372_s2, %s25576_s13 }
  0x11   : > { %s21500_s15 = smul.u32 1600, %s25576_s13  ;;  %s17485_s25 = sshll.u32 %s25576_s13, 10 }
  0x12   : > { %s21556_s18 = scalar_lea.vmem %s25371_s1, %s21501_s14  ;;  %s24943_s28 = scalar_lea.vmem %s25373_s3, %s17485_s25 }
  0x13   : > { %v589_v1 = vld [vmem:[%s21556_s18] sm:$0xff]  ;;  %v590_v2 = vld [vmem:[%s21556_s18 + $0x8] sm:$0xf]  ;;  %s21568_s21 = scalar_lea.vmem %s25370_s0, %s21500_s15  ;;  %v15538_v9 = vld [vmem:[%s21556_s18 + $0x10] sm:$0xff] }
  0x14   : > { %v16315_v3 = vld [vmem:[%s21556_s18 + $0x40] sm:$0xff]  ;;  %v20420_v4 = vpack.c.bf16 %v590_v2, %v589_v1  ;;  %v16316_v5 = vld [vmem:[%s21556_s18 + $0x48] sm:$0xf]  ;;  %v16187_v7 = vld [vmem:[%s21568_s21 + $0x58] sm:$0xff] }
  0x15   : > { %v333_v6 = vld [vmem:[%s21568_s21] sm:$0xff]  ;;  %v21573_v8 = vpack.c.bf16 %v16316_v5, %v16315_v3  ;;  %19444 = vmatprep.mubr.msk.f32.mxu0 %vm591_vm3, %v16187_v7  ;;  %v15539_v10 = vld [vmem:[%s21556_s18 + $0x18] sm:$0xf]  ;;  %v16574_v12 = vld [vmem:[%s21556_s18 + $0x50] sm:$0xff] }
  0x16   : > { %18660 = vmatprep.mubr.msk.f32.mxu1 %vm591_vm3, %v333_v6  ;;  %20422 = vmatprep.subr.msk.bf16.mxu1 %vm21558_vm2, %v20420_v4  ;;  %v20426_v11 = vpack.c.bf16 %v15539_v10, %v15538_v9  ;;  %v16575_v13 = vld [vmem:[%s21556_s18 + $0x58] sm:$0xf]  ;;  %v334_v14 = vld [vmem:[%s21568_s21 + $0x8] sm:$0xff]  ;;  %v21595_v16 = vld [vmem:[%s21568_s21 + $0x60] sm:$0xff] }
  0x17   : > { %25439 = vst [vmem:[#allocation3_spill] sm:$0xff] %v21573_v8  ;;  %20446 = vmatprep.subr.msk.bf16.mxu0 %vm21558_vm2, %v21573_v8  ;;  %20425 = vmatpush3.bf16.msk.msra.mxu1 %vm21558_vm2, %v20420_v4  ;;  %v20450_v15 = vpack.c.bf16 %v16575_v13, %v16574_v12  ;;  %v335_v17 = vld [vmem:[%s21568_s21 + $0x10] sm:$0xff]  ;;  %v21602_v18 = vld [vmem:[%s21568_s21 + $0x68] sm:$0xff]  ;;  %v336_v19 = vld [vmem:[%s21568_s21 + $0x18] sm:$0xff] }
  0x18   : > { %20449 = vmatpush3.bf16.msk.msra.mxu0 %vm21558_vm2, %v21573_v8  ;;  %20428 = vmatprep.subr.msk.bf16.mxu1 %vm21558_vm2, %v20426_v11  ;;  %v21613_v20 = vld [vmem:[%s21568_s21 + $0x70] sm:$0xff]  ;;  %v337_v21 = vld [vmem:[%s21568_s21 + $0x20] sm:$0xff]  ;;  %v21619_v22 = vld [vmem:[%s21568_s21 + $0x78] sm:$0xff] }
  0x19   : > { %20452 = vmatprep.subr.msk.bf16.mxu0 %vm21558_vm2, %v20450_v15  ;;  %v338_v23 = vld [vmem:[%s21568_s21 + $0x28] sm:$0xff]  ;;  %v21629_v24 = vld [vmem:[%s21568_s21 + $0x80] sm:$0xff]  ;;  %v339_v25 = vld [vmem:[%s21568_s21 + $0x30] sm:$0xff] }
  0x1a   : > { %18661 = vmatmul.mubr.msk.f32.vlgmr.msra.gmra.mrb[0].mxu1 %vm591_vm3, %v334_v14  ;;  %v21633_v26 = vld [vmem:[%s21568_s21 + $0x88] sm:$0xff]  ;;  %v340_v27 = vld [vmem:[%s21568_s21 + $0x38] sm:$0xff]  ;;  %v21643_v28 = vld [vmem:[%s21568_s21 + $0x90] sm:$0xff] }
  0x1b   : > { %19445 = vmatmul.mubr.msk.f32.vlgmr.msra.gmra.mrb[0].mxu0 %vm591_vm3, %v21595_v16  ;;  %20431 = vmatpush3.bf16.msk.msra.mxu1 %vm21558_vm2, %v20426_v11  ;;  %v341_v29 = vld [vmem:[%s21568_s21 + $0x50] sm:$0xff]  ;;  %v16195_v30 = vld [vmem:[%s21568_s21 + $0xa8] sm:$0xff]  ;;  %v21656_v32 = vld [vmem:[%s21568_s21 + $0xb8] sm:$0xff] }
  0x1c   : > { %20455 = vmatpush3.bf16.msk.msra.mxu0 %vm21558_vm2, %v20450_v15  ;;  %18663 = vmatprep.mubr.msk.f32.mxu1 %vm591_vm3, %v335_v17  ;;  %v21653_v31 = vld [vmem:[%s21568_s21 + $0xb0] sm:$0xff]  ;;  %v21666_v33 = vld [vmem:[%s21568_s21 + $0xc0] sm:$0xff]  ;;  %v21669_v34 = vld [vmem:[%s21568_s21 + $0xc8] sm:$0xff] }
  0x1d   : > { %19447 = vmatprep.mubr.msk.f32.mxu0 %vm591_vm3, %v21602_v18  ;;  %v21680_v35 = vld [vmem:[%s21568_s21 + $0xd0] sm:$0xff]  ;;  %v16833_v36 = vld [vmem:[%s21556_s18 + $0x60] sm:$0xff]  ;;  %v21684_v37 = vld [vmem:[%s21568_s21 + $0xd8] sm:$0xff] }
  0x1e   : > { %18664 = vmatmul.mubr.msk.f32.gmra.mrb[2].mxu1 %vm591_vm3, %v336_v19  ;;  %v16834_v38 = vld [vmem:[%s21556_s18 + $0x68] sm:$0xf]  ;;  %v21698_v40 = vld [vmem:[%s21568_s21 + $0xe0] sm:$0xff]  ;;  %v16203_v42 = vld [vmem:[%s21568_s21 + $0xf8] sm:$0xff] }
  0x1f   : > { %19448 = vmatmul.mubr.msk.f32.gmra.mrb[2].mxu0 %vm591_vm3, %v21613_v20  ;;  %18666 = vmatprep.mubr.msk.f32.mxu1 %vm591_vm3, %v337_v21  ;;  %v21689_v39 = vpack.c.bf16 %v16834_v38, %v16833_v36  ;;  %v349_v41 = vld [vmem:[%s21568_s21 + $0xa0] sm:$0xff]  ;;  %v21715_v44 = vld [vmem:[%s21568_s21 + $0x108] sm:$0xff]  ;;  %v21725_v45 = vld [vmem:[%s21568_s21 + $0x110] sm:$0xff] }
  0x20   : > { %19450 = vmatprep.mubr.msk.f32.mxu0 %vm591_vm3, %v21619_v22  ;;  %v21712_v43 = vld [vmem:[%s21568_s21 + $0x100] sm:$0xff]  ;;  %v21728_v46 = vld [vmem:[%s21568_s21 + $0x118] sm:$0xff]  ;;  %v21742_v48 = vld [vmem:[%s21568_s21 + $0x128] sm:$0xff] }
  0x21   : > { %20458 = vmatprep.subr.msk.bf16.mxu0 %vm21558_vm2, %v21689_v39  ;;  %v21739_v47 = vld [vmem:[%s21568_s21 + $0x120] sm:$0xff]  ;;  %v21753_v49 = vld [vmem:[%s21568_s21 + $0x130] sm:$0xff]  ;;  %v16211_v51 = vld [vmem:[%s21568_s21 + $0x148] sm:$0xff] }
  0x22   : > { %18667 = vmatmul.mubr.msk.f32.gmra.mrb[4].mxu1 %vm591_vm3, %v338_v23  ;;  %v357_v50 = vld [vmem:[%s21568_s21 + $0xf0] sm:$0xff]  ;;  %v21767_v53 = vld [vmem:[%s21568_s21 + $0x158] sm:$0xff]  ;;  %v21777_v54 = vld [vmem:[%s21568_s21 + $0x160] sm:$0xff] }
  0x23   : > { %19451 = vmatmul.mubr.msk.f32.gmra.mrb[4].mxu0 %vm591_vm3, %v21629_v24  ;;  %18669 = vmatprep.mubr.msk.f32.mxu1 %vm591_vm3, %v339_v25  ;;  %v21764_v52 = vld [vmem:[%s21568_s21 + $0x150] sm:$0xff]  ;;  %v21780_v55 = vld [vmem:[%s21568_s21 + $0x168] sm:$0xff]  ;;  %v21794_v57 = vld [vmem:[%s21568_s21 + $0x178] sm:$0xff] }
  0x24   : > { %19453 = vmatprep.mubr.msk.f32.mxu0 %vm591_vm3, %v21633_v26  ;;  %v21791_v56 = vld [vmem:[%s21568_s21 + $0x170] sm:$0xff]  ;;  %v21805_v58 = vld [vmem:[%s21568_s21 + $0x180] sm:$0xff]  ;;  %v16219_v60 = vld [vmem:[%s21568_s21 + $0x198] sm:$0xff] }
  0x25   : > { %v365_v59 = vld [vmem:[%s21568_s21 + $0x140] sm:$0xff]  ;;  %v21819_v62 = vld [vmem:[%s21568_s21 + $0x1a8] sm:$0xff]  ;;  %v21829_v63 = vld [vmem:[%s21568_s21 + $0x1b0] sm:$0xff] }
  0x26   : > { %18670 = vmatmul.mubr.msk.f32.gmra.mrb[6].mxu1 %vm591_vm3, %v340_v27  ;;  %v21816_v61 = vld [vmem:[%s21568_s21 + $0x1a0] sm:$0xff]  ;;  %v21832_v1 = vld [vmem:[%s21568_s21 + $0x1b8] sm:$0xff]  ;;  %v21846_v3 = vld [vmem:[%s21568_s21 + $0x1c8] sm:$0xff] }
  0x27   : > { %19454 = vmatmul.mubr.msk.f32.gmra.mrb[6].mxu0 %vm591_vm3, %v21643_v28  ;;  %18672 = vmatprep.mubr.msk.f32.mxu1 %vm591_vm3, %v341_v29  ;;  %v21843_v2 = vld [vmem:[%s21568_s21 + $0x1c0] sm:$0xff]  ;;  %v21857_v4 = vld [vmem:[%s21568_s21 + $0x1d0] sm:$0xff]  ;;  %v16227_v6 = vld [vmem:[%s21568_s21 + $0x1e8] sm:$0xff] }
  0x28   : > { %19456 = vmatprep.mubr.msk.f32.mxu0 %vm591_vm3, %v16195_v30  ;;  %v373_v5 = vld [vmem:[%s21568_s21 + $0x190] sm:$0xff]  ;;  %v21871_v9 = vld [vmem:[%s21568_s21 + $0x1f8] sm:$0xff]  ;;  %v21881_v10 = vld [vmem:[%s21568_s21 + $0x200] sm:$0xff] }
  0x29   : > { %v21884_v11 = vld [vmem:[%s21568_s21 + $0x208] sm:$0xff]  ;;  %v21895_v12 = vld [vmem:[%s21568_s21 + $0x210] sm:$0xff]  ;;  %v21898_v13 = vld [vmem:[%s21568_s21 + $0x218] sm:$0xff] }
  0x2a   : > { %18673 = vmatmul.mubr.msk.f32.gmra.mrb[8].mxu1 %vm591_vm3, %v16187_v7  ;;  %v21868_v7 = vld [vmem:[%s21568_s21 + $0x1f0] sm:$0xff]  ;;  %v21909_v14 = vld [vmem:[%s21568_s21 + $0x220] sm:$0xff]  ;;  %v16235_v17 = vld [vmem:[%s21568_s21 + $0x238] sm:$0xff] }
  0x2b   : > { %19457 = vmatmul.mubr.msk.f32.gmra.mrb[8].mxu0 %vm591_vm3, %v21653_v31  ;;  %18675 = vmatprep.mubr.msk.f32.mxu1 %vm591_vm3, %v21595_v16  ;;  %v381_v15 = vld [vmem:[%s21568_s21 + $0x1e0] sm:$0xff]  ;;  %v21923_v21 = vld [vmem:[%s21568_s21 + $0x248] sm:$0xff]  ;;  %v21933_v23 = vld [vmem:[%s21568_s21 + $0x250] sm:$0xff] }
  0x2c   : > { %19459 = vmatprep.mubr.msk.f32.mxu0 %vm591_vm3, %v21656_v32  ;;  %v21920_v19 = vld [vmem:[%s21568_s21 + $0x240] sm:$0xff]  ;;  %v21936_v25 = vld [vmem:[%s21568_s21 + $0x258] sm:$0xff]  ;;  %v21950_v29 = vld [vmem:[%s21568_s21 + $0x268] sm:$0xff] }
  0x2d   : > { %v21947_v27 = vld [vmem:[%s21568_s21 + $0x260] sm:$0xff]  ;;  %v389_v36 = vld [vmem:[%s21568_s21 + $0x230] sm:$0xff]  ;;  %v16243_v38 = vld [vmem:[%s21568_s21 + $0x288] sm:$0xff] }
  0x2e   : > { %18676 = vmatmul.mubr.msk.f32.gmra.mrb[10].mxu1 %vm591_vm3, %v21602_v18  ;;  %v400_v8 = vld [vmem:[%s21568_s21 + $0x338] sm:$0xff]  ;;  %v15936_v0 = vld [vmem:[%s21568_s21 + $0xa0] sm:$0xff] }
  0x2f   : > { %19460 = vmatmul.mubr.msk.f32.gmra.mrb[10].mxu0 %vm591_vm3, %v21666_v33  ;;  %18678 = vmatprep.mubr.msk.f32.mxu1 %vm591_vm3, %v21613_v20 }
  0x30   : > { %19462 = vmatprep.mubr.msk.f32.mxu0 %vm591_vm3, %v21669_v34 }
  0x32   : > { %18679 = vmatmul.mubr.msk.f32.gmra.mrb[12].mxu1 %vm591_vm3, %v21619_v22 }
  0x33   : > { %19463 = vmatmul.mubr.msk.f32.gmra.mrb[12].mxu0 %vm591_vm3, %v21680_v35  ;;  %18681 = vmatprep.mubr.msk.f32.mxu1 %vm591_vm3, %v21629_v24 }
  0x34   : > { %19465 = vmatprep.mubr.msk.f32.mxu0 %vm591_vm3, %v21684_v37 }
  0x36   : > { %18682 = vmatmul.mubr.msk.f32.gmra.mrb[14].mxu1 %vm591_vm3, %v21633_v26 }
  0x37   : > { %19466 = vmatmul.mubr.msk.f32.gmra.mrb[14].mxu0 %vm591_vm3, %v21698_v40  ;;  %18684 = vmatprep.mubr.msk.f32.mxu1 %vm591_vm3, %v349_v41  ;;  %v21972_v41 = vld [vmem:[%s21568_s21 + $0x290] sm:$0xff] }
  0x38   : > { %19468 = vmatprep.mubr.msk.f32.mxu0 %vm591_vm3, %v16203_v42 }
  0x3a   : > { %18685 = vmatmul.mubr.msk.f32.gmra.mrb[16].mxu1 %vm591_vm3, %v16195_v30  ;;  %v21961_v30 = vld [vmem:[%s21568_s21 + $0x270] sm:$0xff] }
  0x3b   : > { %19469 = vmatmul.mubr.msk.f32.gmra.mrb[16].mxu0 %vm591_vm3, %v21712_v43  ;;  %18687 = vmatprep.mubr.msk.f32.mxu1 %vm591_vm3, %v21653_v31 }
  0x3c   : > { %19471 = vmatprep.mubr.msk.f32.mxu0 %vm591_vm3, %v21715_v44 }
  0x3e   : > { %18688 = vmatmul.mubr.msk.f32.gmra.mrb[18].mxu1 %vm591_vm3, %v21656_v32 }
  0x3f   : > { %19472 = vmatmul.mubr.msk.f32.gmra.mrb[18].mxu0 %vm591_vm3, %v21725_v45  ;;  %18690 = vmatprep.mubr.msk.f32.mxu1 %vm591_vm3, %v21666_v33 }
  0x40   : > { %19474 = vmatprep.mubr.msk.f32.mxu0 %vm591_vm3, %v21728_v46 }
  0x42   : > { %18691 = vmatmul.mubr.msk.f32.gmra.mrb[20].mxu1 %vm591_vm3, %v21669_v34 }
  0x43   : > { %19475 = vmatmul.mubr.msk.f32.gmra.mrb[20].mxu0 %vm591_vm3, %v21739_v47  ;;  %18693 = vmatprep.mubr.msk.f32.mxu1 %vm591_vm3, %v21680_v35 }
  0x44   : > { %19477 = vmatprep.mubr.msk.f32.mxu0 %vm591_vm3, %v21742_v48 }
  0x46   : > { %18694 = vmatmul.mubr.msk.f32.gmra.mrb[22].mxu1 %vm591_vm3, %v21684_v37 }
  0x47   : > { %19478 = vmatmul.mubr.msk.f32.gmra.mrb[22].mxu0 %vm591_vm3, %v21753_v49  ;;  %18696 = vmatprep.mubr.msk.f32.mxu1 %vm591_vm3, %v357_v50  ;;  %v21985_v50 = vld [vmem:[%s21568_s21 + $0x2a0] sm:$0xff] }
  0x48   : > { %19480 = vmatprep.mubr.msk.f32.mxu0 %vm591_vm3, %v16211_v51 }
  0x4a   : > { %18697 = vmatmul.mubr.msk.f32.gmra.mrb[24].mxu1 %vm591_vm3, %v16203_v42  ;;  %v21975_v42 = vld [vmem:[%s21568_s21 + $0x298] sm:$0xff] }
  0x4b   : > { %19481 = vmatmul.mubr.msk.f32.gmra.mrb[24].mxu0 %vm591_vm3, %v21764_v52  ;;  %18699 = vmatprep.mubr.msk.f32.mxu1 %vm591_vm3, %v21712_v43 }
  0x4c   : > { %19483 = vmatprep.mubr.msk.f32.mxu0 %vm591_vm3, %v21767_v53 }
  0x4e   : > { %18700 = vmatmul.mubr.msk.f32.gmra.mrb[26].mxu1 %vm591_vm3, %v21715_v44 }
  0x4f   : > { %19484 = vmatmul.mubr.msk.f32.gmra.mrb[26].mxu0 %vm591_vm3, %v21777_v54  ;;  %18702 = vmatprep.mubr.msk.f32.mxu1 %vm591_vm3, %v21725_v45 }
  0x50   : > { %19486 = vmatprep.mubr.msk.f32.mxu0 %vm591_vm3, %v21780_v55 }
  0x52   : > { %18703 = vmatmul.mubr.msk.f32.gmra.mrb[28].mxu1 %vm591_vm3, %v21728_v46 }
  0x53   : > { %19487 = vmatmul.mubr.msk.f32.gmra.mrb[28].mxu0 %vm591_vm3, %v21791_v56  ;;  %18705 = vmatprep.mubr.msk.f32.mxu1 %vm591_vm3, %v21739_v47 }
  0x54   : > { %19489 = vmatprep.mubr.msk.f32.mxu0 %vm591_vm3, %v21794_v57 }
  0x56   : > { %18706 = vmatmul.mubr.msk.f32.gmra.mrb[30].mxu1 %vm591_vm3, %v21742_v48 }
  0x57   : > { %19490 = vmatmul.mubr.msk.f32.gmra.mrb[30].mxu0 %vm591_vm3, %v21805_v58  ;;  %18708 = vmatprep.mubr.msk.f32.mxu1 %vm591_vm3, %v365_v59  ;;  %v21999_v59 = vld [vmem:[%s21568_s21 + $0x2b0] sm:$0xff] }
  0x58   : > { %19492 = vmatprep.mubr.msk.f32.mxu0 %vm591_vm3, %v16219_v60 }
  0x5a   : > { %18709 = vmatmul.mubr.msk.f32.gmra.mrb[32].mxu1 %vm591_vm3, %v16211_v51  ;;  %v21988_v51 = vld [vmem:[%s21568_s21 + $0x2a8] sm:$0xff] }
  0x5b   : > { %19493 = vmatmul.mubr.msk.f32.gmra.mrb[32].mxu0 %vm591_vm3, %v21816_v61  ;;  %18711 = vmatprep.mubr.msk.f32.mxu1 %vm591_vm3, %v21764_v52 }
  0x5c   : > { %19495 = vmatprep.mubr.msk.f32.mxu0 %vm591_vm3, %v21819_v62 }
  0x5e   : > { %18712 = vmatmul.mubr.msk.f32.gmra.mrb[34].mxu1 %vm591_vm3, %v21767_v53 }
  0x5f   : > { %19496 = vmatmul.mubr.msk.f32.gmra.mrb[34].mxu0 %vm591_vm3, %v21829_v63  ;;  %18714 = vmatprep.mubr.msk.f32.mxu1 %vm591_vm3, %v21777_v54 }
  0x60   : > { %19498 = vmatprep.mubr.msk.f32.mxu0 %vm591_vm3, %v21832_v1 }
  0x62   : > { %18715 = vmatmul.mubr.msk.f32.gmra.mrb[36].mxu1 %vm591_vm3, %v21780_v55 }
  0x63   : > { %19499 = vmatmul.mubr.msk.f32.gmra.mrb[36].mxu0 %vm591_vm3, %v21843_v2  ;;  %18717 = vmatprep.mubr.msk.f32.mxu1 %vm591_vm3, %v21791_v56 }
  0x64   : > { %19501 = vmatprep.mubr.msk.f32.mxu0 %vm591_vm3, %v21846_v3 }
  0x66   : > { %18718 = vmatmul.mubr.msk.f32.gmra.mrb[38].mxu1 %vm591_vm3, %v21794_v57 }
  0x67   : > { %19502 = vmatmul.mubr.msk.f32.gmra.mrb[38].mxu0 %vm591_vm3, %v21857_v4  ;;  %18720 = vmatprep.mubr.msk.f32.mxu1 %vm591_vm3, %v373_v5  ;;  %v22013_v5 = vld [vmem:[%s21568_s21 + $0x2c0] sm:$0xff] }
  0x68   : > { %19504 = vmatprep.mubr.msk.f32.mxu0 %vm591_vm3, %v16227_v6  ;;  %25440 = vst [vmem:[#allocation4_spill] sm:$0xff] %v22013_v5 }
  0x6a   : > { %18721 = vmatmul.mubr.msk.f32.gmra.mrb[40].mxu1 %vm591_vm3, %v16219_v60  ;;  %v22002_v60 = vld [vmem:[%s21568_s21 + $0x2b8] sm:$0xff] }
  0x6b   : > { %19505 = vmatmul.mubr.msk.f32.gmra.mrb[40].mxu0 %vm591_vm3, %v21868_v7  ;;  %18723 = vmatprep.mubr.msk.f32.mxu1 %vm591_vm3, %v21816_v61 }
  0x6c   : > { %19507 = vmatprep.mubr.msk.f32.mxu0 %vm591_vm3, %v21871_v9 }
  0x6e   : > { %18724 = vmatmul.mubr.msk.f32.gmra.mrb[42].mxu1 %vm591_vm3, %v21819_v62 }
  0x6f   : > { %19508 = vmatmul.mubr.msk.f32.gmra.mrb[42].mxu0 %vm591_vm3, %v21881_v10  ;;  %18726 = vmatprep.mubr.msk.f32.mxu1 %vm591_vm3, %v21829_v63 }
  0x70   : > { %19510 = vmatprep.mubr.msk.f32.mxu0 %vm591_vm3, %v21884_v11 }
  0x72   : > { %18727 = vmatmul.mubr.msk.f32.gmra.mrb[44].mxu1 %vm591_vm3, %v21832_v1 }
  0x73   : > { %19511 = vmatmul.mubr.msk.f32.gmra.mrb[44].mxu0 %vm591_vm3, %v21895_v12  ;;  %18729 = vmatprep.mubr.msk.f32.mxu1 %vm591_vm3, %v21843_v2 }
  0x74   : > { %19513 = vmatprep.mubr.msk.f32.mxu0 %vm591_vm3, %v21898_v13 }
  0x76   : > { %18730 = vmatmul.mubr.msk.f32.gmra.mrb[46].mxu1 %vm591_vm3, %v21846_v3 }
  0x77   : > { %19514 = vmatmul.mubr.msk.f32.gmra.mrb[46].mxu0 %vm591_vm3, %v21909_v14  ;;  %18732 = vmatprep.mubr.msk.f32.mxu1 %vm591_vm3, %v381_v15  ;;  %v398_v15 = vld [vmem:[%s21568_s21 + $0x328] sm:$0xff] }
  0x78   : > { %19516 = vmatprep.mubr.msk.f32.mxu0 %vm591_vm3, %v16235_v17 }
  0x7a   : > { %18733 = vmatmul.mubr.msk.f32.gmra.mrb[48].mxu1 %vm591_vm3, %v16227_v6  ;;  %v397_v6 = vld [vmem:[%s21568_s21 + $0x320] sm:$0xff] }
  0x7b   : > { %19517 = vmatmul.mubr.msk.f32.gmra.mrb[48].mxu0 %vm591_vm3, %v21920_v19  ;;  %18735 = vmatprep.mubr.msk.f32.mxu1 %vm591_vm3, %v21868_v7 }
  0x7c   : > { %19519 = vmatprep.mubr.msk.f32.mxu0 %vm591_vm3, %v21923_v21 }
  0x7e   : > { %18736 = vmatmul.mubr.msk.f32.gmra.mrb[50].mxu1 %vm591_vm3, %v21871_v9 }
  0x7f   : > { %19520 = vmatmul.mubr.msk.f32.gmra.mrb[50].mxu0 %vm591_vm3, %v21933_v23  ;;  %18738 = vmatprep.mubr.msk.f32.mxu1 %vm591_vm3, %v21881_v10 }
  0x80   : > { %19522 = vmatprep.mubr.msk.f32.mxu0 %vm591_vm3, %v21936_v25 }
  0x82   : > { %18739 = vmatmul.mubr.msk.f32.gmra.mrb[52].mxu1 %vm591_vm3, %v21884_v11 }
  0x83   : > { %19523 = vmatmul.mubr.msk.f32.gmra.mrb[52].mxu0 %vm591_vm3, %v21947_v27  ;;  %18741 = vmatprep.mubr.msk.f32.mxu1 %vm591_vm3, %v21895_v12 }
  0x84   : > { %19525 = vmatprep.mubr.msk.f32.mxu0 %vm591_vm3, %v21950_v29 }
  0x86   : > { %18742 = vmatmul.mubr.msk.f32.gmra.mrb[54].mxu1 %vm591_vm3, %v21898_v13 }
  0x87   : > { %19526 = vmatmul.mubr.msk.f32.gmra.mrb[54].mxu0 %vm591_vm3, %v21961_v30  ;;  %18744 = vmatprep.mubr.msk.f32.mxu1 %vm591_vm3, %v389_v36  ;;  %v15797_v36 = vld [vmem:[%s21556_s18 + $0x20] sm:$0xff] }
  0x88   : > { %19528 = vmatprep.mubr.msk.f32.mxu0 %vm591_vm3, %v16243_v38  ;;  %v15798_v38 = vld [vmem:[%s21556_s18 + $0x28] sm:$0xf] }
  0x8a   : > { %18745 = vmatmul.mubr.msk.f32.gmra.mrb[56].mxu1 %vm591_vm3, %v16235_v17  ;;  %v399_v17 = vld [vmem:[%s21568_s21 + $0x330] sm:$0xff] }
  0x8b   : > { %19529 = vmatmul.mubr.msk.f32.gmra.mrb[56].mxu0 %vm591_vm3, %v21972_v41  ;;  %18747 = vmatprep.mubr.msk.f32.mxu1 %vm591_vm3, %v21920_v19 }
  0x8c   : > { %19531 = vmatprep.mubr.msk.f32.mxu0 %vm591_vm3, %v21975_v42 }
  0x8e   : > { %18748 = vmatmul.mubr.msk.f32.gmra.mrb[58].mxu1 %vm591_vm3, %v21923_v21 }
  0x8f   : > { %19532 = vmatmul.mubr.msk.f32.gmra.mrb[58].mxu0 %vm591_vm3, %v21985_v50  ;;  %18750 = vmatprep.mubr.msk.f32.mxu1 %vm591_vm3, %v21933_v23 }
  0x90   : > { %19534 = vmatprep.mubr.msk.f32.mxu0 %vm591_vm3, %v21988_v51 }
  0x92   : > { %18751 = vmatmul.mubr.msk.f32.gmra.mrb[60].mxu1 %vm591_vm3, %v21936_v25 }
  0x93   : > { %19535 = vmatmul.mubr.msk.f32.gmra.mrb[60].mxu0 %vm591_vm3, %v21999_v59  ;;  %18753 = vmatprep.mubr.msk.f32.mxu1 %vm591_vm3, %v21947_v27 }
  0x94   : > { %19537 = vmatprep.mubr.msk.f32.mxu0 %vm591_vm3, %v22002_v60 }
  0x96   : > { %18754 = vmatmul.mubr.msk.f32.gmra.mrb[62].mxu1 %vm591_vm3, %v21950_v29 }
  0x97   : > { %19538 = vmatmul.mubr.msk.f32.gmra.mrb[62].mxu0 %vm591_vm3, %v22013_v5  ;;  %18756 = vmatprep.mubr.msk.f32.mxu1 %vm591_vm3, %v397_v6  ;;  %v22032_v5 = vpack.c.bf16 %v15798_v38, %v15797_v36  ;;  %v22080_v6 = vld [vmem:[%s21568_s21 + $0x390] sm:$0xff]  ;;  %v22167_v36 = vld [vmem:[%s21568_s21 + $0x420] sm:$0xff] }
  0x98   : > { %19640 = vmatprep.mubr.msk.f32.mxu0 %vm591_vm3, %v21595_v16  ;;  %v401_v16 = vld [vmem:[%s21568_s21 + $0x340] sm:$0xff]  ;;  %v22180_v38 = vld [vmem:[%s21568_s21 + $0x430] sm:$0xff] }
  0x99   : > { %20434 = vmatprep.subr.msk.bf16.mxu1 %vm21558_vm2, %v22032_v5 }
  0x9a   : > { %18757 = vmatmul.mubr.msk.f32.gmra.mrb[64].mxu1 %vm591_vm3, %v398_v15  ;;  %v22117_v15 = vld [vmem:[%s21568_s21 + $0x3d0] sm:$0xff] }
  0x9b   : > { %19641 = vmatmul.mubr.msk.f32.vlgmr.msra.gmra.mrb[0].mxu0 %vm591_vm3, %v21602_v18  ;;  %18759 = vmatprep.mubr.msk.f32.mxu1 %vm591_vm3, %v399_v17  ;;  %v402_v18 = vld [vmem:[%s21568_s21 + $0x348] sm:$0xff]  ;;  %v22130_v17 = vld [vmem:[%s21568_s21 + $0x3e0] sm:$0xff] }
  0x9c   : > { %20461 = vmatpush3.bf16.msk.msra.mxu0 %vm21558_vm2, %v21689_v39  ;;  %19643 = vmatprep.mubr.msk.f32.mxu0 %vm591_vm3, %v21613_v20  ;;  %v403_v39 = vld [vmem:[%s21568_s21 + $0x350] sm:$0xff]  ;;  %v16453_v20 = vld [vmem:[%s21568_s21 + $0x98] sm:$0xff] }
  0x9e   : > { %18760 = vmatmul.mubr.msk.f32.gmra.mrb[66].mxu1 %vm591_vm3, %v400_v8  ;;  %v404_v8 = vld [vmem:[%s21568_s21 + $0x358] sm:$0xff] }
  0x9f   : > { %19644 = vmatmul.mubr.msk.f32.gmra.mrb[2].mxu0 %vm591_vm3, %v21619_v22  ;;  %18762 = vmatprep.mubr.msk.f32.mxu1 %vm591_vm3, %v401_v16  ;;  %v405_v22 = vld [vmem:[%s21568_s21 + $0x370] sm:$0xff] }
  0xa0   : > { %19646 = vmatprep.mubr.msk.f32.mxu0 %vm591_vm3, %v21629_v24  ;;  %v406_v24 = vld [vmem:[%s21568_s21 + $0x378] sm:$0xff]  ;;  %v22217_v16 = vld [vmem:[%s21568_s21 + $0x470] sm:$0xff] }
  0xa2   : > { %18763 = vmatmul.mubr.msk.f32.gmra.mrb[68].mxu1 %vm591_vm3, %v402_v18  ;;  %v22230_v18 = vld [vmem:[%s21568_s21 + $0x480] sm:$0xff] }
  0xa3   : > { %19647 = vmatmul.mubr.msk.f32.gmra.mrb[4].mxu0 %vm591_vm3, %v21633_v26  ;;  %18765 = vmatprep.mubr.msk.f32.mxu1 %vm591_vm3, %v403_v39  ;;  %v22067_v26 = vld [vmem:[%s21568_s21 + $0x380] sm:$0xff] }
  0xa4   : > { %19649 = vmatprep.mubr.msk.f32.mxu0 %vm591_vm3, %v21643_v28  ;;  %v22075_v28 = vld [vmem:[%s21568_s21 + $0x388] sm:$0xff]  ;;  %v22267_v39 = vld [vmem:[%s21568_s21 + $0x4c0] sm:$0xff] }
  0xa6   : > { %18766 = vmatmul.mubr.msk.f32.gmra.mrb[70].mxu1 %vm591_vm3, %v404_v8  ;;  %v22280_v8 = vld [vmem:[%s21568_s21 + $0x4d0] sm:$0xff] }
  0xa7   : > { %19650 = vmatmul.mubr.msk.f32.gmra.mrb[6].mxu0 %vm591_vm3, %v16453_v20  ;;  %18768 = vmatprep.mubr.msk.f32.mxu1 %vm591_vm3, %v405_v22  ;;  %v22317_v20 = vld [vmem:[%s21568_s21 + $0x510] sm:$0xff]  ;;  %v22330_v22 = vld [vmem:[%s21568_s21 + $0x520] sm:$0xff] }
  0xa8   : > { %19652 = vmatprep.mubr.msk.f32.mxu0 %vm591_vm3, %v21653_v31  ;;  %v22089_v31 = vld [vmem:[%s21568_s21 + $0x398] sm:$0xff] }
  0xaa   : > { %18769 = vmatmul.mubr.msk.f32.gmra.mrb[72].mxu1 %vm591_vm3, %v406_v24  ;;  %v22367_v24 = vld [vmem:[%s21568_s21 + $0x560] sm:$0xff] }
  0xab   : > { %19653 = vmatmul.mubr.msk.f32.gmra.mrb[8].mxu0 %vm591_vm3, %v21656_v32  ;;  %18771 = vmatprep.mubr.msk.f32.mxu1 %vm591_vm3, %v22067_v26  ;;  %v22094_v32 = vld [vmem:[%s21568_s21 + $0x3a0] sm:$0xff] }
  0xac   : > { %19655 = vmatprep.mubr.msk.f32.mxu0 %vm591_vm3, %v21666_v33  ;;  %v22103_v33 = vld [vmem:[%s21568_s21 + $0x3a8] sm:$0xff] }
  0xae   : > { %18772 = vmatmul.mubr.msk.f32.gmra.mrb[74].mxu1 %vm591_vm3, %v22075_v28 }
  0xaf   : > { %19656 = vmatmul.mubr.msk.f32.gmra.mrb[10].mxu0 %vm591_vm3, %v21669_v34  ;;  %18774 = vmatprep.mubr.msk.f32.mxu1 %vm591_vm3, %v22080_v6  ;;  %v16461_v34 = vld [vmem:[%s21568_s21 + $0xe8] sm:$0xff] }
  0xb0   : > { %19658 = vmatprep.mubr.msk.f32.mxu0 %vm591_vm3, %v21680_v35  ;;  %v413_v35 = vld [vmem:[%s21568_s21 + $0x3c0] sm:$0xff] }
  0xb2   : > { %18775 = vmatmul.mubr.msk.f32.gmra.mrb[76].mxu1 %vm591_vm3, %v22089_v31 }
  0xb3   : > { %19659 = vmatmul.mubr.msk.f32.gmra.mrb[12].mxu0 %vm591_vm3, %v21684_v37  ;;  %18777 = vmatprep.mubr.msk.f32.mxu1 %vm591_vm3, %v22094_v32  ;;  %v414_v37 = vld [vmem:[%s21568_s21 + $0x3c8] sm:$0xff] }
  0xb4   : > { %19661 = vmatprep.mubr.msk.f32.mxu0 %vm591_vm3, %v21698_v40  ;;  %v22125_v40 = vld [vmem:[%s21568_s21 + $0x3d8] sm:$0xff] }
  0xb6   : > { %18778 = vmatmul.mubr.msk.f32.gmra.mrb[78].mxu1 %vm591_vm3, %v22103_v33 }
  0xb7   : > { %19662 = vmatmul.mubr.msk.f32.gmra.mrb[14].mxu0 %vm591_vm3, %v16461_v34  ;;  %18780 = vmatprep.mubr.msk.f32.mxu1 %vm591_vm3, %v413_v35  ;;  %v22380_v34 = vld [vmem:[%s21568_s21 + $0x570] sm:$0xff]  ;;  %v15410_v35 = vld [vmem:[%s21568_s21 + $0x8] sm:$0xff] }
  0xb8   : > { %19664 = vmatprep.mubr.msk.f32.mxu0 %vm591_vm3, %v21712_v43  ;;  %v22139_v43 = vld [vmem:[%s21568_s21 + $0x3e8] sm:$0xff] }
  0xba   : > { %18781 = vmatmul.mubr.msk.f32.gmra.mrb[80].mxu1 %vm591_vm3, %v414_v37  ;;  %v15412_v37 = vld [vmem:[%s21568_s21 + $0x18] sm:$0xff] }
  0xbb   : > { %19665 = vmatmul.mubr.msk.f32.gmra.mrb[16].mxu0 %vm591_vm3, %v21715_v44  ;;  %18783 = vmatprep.mubr.msk.f32.mxu1 %vm591_vm3, %v22117_v15  ;;  %v22144_v44 = vld [vmem:[%s21568_s21 + $0x3f0] sm:$0xff] }
  0xbc   : > { %19667 = vmatprep.mubr.msk.f32.mxu0 %vm591_vm3, %v21725_v45  ;;  %v22153_v45 = vld [vmem:[%s21568_s21 + $0x3f8] sm:$0xff] }
  0xbe   : > { %18784 = vmatmul.mubr.msk.f32.gmra.mrb[82].mxu1 %vm591_vm3, %v22125_v40 }
  0xbf   : > { %19668 = vmatmul.mubr.msk.f32.gmra.mrb[18].mxu0 %vm591_vm3, %v21728_v46  ;;  %18786 = vmatprep.mubr.msk.f32.mxu1 %vm591_vm3, %v22130_v17  ;;  %v16469_v46 = vld [vmem:[%s21568_s21 + $0x138] sm:$0xff] }
  0xc0   : > { %19670 = vmatprep.mubr.msk.f32.mxu0 %vm591_vm3, %v21739_v47  ;;  %v421_v47 = vld [vmem:[%s21568_s21 + $0x410] sm:$0xff] }
  0xc2   : > { %18787 = vmatmul.mubr.msk.f32.gmra.mrb[84].mxu1 %vm591_vm3, %v22139_v43 }
  0xc3   : > { %19671 = vmatmul.mubr.msk.f32.gmra.mrb[20].mxu0 %vm591_vm3, %v21742_v48  ;;  %18789 = vmatprep.mubr.msk.f32.mxu1 %vm591_vm3, %v22144_v44  ;;  %v422_v48 = vld [vmem:[%s21568_s21 + $0x418] sm:$0xff] }
  0xc4   : > { %19673 = vmatprep.mubr.msk.f32.mxu0 %vm591_vm3, %v21753_v49  ;;  %v22175_v49 = vld [vmem:[%s21568_s21 + $0x428] sm:$0xff] }
  0xc6   : > { %18790 = vmatmul.mubr.msk.f32.gmra.mrb[86].mxu1 %vm591_vm3, %v22153_v45 }
  0xc7   : > { %19674 = vmatmul.mubr.msk.f32.gmra.mrb[22].mxu0 %vm591_vm3, %v16469_v46  ;;  %18792 = vmatprep.mubr.msk.f32.mxu1 %vm591_vm3, %v421_v47  ;;  %v15413_v46 = vld [vmem:[%s21568_s21 + $0x20] sm:$0xff]  ;;  %v17092_v47 = vld [vmem:[%s21556_s18 + $0x70] sm:$0xff] }
  0xc8   : > { %19676 = vmatprep.mubr.msk.f32.mxu0 %vm591_vm3, %v21764_v52  ;;  %v22189_v52 = vld [vmem:[%s21568_s21 + $0x438] sm:$0xff] }
  0xca   : > { %18793 = vmatmul.mubr.msk.f32.gmra.mrb[88].mxu1 %vm591_vm3, %v422_v48  ;;  %v17093_v48 = vld [vmem:[%s21556_s18 + $0x78] sm:$0xf] }
  0xcb   : > { %19677 = vmatmul.mubr.msk.f32.gmra.mrb[24].mxu0 %vm591_vm3, %v21767_v53  ;;  %18795 = vmatprep.mubr.msk.f32.mxu1 %vm591_vm3, %v22167_v36  ;;  %v22194_v53 = vld [vmem:[%s21568_s21 + $0x440] sm:$0xff] }
  0xcc   : > { %19679 = vmatprep.mubr.msk.f32.mxu0 %vm591_vm3, %v21777_v54  ;;  %v22203_v54 = vld [vmem:[%s21568_s21 + $0x448] sm:$0xff] }
  0xce   : > { %18796 = vmatmul.mubr.msk.f32.gmra.mrb[90].mxu1 %vm591_vm3, %v22175_v49 }
  0xcf   : > { %19680 = vmatmul.mubr.msk.f32.gmra.mrb[26].mxu0 %vm591_vm3, %v21780_v55  ;;  %18798 = vmatprep.mubr.msk.f32.mxu1 %vm591_vm3, %v22180_v38  ;;  %v16477_v55 = vld [vmem:[%s21568_s21 + $0x188] sm:$0xff] }
  0xd0   : > { %19682 = vmatprep.mubr.msk.f32.mxu0 %vm591_vm3, %v21791_v56  ;;  %v429_v56 = vld [vmem:[%s21568_s21 + $0x460] sm:$0xff] }
  0xd2   : > { %18799 = vmatmul.mubr.msk.f32.gmra.mrb[92].mxu1 %vm591_vm3, %v22189_v52 }
  0xd3   : > { %19683 = vmatmul.mubr.msk.f32.gmra.mrb[28].mxu0 %vm591_vm3, %v21794_v57  ;;  %18801 = vmatprep.mubr.msk.f32.mxu1 %vm591_vm3, %v22194_v53  ;;  %v430_v57 = vld [vmem:[%s21568_s21 + $0x468] sm:$0xff] }
  0xd4   : > { %19685 = vmatprep.mubr.msk.f32.mxu0 %vm591_vm3, %v21805_v58  ;;  %v22225_v58 = vld [vmem:[%s21568_s21 + $0x478] sm:$0xff] }
  0xd6   : > { %18802 = vmatmul.mubr.msk.f32.gmra.mrb[94].mxu1 %vm591_vm3, %v22203_v54 }
  0xd7   : > { %19686 = vmatmul.mubr.msk.f32.gmra.mrb[30].mxu0 %vm591_vm3, %v16477_v55  ;;  %18804 = vmatprep.mubr.msk.f32.mxu1 %vm591_vm3, %v429_v56  ;;  %v22430_v55 = vpack.c.bf16 %v17093_v48, %v17092_v47  ;;  %v16517_v56 = vld [vmem:[%s21568_s21 + $0x3b8] sm:$0xff]  ;;  %v22670_v47 = vld [vmem:[%s21568_s21 + $0x1a8] sm:$0xff]  ;;  %v22679_v48 = vld [vmem:[%s21568_s21 + $0x1b0] sm:$0xff] }
  0xd8   : > { %19688 = vmatprep.mubr.msk.f32.mxu0 %vm591_vm3, %v21816_v61  ;;  %v22239_v61 = vld [vmem:[%s21568_s21 + $0x488] sm:$0xff] }
  0xd9   : > { %20464 = vmatprep.subr.msk.bf16.mxu0 %vm21558_vm2, %v22430_v55 }
  0xda   : > { %18805 = vmatmul.mubr.msk.f32.gmra.mrb[96].mxu1 %vm591_vm3, %v430_v57  ;;  %v15418_v57 = vld [vmem:[%s21568_s21 + $0x58] sm:$0xff] }
  0xdb   : > { %19689 = vmatmul.mubr.msk.f32.gmra.mrb[32].mxu0 %vm591_vm3, %v21819_v62  ;;  %18807 = vmatprep.mubr.msk.f32.mxu1 %vm591_vm3, %v22217_v16  ;;  %v22244_v62 = vld [vmem:[%s21568_s21 + $0x490] sm:$0xff] }
  0xdc   : > { %19691 = vmatprep.mubr.msk.f32.mxu0 %vm591_vm3, %v21829_v63  ;;  %v22253_v63 = vld [vmem:[%s21568_s21 + $0x498] sm:$0xff] }
  0xde   : > { %18808 = vmatmul.mubr.msk.f32.gmra.mrb[98].mxu1 %vm591_vm3, %v22225_v58 }
  0xdf   : > { %19692 = vmatmul.mubr.msk.f32.gmra.mrb[34].mxu0 %vm591_vm3, %v21832_v1  ;;  %18810 = vmatprep.mubr.msk.f32.mxu1 %vm591_vm3, %v22230_v18  ;;  %v16485_v1 = vld [vmem:[%s21568_s21 + $0x1d8] sm:$0xff] }
  0xe0   : > { %19694 = vmatprep.mubr.msk.f32.mxu0 %vm591_vm3, %v21843_v2  ;;  %v437_v2 = vld [vmem:[%s21568_s21 + $0x4b0] sm:$0xff] }
  0xe2   : > { %18811 = vmatmul.mubr.msk.f32.gmra.mrb[100].mxu1 %vm591_vm3, %v22239_v61 }
  0xe3   : > { %19695 = vmatmul.mubr.msk.f32.gmra.mrb[36].mxu0 %vm591_vm3, %v21846_v3  ;;  %18813 = vmatprep.mubr.msk.f32.mxu1 %vm591_vm3, %v22244_v62  ;;  %v438_v3 = vld [vmem:[%s21568_s21 + $0x4b8] sm:$0xff] }
  0xe4   : > { %19697 = vmatprep.mubr.msk.f32.mxu0 %vm591_vm3, %v21857_v4  ;;  %v22275_v4 = vld [vmem:[%s21568_s21 + $0x4c8] sm:$0xff] }
  0xe6   : > { %18814 = vmatmul.mubr.msk.f32.gmra.mrb[102].mxu1 %vm591_vm3, %v22253_v63 }
  0xe7   : > { %19698 = vmatmul.mubr.msk.f32.gmra.mrb[38].mxu0 %vm591_vm3, %v16485_v1  ;;  %18816 = vmatprep.mubr.msk.f32.mxu1 %vm591_vm3, %v437_v2  ;;  %v15421_v1 = vld [vmem:[%s21568_s21 + $0x70] sm:$0xff]  ;;  %v15422_v2 = vld [vmem:[%s21568_s21 + $0x78] sm:$0xff] }
  0xe8   : > { %19700 = vmatprep.mubr.msk.f32.mxu0 %vm591_vm3, %v21868_v7  ;;  %v22289_v7 = vld [vmem:[%s21568_s21 + $0x4d8] sm:$0xff] }
  0xea   : > { %18817 = vmatmul.mubr.msk.f32.gmra.mrb[104].mxu1 %vm591_vm3, %v438_v3  ;;  %v22479_v3 = vld [vmem:[%s21568_s21 + $0x400] sm:$0xff] }
  0xeb   : > { %19701 = vmatmul.mubr.msk.f32.gmra.mrb[40].mxu0 %vm591_vm3, %v21871_v9  ;;  %18819 = vmatprep.mubr.msk.f32.mxu1 %vm591_vm3, %v22267_v39  ;;  %v22294_v9 = vld [vmem:[%s21568_s21 + $0x4e0] sm:$0xff] }
  0xec   : > { %19703 = vmatprep.mubr.msk.f32.mxu0 %vm591_vm3, %v21881_v10  ;;  %v22303_v10 = vld [vmem:[%s21568_s21 + $0x4e8] sm:$0xff] }
  0xee   : > { %18820 = vmatmul.mubr.msk.f32.gmra.mrb[106].mxu1 %vm591_vm3, %v22275_v4 }
  0xef   : > { %19704 = vmatmul.mubr.msk.f32.gmra.mrb[42].mxu0 %vm591_vm3, %v21884_v11  ;;  %18822 = vmatprep.mubr.msk.f32.mxu1 %vm591_vm3, %v22280_v8  ;;  %v16493_v11 = vld [vmem:[%s21568_s21 + $0x228] sm:$0xff] }
  0xf0   : > { %19706 = vmatprep.mubr.msk.f32.mxu0 %vm591_vm3, %v21895_v12  ;;  %v445_v12 = vld [vmem:[%s21568_s21 + $0x500] sm:$0xff] }
  0xf2   : > { %18823 = vmatmul.mubr.msk.f32.gmra.mrb[108].mxu1 %vm591_vm3, %v22289_v7 }
  0xf3   : > { %19707 = vmatmul.mubr.msk.f32.gmra.mrb[44].mxu0 %vm591_vm3, %v21898_v13  ;;  %18825 = vmatprep.mubr.msk.f32.mxu1 %vm591_vm3, %v22294_v9  ;;  %v446_v13 = vld [vmem:[%s21568_s21 + $0x508] sm:$0xff] }
  0xf4   : > { %19709 = vmatprep.mubr.msk.f32.mxu0 %vm591_vm3, %v21909_v14  ;;  %v22325_v14 = vld [vmem:[%s21568_s21 + $0x518] sm:$0xff] }
  0xf6   : > { %18826 = vmatmul.mubr.msk.f32.gmra.mrb[110].mxu1 %vm591_vm3, %v22303_v10 }
  0xf7   : > { %19710 = vmatmul.mubr.msk.f32.gmra.mrb[46].mxu0 %vm591_vm3, %v16493_v11  ;;  %18828 = vmatprep.mubr.msk.f32.mxu1 %vm591_vm3, %v445_v12  ;;  %v22490_v11 = vld [vmem:[%s21568_s21 + $0xa8] sm:$0xff]  ;;  %v22511_v12 = vld [vmem:[%s21568_s21 + $0xc0] sm:$0xff] }
  0xf8   : > { %19712 = vmatprep.mubr.msk.f32.mxu0 %vm591_vm3, %v21920_v19  ;;  %v22339_v19 = vld [vmem:[%s21568_s21 + $0x528] sm:$0xff] }
  0xfa   : > { %18829 = vmatmul.mubr.msk.f32.gmra.mrb[112].mxu1 %vm591_vm3, %v446_v13  ;;  %v22530_v13 = vld [vmem:[%s21568_s21 + $0xd8] sm:$0xff] }
  0xfb   : > { %19713 = vmatmul.mubr.msk.f32.gmra.mrb[48].mxu0 %vm591_vm3, %v21923_v21  ;;  %18831 = vmatprep.mubr.msk.f32.mxu1 %vm591_vm3, %v22317_v20  ;;  %v22344_v21 = vld [vmem:[%s21568_s21 + $0x530] sm:$0xff] }
  0xfc   : > { %19715 = vmatprep.mubr.msk.f32.mxu0 %vm591_vm3, %v21933_v23  ;;  %v22353_v23 = vld [vmem:[%s21568_s21 + $0x538] sm:$0xff] }
  0xfe   : > { %18832 = vmatmul.mubr.msk.f32.gmra.mrb[114].mxu1 %vm591_vm3, %v22325_v14 }
  0xff   : > { %19716 = vmatmul.mubr.msk.f32.gmra.mrb[50].mxu0 %vm591_vm3, %v21936_v25  ;;  %18834 = vmatprep.mubr.msk.f32.mxu1 %vm591_vm3, %v22330_v22  ;;  %v16501_v25 = vld [vmem:[%s21568_s21 + $0x278] sm:$0xff] }
 0x100   : > { %19718 = vmatprep.mubr.msk.f32.mxu0 %vm591_vm3, %v21947_v27  ;;  %v453_v27 = vld [vmem:[%s21568_s21 + $0x550] sm:$0xff] }
 0x102   : > { %18835 = vmatmul.mubr.msk.f32.gmra.mrb[116].mxu1 %vm591_vm3, %v22339_v19 }
 0x103   : > { %19719 = vmatmul.mubr.msk.f32.gmra.mrb[52].mxu0 %vm591_vm3, %v21950_v29  ;;  %18837 = vmatprep.mubr.msk.f32.mxu1 %vm591_vm3, %v22344_v21  ;;  %v454_v29 = vld [vmem:[%s21568_s21 + $0x558] sm:$0xff] }
 0x104   : > { %19721 = vmatprep.mubr.msk.f32.mxu0 %vm591_vm3, %v21961_v30  ;;  %v22375_v30 = vld [vmem:[%s21568_s21 + $0x568] sm:$0xff] }
 0x106   : > { %18838 = vmatmul.mubr.msk.f32.gmra.mrb[118].mxu1 %vm591_vm3, %v22353_v23 }
 0x107   : > { %19722 = vmatmul.mubr.msk.f32.gmra.mrb[54].mxu0 %vm591_vm3, %v16501_v25  ;;  %18840 = vmatprep.mubr.msk.f32.mxu1 %vm591_vm3, %v453_v27  ;;  %v22546_v25 = vld [vmem:[%s21568_s21 + $0xf8] sm:$0xff]  ;;  %v22558_v27 = vld [vmem:[%s21568_s21 + $0x108] sm:$0xff] }
 0x108   : > { %19724 = vmatprep.mubr.msk.f32.mxu0 %vm591_vm3, %v21972_v41  ;;  %v22389_v41 = vld [vmem:[%s21568_s21 + $0x578] sm:$0xff] }
 0x10a   : > { %18841 = vmatmul.mubr.msk.f32.gmra.mrb[120].mxu1 %vm591_vm3, %v454_v29  ;;  %v22567_v29 = vld [vmem:[%s21568_s21 + $0x110] sm:$0xff] }
 0x10b   : > { %19725 = vmatmul.mubr.msk.f32.gmra.mrb[56].mxu0 %vm591_vm3, %v21975_v42  ;;  %18843 = vmatprep.mubr.msk.f32.mxu1 %vm591_vm3, %v22367_v24  ;;  %v22394_v42 = vld [vmem:[%s21568_s21 + $0x580] sm:$0xff] }
 0x10c   : > { %19727 = vmatprep.mubr.msk.f32.mxu0 %vm591_vm3, %v21985_v50  ;;  %v22403_v50 = vld [vmem:[%s21568_s21 + $0x588] sm:$0xff] }
 0x10e   : > { %18844 = vmatmul.mubr.msk.f32.gmra.mrb[122].mxu1 %vm591_vm3, %v22375_v30 }
 0x10f   : > { %19728 = vmatmul.mubr.msk.f32.gmra.mrb[58].mxu0 %vm591_vm3, %v21988_v51  ;;  %18846 = vmatprep.mubr.msk.f32.mxu1 %vm591_vm3, %v22380_v34  ;;  %v25441_v51 = vld [vmem:[#allocation4_spill] sm:$0xff] }
 0x110   : > { %19730 = vmatprep.mubr.msk.f32.mxu0 %vm591_vm3, %v21999_v59  ;;  %v16509_v59 = vld [vmem:[%s21568_s21 + $0x2c8] sm:$0xff] }
 0x112   : > { %18847 = vmatmul.mubr.msk.f32.gmra.mrb[124].mxu1 %vm591_vm3, %v22389_v41 }
 0x113   : > { %19731 = vmatmul.mubr.msk.f32.gmra.mrb[60].mxu0 %vm591_vm3, %v22002_v60  ;;  %18849 = vmatprep.mubr.msk.f32.mxu1 %vm591_vm3, %v22394_v42  ;;  %v15411_v60 = vld [vmem:[%s21568_s21 + $0x10] sm:$0xff] }
 0x114   : > { %19733 = vmatprep.mubr.msk.f32.mxu0 %vm591_vm3, %v25441_v51  ;;  %v22586_v51 = vld [vmem:[%s21568_s21 + $0x128] sm:$0xff] }
 0x116   : > { %18850 = vmatmul.mubr.msk.f32.gmra.mrb[126].mxu1 %vm591_vm3, %v22403_v50 }
 0x117   : > { %19734 = vmatmul.mubr.msk.f32.gmra.mrb[62].mxu0 %vm591_vm3, %v16509_v59  ;;  %18856 = vmatprep.mubr.msk.f32.mxu1 %vm591_vm3, %v15410_v35  ;;  %v22602_v59 = vld [vmem:[%s21568_s21 + $0x148] sm:$0xff]  ;;  %v22614_v35 = vld [vmem:[%s21568_s21 + $0x158] sm:$0xff] }
 0x118   : > { %19736 = vmatprep.mubr.msk.f32.mxu0 %vm591_vm3, %v22067_v26  ;;  %v15414_v26 = vld [vmem:[%s21568_s21 + $0x28] sm:$0xff] }
 0x11a   : > { %18857 = vmatmul.mubr.msk.f32.vlgmr.msra.gmra.mrb[0].mxu1 %vm591_vm3, %v15411_v60  ;;  %v22623_v60 = vld [vmem:[%s21568_s21 + $0x160] sm:$0xff] }
 0x11b   : > { %19737 = vmatmul.mubr.msk.f32.gmra.mrb[64].mxu0 %vm591_vm3, %v22075_v28  ;;  %20437 = vmatpush3.bf16.msk.msra.mxu1 %vm21558_vm2, %v22032_v5  ;;  %v15415_v5 = vld [vmem:[%s21568_s21 + $0x30] sm:$0xff]  ;;  %v15416_v28 = vld [vmem:[%s21568_s21 + $0x38] sm:$0xff] }
 0x11c   : > { %18859 = vmatprep.mubr.msk.f32.mxu1 %vm591_vm3, %v15412_v37  ;;  %19739 = vmatprep.mubr.msk.f32.mxu0 %vm591_vm3, %v22080_v6  ;;  %v22444_v6 = vld [vmem:[%s21568_s21 + $0x3b0] sm:$0xff]  ;;  %v22642_v37 = vld [vmem:[%s21568_s21 + $0x178] sm:$0xff] }
 0x11e   : > { %18860 = vmatmul.mubr.msk.f32.gmra.mrb[2].mxu1 %vm591_vm3, %v15413_v46  ;;  %v22658_v46 = vld [vmem:[%s21568_s21 + $0x198] sm:$0xff] }
 0x11f   : > { %19740 = vmatmul.mubr.msk.f32.gmra.mrb[66].mxu0 %vm591_vm3, %v22089_v31  ;;  %18862 = vmatprep.mubr.msk.f32.mxu1 %vm591_vm3, %v15414_v26  ;;  %v15417_v31 = vld [vmem:[%s21568_s21 + $0x40] sm:$0xff]  ;;  %v22698_v26 = vld [vmem:[%s21568_s21 + $0x1c8] sm:$0xff] }
 0x120   : > { %19742 = vmatprep.mubr.msk.f32.mxu0 %vm591_vm3, %v22094_v32  ;;  %v15419_v32 = vld [vmem:[%s21568_s21 + $0x60] sm:$0xff] }
 0x122   : > { %18863 = vmatmul.mubr.msk.f32.gmra.mrb[4].mxu1 %vm591_vm3, %v15415_v5  ;;  %v22714_v5 = vld [vmem:[%s21568_s21 + $0x1e8] sm:$0xff] }
 0x123   : > { %19743 = vmatmul.mubr.msk.f32.gmra.mrb[68].mxu0 %vm591_vm3, %v22103_v33  ;;  %18865 = vmatprep.mubr.msk.f32.mxu1 %vm591_vm3, %v15416_v28  ;;  %v15420_v33 = vld [vmem:[%s21568_s21 + $0x68] sm:$0xff]  ;;  %v22726_v28 = vld [vmem:[%s21568_s21 + $0x1f8] sm:$0xff] }
 0x124   : > { %19745 = vmatprep.mubr.msk.f32.mxu0 %vm591_vm3, %v22444_v6 }
 0x126   : > { %18866 = vmatmul.mubr.msk.f32.gmra.mrb[6].mxu1 %vm591_vm3, %v15417_v31  ;;  %v22735_v31 = vld [vmem:[%s21568_s21 + $0x200] sm:$0xff] }
 0x127   : > { %19746 = vmatmul.mubr.msk.f32.gmra.mrb[70].mxu0 %vm591_vm3, %v16517_v56  ;;  %18868 = vmatprep.mubr.msk.f32.mxu1 %vm591_vm3, %v15418_v57  ;;  %v22757_v56 = vld [vmem:[%s21568_s21 + $0x590] sm:$0xff]  ;;  %v22770_v57 = vld [vmem:[%s21568_s21 + $0x238] sm:$0xff] }
 0x128   : > { %19748 = vmatprep.mubr.msk.f32.mxu0 %vm591_vm3, %v22117_v15  ;;  %v15423_v15 = vld [vmem:[%s21568_s21 + $0x80] sm:$0xff] }
 0x12a   : > { %18869 = vmatmul.mubr.msk.f32.gmra.mrb[8].mxu1 %vm591_vm3, %v15419_v32  ;;  %v22773_v32 = vld [vmem:[%s21568_s21 + $0x5b0] sm:$0xff] }
 0x12b   : > { %19749 = vmatmul.mubr.msk.f32.gmra.mrb[72].mxu0 %vm591_vm3, %v22125_v40  ;;  %18871 = vmatprep.mubr.msk.f32.mxu1 %vm591_vm3, %v15420_v33  ;;  %v15424_v40 = vld [vmem:[%s21568_s21 + $0x88] sm:$0xff]  ;;  %v22785_v33 = vld [vmem:[%s21568_s21 + $0x5b8] sm:$0xff] }
 0x12c   : > { %19751 = vmatprep.mubr.msk.f32.mxu0 %vm591_vm3, %v22130_v17  ;;  %v15425_v17 = vld [vmem:[%s21568_s21 + $0x90] sm:$0xff] }
 0x12e   : > { %18872 = vmatmul.mubr.msk.f32.gmra.mrb[10].mxu1 %vm591_vm3, %v15421_v1  ;;  %v22788_v1 = vld [vmem:[%s21568_s21 + $0x248] sm:$0xff] }
 0x12f   : > { %19752 = vmatmul.mubr.msk.f32.gmra.mrb[74].mxu0 %vm591_vm3, %v22139_v43  ;;  %18874 = vmatprep.mubr.msk.f32.mxu1 %vm591_vm3, %v15422_v2  ;;  %v16525_v43 = vld [vmem:[%s21568_s21 + $0x408] sm:$0xff]  ;;  %v22791_v2 = vld [vmem:[%s21568_s21 + $0x5c0] sm:$0xff] }
 0x130   : > { %19754 = vmatprep.mubr.msk.f32.mxu0 %vm591_vm3, %v22144_v44  ;;  %v22497_v44 = vld [vmem:[%s21568_s21 + $0xb0] sm:$0xff] }
 0x132   : > { %18875 = vmatmul.mubr.msk.f32.gmra.mrb[12].mxu1 %vm591_vm3, %v15423_v15  ;;  %v22800_v15 = vld [vmem:[%s21568_s21 + $0x250] sm:$0xff] }
 0x133   : > { %19755 = vmatmul.mubr.msk.f32.gmra.mrb[76].mxu0 %vm591_vm3, %v22153_v45  ;;  %18877 = vmatprep.mubr.msk.f32.mxu1 %vm591_vm3, %v15424_v40  ;;  %v22502_v45 = vld [vmem:[%s21568_s21 + $0xb8] sm:$0xff]  ;;  %v22805_v40 = vld [vmem:[%s21568_s21 + $0x5c8] sm:$0xff] }
 0x134   : > { %19757 = vmatprep.mubr.msk.f32.mxu0 %vm591_vm3, %v22479_v3 }
 0x136   : > { %18878 = vmatmul.mubr.msk.f32.gmra.mrb[14].mxu1 %vm591_vm3, %v15425_v17  ;;  %v22808_v17 = vld [vmem:[%s21568_s21 + $0x258] sm:$0xff] }
 0x137   : > { %19758 = vmatmul.mubr.msk.f32.gmra.mrb[78].mxu0 %vm591_vm3, %v16525_v43  ;;  %18880 = vmatprep.mubr.msk.f32.mxu1 %vm591_vm3, %v22490_v11  ;;  %v22811_v43 = vld [vmem:[%s21568_s21 + $0x5d0] sm:$0xff] }
 0x138   : > { %19760 = vmatprep.mubr.msk.f32.mxu0 %vm591_vm3, %v22167_v36  ;;  %v22516_v36 = vld [vmem:[%s21568_s21 + $0xc8] sm:$0xff] }
 0x13a   : > { %18881 = vmatmul.mubr.msk.f32.gmra.mrb[16].mxu1 %vm591_vm3, %v22497_v44 }
 0x13b   : > { %19761 = vmatmul.mubr.msk.f32.gmra.mrb[80].mxu0 %vm591_vm3, %v22175_v49  ;;  %18883 = vmatprep.mubr.msk.f32.mxu1 %vm591_vm3, %v22502_v45  ;;  %v22525_v49 = vld [vmem:[%s21568_s21 + $0xd0] sm:$0xff] }
 0x13c   : > { %19763 = vmatprep.mubr.msk.f32.mxu0 %vm591_vm3, %v22180_v38  ;;  %v22533_v38 = vld [vmem:[%s21568_s21 + $0x450] sm:$0xff] }
 0x13e   : > { %18884 = vmatmul.mubr.msk.f32.gmra.mrb[18].mxu1 %vm591_vm3, %v22511_v12 }
 0x13f   : > { %19764 = vmatmul.mubr.msk.f32.gmra.mrb[82].mxu0 %vm591_vm3, %v22189_v52  ;;  %18886 = vmatprep.mubr.msk.f32.mxu1 %vm591_vm3, %v22516_v36  ;;  %v15433_v52 = vld [vmem:[%s21568_s21 + $0xe0] sm:$0xff] }
 0x140   : > { %19766 = vmatprep.mubr.msk.f32.mxu0 %vm591_vm3, %v22194_v53  ;;  %v16533_v53 = vld [vmem:[%s21568_s21 + $0x458] sm:$0xff] }
 0x142   : > { %18887 = vmatmul.mubr.msk.f32.gmra.mrb[20].mxu1 %vm591_vm3, %v22525_v49 }
 0x143   : > { %19767 = vmatmul.mubr.msk.f32.gmra.mrb[84].mxu0 %vm591_vm3, %v22203_v54  ;;  %18889 = vmatprep.mubr.msk.f32.mxu1 %vm591_vm3, %v22530_v13  ;;  %v22553_v54 = vld [vmem:[%s21568_s21 + $0x100] sm:$0xff] }
 0x144   : > { %19769 = vmatprep.mubr.msk.f32.mxu0 %vm591_vm3, %v22533_v38 }
 0x146   : > { %18890 = vmatmul.mubr.msk.f32.gmra.mrb[22].mxu1 %vm591_vm3, %v15433_v52  ;;  %v22820_v52 = vld [vmem:[%s21568_s21 + $0x260] sm:$0xff] }
 0x147   : > { %19770 = vmatmul.mubr.msk.f32.gmra.mrb[86].mxu0 %vm591_vm3, %v16533_v53  ;;  %18892 = vmatprep.mubr.msk.f32.mxu1 %vm591_vm3, %v22546_v25  ;;  %v22825_v53 = vld [vmem:[%s21568_s21 + $0x5d8] sm:$0xff] }
 0x148   : > { %19772 = vmatprep.mubr.msk.f32.mxu0 %vm591_vm3, %v22217_v16  ;;  %v22572_v16 = vld [vmem:[%s21568_s21 + $0x118] sm:$0xff]  ;;  %25442 = vst [vmem:[#allocation4_spill] sm:$0xff] %v22825_v53 }
 0x14a   : > { %18893 = vmatmul.mubr.msk.f32.gmra.mrb[24].mxu1 %vm591_vm3, %v22553_v54 }
 0x14b   : > { %19773 = vmatmul.mubr.msk.f32.gmra.mrb[88].mxu0 %vm591_vm3, %v22225_v58  ;;  %18895 = vmatprep.mubr.msk.f32.mxu1 %vm591_vm3, %v22558_v27  ;;  %v22581_v58 = vld [vmem:[%s21568_s21 + $0x120] sm:$0xff] }
 0x14c   : > { %19775 = vmatprep.mubr.msk.f32.mxu0 %vm591_vm3, %v22230_v18  ;;  %v22589_v18 = vld [vmem:[%s21568_s21 + $0x4a0] sm:$0xff] }
 0x14e   : > { %18896 = vmatmul.mubr.msk.f32.gmra.mrb[26].mxu1 %vm591_vm3, %v22567_v29 }
 0x14f   : > { %19776 = vmatmul.mubr.msk.f32.gmra.mrb[90].mxu0 %vm591_vm3, %v22239_v61  ;;  %18898 = vmatprep.mubr.msk.f32.mxu1 %vm591_vm3, %v22572_v16  ;;  %v15441_v61 = vld [vmem:[%s21568_s21 + $0x130] sm:$0xff] }
 0x150   : > { %19778 = vmatprep.mubr.msk.f32.mxu0 %vm591_vm3, %v22244_v62  ;;  %v16541_v62 = vld [vmem:[%s21568_s21 + $0x4a8] sm:$0xff] }
 0x152   : > { %18899 = vmatmul.mubr.msk.f32.gmra.mrb[28].mxu1 %vm591_vm3, %v22581_v58 }
 0x153   : > { %19779 = vmatmul.mubr.msk.f32.gmra.mrb[92].mxu0 %vm591_vm3, %v22253_v63  ;;  %18901 = vmatprep.mubr.msk.f32.mxu1 %vm591_vm3, %v22586_v51  ;;  %v22609_v63 = vld [vmem:[%s21568_s21 + $0x150] sm:$0xff] }
 0x154   : > { %19781 = vmatprep.mubr.msk.f32.mxu0 %vm591_vm3, %v22589_v18 }
 0x156   : > { %18902 = vmatmul.mubr.msk.f32.gmra.mrb[30].mxu1 %vm591_vm3, %v15441_v61  ;;  %v22828_v61 = vld [vmem:[%s21568_s21 + $0x268] sm:$0xff] }
 0x157   : > { %19782 = vmatmul.mubr.msk.f32.gmra.mrb[94].mxu0 %vm591_vm3, %v16541_v62  ;;  %18904 = vmatprep.mubr.msk.f32.mxu1 %vm591_vm3, %v22602_v59  ;;  %v16572_v62 = vld [vmem:[%s21568_s21 + $0x5e0] sm:$0xff] }
 0x158   : > { %19784 = vmatprep.mubr.msk.f32.mxu0 %vm591_vm3, %v22267_v39  ;;  %v22628_v39 = vld [vmem:[%s21568_s21 + $0x168] sm:$0xff] }
 0x15a   : > { %18905 = vmatmul.mubr.msk.f32.gmra.mrb[32].mxu1 %vm591_vm3, %v22609_v63 }
 0x15b   : > { %19785 = vmatmul.mubr.msk.f32.gmra.mrb[96].mxu0 %vm591_vm3, %v22275_v4  ;;  %18907 = vmatprep.mubr.msk.f32.mxu1 %vm591_vm3, %v22614_v35  ;;  %v22637_v4 = vld [vmem:[%s21568_s21 + $0x170] sm:$0xff] }
 0x15c   : > { %19787 = vmatprep.mubr.msk.f32.mxu0 %vm591_vm3, %v22280_v8  ;;  %v22645_v8 = vld [vmem:[%s21568_s21 + $0x4f0] sm:$0xff] }
 0x15e   : > { %18908 = vmatmul.mubr.msk.f32.gmra.mrb[34].mxu1 %vm591_vm3, %v22623_v60 }
 0x15f   : > { %19788 = vmatmul.mubr.msk.f32.gmra.mrb[98].mxu0 %vm591_vm3, %v22289_v7  ;;  %18910 = vmatprep.mubr.msk.f32.mxu1 %vm591_vm3, %v22628_v39  ;;  %v15449_v7 = vld [vmem:[%s21568_s21 + $0x180] sm:$0xff] }
 0x160   : > { %19790 = vmatprep.mubr.msk.f32.mxu0 %vm591_vm3, %v22294_v9  ;;  %v16549_v9 = vld [vmem:[%s21568_s21 + $0x4f8] sm:$0xff] }
 0x162   : > { %18911 = vmatmul.mubr.msk.f32.gmra.mrb[36].mxu1 %vm591_vm3, %v22637_v4 }
 0x163   : > { %19791 = vmatmul.mubr.msk.f32.gmra.mrb[100].mxu0 %vm591_vm3, %v22303_v10  ;;  %18913 = vmatprep.mubr.msk.f32.mxu1 %vm591_vm3, %v22642_v37  ;;  %v22665_v10 = vld [vmem:[%s21568_s21 + $0x1a0] sm:$0xff] }
 0x164   : > { %19793 = vmatprep.mubr.msk.f32.mxu0 %vm591_vm3, %v22645_v8 }
 0x166   : > { %18914 = vmatmul.mubr.msk.f32.gmra.mrb[38].mxu1 %vm591_vm3, %v15449_v7  ;;  %v15473_v7 = vld [vmem:[%s21568_s21 + $0x270] sm:$0xff] }
 0x167   : > { %19794 = vmatmul.mubr.msk.f32.gmra.mrb[102].mxu0 %vm591_vm3, %v16549_v9  ;;  %18916 = vmatprep.mubr.msk.f32.mxu1 %vm591_vm3, %v22658_v46  ;;  %v16573_v9 = vld [vmem:[%s21568_s21 + $0x5e8] sm:$0xff] }
 0x168   : > { %19796 = vmatprep.mubr.msk.f32.mxu0 %vm591_vm3, %v22317_v20  ;;  %v22684_v20 = vld [vmem:[%s21568_s21 + $0x1b8] sm:$0xff] }
 0x16a   : > { %18917 = vmatmul.mubr.msk.f32.gmra.mrb[40].mxu1 %vm591_vm3, %v22665_v10 }
 0x16b   : > { %19797 = vmatmul.mubr.msk.f32.gmra.mrb[104].mxu0 %vm591_vm3, %v22325_v14  ;;  %18919 = vmatprep.mubr.msk.f32.mxu1 %vm591_vm3, %v22670_v47  ;;  %v22693_v14 = vld [vmem:[%s21568_s21 + $0x1c0] sm:$0xff] }
 0x16c   : > { %19799 = vmatprep.mubr.msk.f32.mxu0 %vm591_vm3, %v22330_v22  ;;  %v22701_v22 = vld [vmem:[%s21568_s21 + $0x540] sm:$0xff] }
 0x16e   : > { %18920 = vmatmul.mubr.msk.f32.gmra.mrb[42].mxu1 %vm591_vm3, %v22679_v48 }
 0x16f   : > { %19800 = vmatmul.mubr.msk.f32.gmra.mrb[106].mxu0 %vm591_vm3, %v22339_v19  ;;  %18922 = vmatprep.mubr.msk.f32.mxu1 %vm591_vm3, %v22684_v20  ;;  %v15457_v19 = vld [vmem:[%s21568_s21 + $0x1d0] sm:$0xff] }
 0x170   : > { %19802 = vmatprep.mubr.msk.f32.mxu0 %vm591_vm3, %v22344_v21  ;;  %v16557_v21 = vld [vmem:[%s21568_s21 + $0x548] sm:$0xff] }
 0x172   : > { %18923 = vmatmul.mubr.msk.f32.gmra.mrb[44].mxu1 %vm591_vm3, %v22693_v14 }
 0x173   : > { %19803 = vmatmul.mubr.msk.f32.gmra.mrb[108].mxu0 %vm591_vm3, %v22353_v23  ;;  %18925 = vmatprep.mubr.msk.f32.mxu1 %vm591_vm3, %v22698_v26  ;;  %v22721_v23 = vld [vmem:[%s21568_s21 + $0x1f0] sm:$0xff] }
 0x174   : > { %19805 = vmatprep.mubr.msk.f32.mxu0 %vm591_vm3, %v22701_v22 }
 0x176   : > { %18926 = vmatmul.mubr.msk.f32.gmra.mrb[46].mxu1 %vm591_vm3, %v15457_v19  ;;  %v15474_v19 = vld [vmem:[%s21568_s21 + $0x328] sm:$0xff] }
 0x177   : > { %19806 = vmatmul.mubr.msk.f32.gmra.mrb[110].mxu0 %vm591_vm3, %v16557_v21  ;;  %18928 = vmatprep.mubr.msk.f32.mxu1 %vm591_vm3, %v22714_v5  ;;  %v16705_v21 = vld [vmem:[%s21568_s21 + $0xa0] sm:$0xff] }
 0x178   : > { %19808 = vmatprep.mubr.msk.f32.mxu0 %vm591_vm3, %v22367_v24  ;;  %v22740_v24 = vld [vmem:[%s21568_s21 + $0x208] sm:$0xff] }
 0x17a   : > { %18929 = vmatmul.mubr.msk.f32.gmra.mrb[48].mxu1 %vm591_vm3, %v22721_v23 }
 0x17b   : > { %19809 = vmatmul.mubr.msk.f32.gmra.mrb[112].mxu0 %vm591_vm3, %v22375_v30  ;;  %18931 = vmatprep.mubr.msk.f32.mxu1 %vm591_vm3, %v22726_v28  ;;  %v22749_v30 = vld [vmem:[%s21568_s21 + $0x210] sm:$0xff] }
 0x17c   : > { %19811 = vmatprep.mubr.msk.f32.mxu0 %vm591_vm3, %v22380_v34  ;;  %v22754_v34 = vld [vmem:[%s21568_s21 + $0x218] sm:$0xff] }
 0x17e   : > { %18932 = vmatmul.mubr.msk.f32.gmra.mrb[50].mxu1 %vm591_vm3, %v22735_v31 }
 0x17f   : > { %19812 = vmatmul.mubr.msk.f32.gmra.mrb[114].mxu0 %vm591_vm3, %v22389_v41  ;;  %18934 = vmatprep.mubr.msk.f32.mxu1 %vm591_vm3, %v22740_v24  ;;  %v15465_v41 = vld [vmem:[%s21568_s21 + $0x220] sm:$0xff] }
 0x180   : > { %19814 = vmatprep.mubr.msk.f32.mxu0 %vm591_vm3, %v22394_v42  ;;  %v16565_v42 = vld [vmem:[%s21568_s21 + $0x598] sm:$0xff] }
 0x182   : > { %18935 = vmatmul.mubr.msk.f32.gmra.mrb[52].mxu1 %vm591_vm3, %v22749_v30 }
 0x183   : > { %19815 = vmatmul.mubr.msk.f32.gmra.mrb[116].mxu0 %vm591_vm3, %v22403_v50  ;;  %18937 = vmatprep.mubr.msk.f32.mxu1 %vm591_vm3, %v22754_v34  ;;  %v22780_v50 = vld [vmem:[%s21568_s21 + $0x240] sm:$0xff] }
 0x184   : > { %19817 = vmatprep.mubr.msk.f32.mxu0 %vm591_vm3, %v22757_v56 }
 0x186   : > { %18938 = vmatmul.mubr.msk.f32.gmra.mrb[54].mxu1 %vm591_vm3, %v15465_v41  ;;  %v15475_v41 = vld [vmem:[%s21568_s21 + $0x330] sm:$0xff] }
 0x187   : > { %19818 = vmatmul.mubr.msk.f32.gmra.mrb[118].mxu0 %vm591_vm3, %v16565_v42  ;;  %18940 = vmatprep.mubr.msk.f32.mxu1 %vm591_vm3, %v22770_v57  ;;  %v15476_v42 = vld [vmem:[%s21568_s21 + $0x338] sm:$0xff] }
 0x188   : > { %19820 = vmatprep.mubr.msk.f32.mxu0 %vm591_vm3, %v22773_v32 }
 0x18a   : > { %18941 = vmatmul.mubr.msk.f32.gmra.mrb[56].mxu1 %vm591_vm3, %v22780_v50 }
 0x18b   : > { %19821 = vmatmul.mubr.msk.f32.gmra.mrb[120].mxu0 %vm591_vm3, %v22785_v33  ;;  %18943 = vmatprep.mubr.msk.f32.mxu1 %vm591_vm3, %v22788_v1 }
 0x18c   : > { %19823 = vmatprep.mubr.msk.f32.mxu0 %vm591_vm3, %v22791_v2 }
 0x18e   : > { %18944 = vmatmul.mubr.msk.f32.gmra.mrb[58].mxu1 %vm591_vm3, %v22800_v15 }
 0x18f   : > { %19824 = vmatmul.mubr.msk.f32.gmra.mrb[122].mxu0 %vm591_vm3, %v22805_v40  ;;  %18946 = vmatprep.mubr.msk.f32.mxu1 %vm591_vm3, %v22808_v17 }
 0x190   : > { %19826 = vmatprep.mubr.msk.f32.mxu0 %vm591_vm3, %v22811_v43 }
 0x192   : > { %18947 = vmatmul.mubr.msk.f32.gmra.mrb[60].mxu1 %vm591_vm3, %v22820_v52 }
 0x193   : > { %19827 = vmatmul.mubr.msk.f32.gmra.mrb[124].mxu0 %vm591_vm3, %v22825_v53  ;;  %18949 = vmatprep.mubr.msk.f32.mxu1 %vm591_vm3, %v22828_v61  ;;  %v16056_v53 = vld [vmem:[%s21556_s18 + $0x30] sm:$0xff] }
 0x194   : > { %19829 = vmatprep.mubr.msk.f32.mxu0 %vm591_vm3, %v16572_v62  ;;  %v16057_v62 = vld [vmem:[%s21556_s18 + $0x38] sm:$0xf] }
 0x196   : > { %18950 = vmatmul.mubr.msk.f32.gmra.mrb[62].mxu1 %vm591_vm3, %v15473_v7  ;;  %v15477_v7 = vld [vmem:[%s21568_s21 + $0x340] sm:$0xff] }
 0x197   : > { %19830 = vmatmul.mubr.msk.f32.gmra.mrb[126].mxu0 %vm591_vm3, %v16573_v9  ;;  %18952 = vmatprep.mubr.msk.f32.mxu1 %vm591_vm3, %v15474_v19  ;;  %v22855_v9 = vpack.c.bf16 %v16057_v62, %v16056_v53  ;;  %v15478_v19 = vld [vmem:[%s21568_s21 + $0x348] sm:$0xff]  ;;  %v16713_v53 = vld [vmem:[%s21568_s21 + $0xf0] sm:$0xff]  ;;  %v16757_v62 = vld [vmem:[%s21568_s21 + $0x2a0] sm:$0xff] }
 0x198   : > { %19836 = vmatprep.mubr.msk.f32.mxu0 %vm591_vm3, %v16705_v21  ;;  %v15487_v21 = vld [vmem:[%s21568_s21 + $0x3a0] sm:$0xff] }
 0x199   : > { %20440 = vmatprep.subr.msk.bf16.mxu1 %vm21558_vm2, %v22855_v9 }
 0x19a   : > { %18953 = vmatmul.mubr.msk.f32.gmra.mrb[64].mxu1 %vm591_vm3, %v15475_v41  ;;  %v16755_v41 = vld [vmem:[%s21568_s21 + $0x290] sm:$0xff] }
 0x19b   : > { %19837 = vmatmul.mubr.msk.f32.vlgmr.msra.gmra.mrb[0].mxu0 %vm591_vm3, %v22490_v11  ;;  %18955 = vmatprep.mubr.msk.f32.mxu1 %vm591_vm3, %v15476_v42  ;;  %v15479_v11 = vld [vmem:[%s21568_s21 + $0x350] sm:$0xff]  ;;  %v23154_v42 = vld [vmem:[%s21568_s21 + $0x528] sm:$0xff] }
 0x19c   : > { %20467 = vmatpush3.bf16.msk.msra.mxu0 %vm21558_vm2, %v22430_v55  ;;  %19839 = vmatprep.mubr.msk.f32.mxu0 %vm591_vm3, %v22497_v44  ;;  %v15480_v55 = vld [vmem:[%s21568_s21 + $0x358] sm:$0xff]  ;;  %v15481_v44 = vld [vmem:[%s21568_s21 + $0x360] sm:$0xff] }
 0x19e   : > { %18956 = vmatmul.mubr.msk.f32.gmra.mrb[66].mxu1 %vm591_vm3, %v15477_v7  ;;  %v23163_v7 = vld [vmem:[%s21568_s21 + $0x530] sm:$0xff] }
 0x19f   : > { %19840 = vmatmul.mubr.msk.f32.gmra.mrb[2].mxu0 %vm591_vm3, %v22502_v45  ;;  %18958 = vmatprep.mubr.msk.f32.mxu1 %vm591_vm3, %v15478_v19  ;;  %v15482_v45 = vld [vmem:[%s21568_s21 + $0x378] sm:$0xff]  ;;  %v16758_v19 = vld [vmem:[%s21568_s21 + $0x2a8] sm:$0xff] }
 0x1a0   : > { %19842 = vmatprep.mubr.msk.f32.mxu0 %vm591_vm3, %v22511_v12  ;;  %v15483_v12 = vld [vmem:[%s21568_s21 + $0x380] sm:$0xff] }
 0x1a2   : > { %18959 = vmatmul.mubr.msk.f32.gmra.mrb[68].mxu1 %vm591_vm3, %v15479_v11  ;;  %v23168_v11 = vld [vmem:[%s21568_s21 + $0x538] sm:$0xff] }
 0x1a3   : > { %19843 = vmatmul.mubr.msk.f32.gmra.mrb[4].mxu0 %vm591_vm3, %v22516_v36  ;;  %18961 = vmatprep.mubr.msk.f32.mxu1 %vm591_vm3, %v15480_v55  ;;  %v15484_v36 = vld [vmem:[%s21568_s21 + $0x388] sm:$0xff]  ;;  %v16759_v55 = vld [vmem:[%s21568_s21 + $0x2b0] sm:$0xff] }
 0x1a4   : > { %19845 = vmatprep.mubr.msk.f32.mxu0 %vm591_vm3, %v22525_v49  ;;  %v15485_v49 = vld [vmem:[%s21568_s21 + $0x390] sm:$0xff] }
 0x1a6   : > { %18962 = vmatmul.mubr.msk.f32.gmra.mrb[70].mxu1 %vm591_vm3, %v15481_v44  ;;  %v16760_v44 = vld [vmem:[%s21568_s21 + $0x2b8] sm:$0xff] }
 0x1a7   : > { %19846 = vmatmul.mubr.msk.f32.gmra.mrb[6].mxu0 %vm591_vm3, %v22530_v13  ;;  %18964 = vmatprep.mubr.msk.f32.mxu1 %vm591_vm3, %v15482_v45  ;;  %v15486_v13 = vld [vmem:[%s21568_s21 + $0x398] sm:$0xff] }
 0x1a8   : > { %19848 = vmatprep.mubr.msk.f32.mxu0 %vm591_vm3, %v16713_v53  ;;  %v23179_v45 = vld [vmem:[%s21568_s21 + $0x558] sm:$0xff]  ;;  %v16761_v53 = vld [vmem:[%s21568_s21 + $0x2d0] sm:$0xff] }
 0x1aa   : > { %18965 = vmatmul.mubr.msk.f32.gmra.mrb[72].mxu1 %vm591_vm3, %v15483_v12  ;;  %v23188_v12 = vld [vmem:[%s21568_s21 + $0x560] sm:$0xff] }
 0x1ab   : > { %19849 = vmatmul.mubr.msk.f32.gmra.mrb[8].mxu0 %vm591_vm3, %v22546_v25  ;;  %18967 = vmatprep.mubr.msk.f32.mxu1 %vm591_vm3, %v15484_v36  ;;  %v15488_v25 = vld [vmem:[%s21568_s21 + $0x3a8] sm:$0xff]  ;;  %v16762_v36 = vld [vmem:[%s21568_s21 + $0x2d8] sm:$0xff] }
 0x1ac   : > { %19851 = vmatprep.mubr.msk.f32.mxu0 %vm591_vm3, %v22553_v54  ;;  %v22913_v54 = vld [vmem:[%s21568_s21 + $0x3c8] sm:$0xff] }
 0x1ae   : > { %18968 = vmatmul.mubr.msk.f32.gmra.mrb[74].mxu1 %vm591_vm3, %v15485_v49  ;;  %v23193_v49 = vld [vmem:[%s21568_s21 + $0x568] sm:$0xff] }
 0x1af   : > { %19852 = vmatmul.mubr.msk.f32.gmra.mrb[10].mxu0 %vm591_vm3, %v22558_v27  ;;  %18970 = vmatprep.mubr.msk.f32.mxu1 %vm591_vm3, %v15486_v13  ;;  %v16721_v27 = vld [vmem:[%s21568_s21 + $0x140] sm:$0xff] }
 0x1b0   : > { %19854 = vmatprep.mubr.msk.f32.mxu0 %vm591_vm3, %v22567_v29  ;;  %v22923_v29 = vld [vmem:[%s21568_s21 + $0x3d0] sm:$0xff]  ;;  %v16763_v13 = vld [vmem:[%s21568_s21 + $0x2e0] sm:$0xff] }
 0x1b2   : > { %18971 = vmatmul.mubr.msk.f32.gmra.mrb[76].mxu1 %vm591_vm3, %v15487_v21  ;;  %v16764_v21 = vld [vmem:[%s21568_s21 + $0x2e8] sm:$0xff] }
 0x1b3   : > { %19855 = vmatmul.mubr.msk.f32.gmra.mrb[12].mxu0 %vm591_vm3, %v22572_v16  ;;  %18973 = vmatprep.mubr.msk.f32.mxu1 %vm591_vm3, %v15488_v25  ;;  %v22927_v16 = vld [vmem:[%s21568_s21 + $0x3d8] sm:$0xff] }
 0x1b4   : > { %19857 = vmatprep.mubr.msk.f32.mxu0 %vm591_vm3, %v22581_v58  ;;  %v22941_v58 = vld [vmem:[%s21568_s21 + $0x3e8] sm:$0xff]  ;;  %v23207_v25 = vld [vmem:[%s21568_s21 + $0x578] sm:$0xff] }
 0x1b6   : > { %18974 = vmatmul.mubr.msk.f32.gmra.mrb[78].mxu1 %vm591_vm3, %v22444_v6  ;;  %v22936_v6 = vld [vmem:[%s21568_s21 + $0x3e0] sm:$0xff] }
 0x1b7   : > { %19858 = vmatmul.mubr.msk.f32.gmra.mrb[14].mxu0 %vm591_vm3, %v22586_v51  ;;  %18976 = vmatprep.mubr.msk.f32.mxu1 %vm591_vm3, %v22913_v54  ;;  %v22950_v51 = vld [vmem:[%s21568_s21 + $0x3f0] sm:$0xff] }
 0x1b8   : > { %19860 = vmatprep.mubr.msk.f32.mxu0 %vm591_vm3, %v16721_v27  ;;  %v16765_v27 = vld [vmem:[%s21568_s21 + $0x2f0] sm:$0xff] }
 0x1ba   : > { %18977 = vmatmul.mubr.msk.f32.gmra.mrb[80].mxu1 %vm591_vm3, %v22923_v29 }
 0x1bb   : > { %19861 = vmatmul.mubr.msk.f32.gmra.mrb[16].mxu0 %vm591_vm3, %v22602_v59  ;;  %18979 = vmatprep.mubr.msk.f32.mxu1 %vm591_vm3, %v22927_v16  ;;  %v22955_v59 = vld [vmem:[%s21568_s21 + $0x3f8] sm:$0xff] }
 0x1bc   : > { %19863 = vmatprep.mubr.msk.f32.mxu0 %vm591_vm3, %v22609_v63  ;;  %v22966_v63 = vld [vmem:[%s21568_s21 + $0x418] sm:$0xff] }
 0x1be   : > { %18980 = vmatmul.mubr.msk.f32.gmra.mrb[82].mxu1 %vm591_vm3, %v22936_v6 }
 0x1bf   : > { %19864 = vmatmul.mubr.msk.f32.gmra.mrb[18].mxu0 %vm591_vm3, %v22614_v35  ;;  %18982 = vmatprep.mubr.msk.f32.mxu1 %vm591_vm3, %v22941_v58  ;;  %v16729_v35 = vld [vmem:[%s21568_s21 + $0x190] sm:$0xff] }
 0x1c0   : > { %19866 = vmatprep.mubr.msk.f32.mxu0 %vm591_vm3, %v22623_v60  ;;  %v22976_v60 = vld [vmem:[%s21568_s21 + $0x420] sm:$0xff] }
 0x1c2   : > { %18983 = vmatmul.mubr.msk.f32.gmra.mrb[84].mxu1 %vm591_vm3, %v22950_v51 }
 0x1c3   : > { %19867 = vmatmul.mubr.msk.f32.gmra.mrb[20].mxu0 %vm591_vm3, %v22628_v39  ;;  %18985 = vmatprep.mubr.msk.f32.mxu1 %vm591_vm3, %v22955_v59  ;;  %v22980_v39 = vld [vmem:[%s21568_s21 + $0x428] sm:$0xff] }
 0x1c4   : > { %19869 = vmatprep.mubr.msk.f32.mxu0 %vm591_vm3, %v22637_v4  ;;  %v22994_v4 = vld [vmem:[%s21568_s21 + $0x438] sm:$0xff] }
 0x1c6   : > { %18986 = vmatmul.mubr.msk.f32.gmra.mrb[86].mxu1 %vm591_vm3, %v22479_v3  ;;  %v22989_v3 = vld [vmem:[%s21568_s21 + $0x430] sm:$0xff] }
 0x1c7   : > { %19870 = vmatmul.mubr.msk.f32.gmra.mrb[22].mxu0 %vm591_vm3, %v22642_v37  ;;  %18988 = vmatprep.mubr.msk.f32.mxu1 %vm591_vm3, %v22966_v63  ;;  %v23003_v37 = vld [vmem:[%s21568_s21 + $0x440] sm:$0xff] }
 0x1c8   : > { %19872 = vmatprep.mubr.msk.f32.mxu0 %vm591_vm3, %v16729_v35  ;;  %v23216_v35 = vld [vmem:[%s21568_s21 + $0x580] sm:$0xff] }
 0x1ca   : > { %18989 = vmatmul.mubr.msk.f32.gmra.mrb[88].mxu1 %vm591_vm3, %v22976_v60 }
 0x1cb   : > { %19873 = vmatmul.mubr.msk.f32.gmra.mrb[24].mxu0 %vm591_vm3, %v22658_v46  ;;  %18991 = vmatprep.mubr.msk.f32.mxu1 %vm591_vm3, %v22980_v39  ;;  %v23008_v46 = vld [vmem:[%s21568_s21 + $0x448] sm:$0xff] }
 0x1cc   : > { %19875 = vmatprep.mubr.msk.f32.mxu0 %vm591_vm3, %v22665_v10  ;;  %v23019_v10 = vld [vmem:[%s21568_s21 + $0x468] sm:$0xff] }
 0x1ce   : > { %18992 = vmatmul.mubr.msk.f32.gmra.mrb[90].mxu1 %vm591_vm3, %v22989_v3 }
 0x1cf   : > { %19876 = vmatmul.mubr.msk.f32.gmra.mrb[26].mxu0 %vm591_vm3, %v22670_v47  ;;  %18994 = vmatprep.mubr.msk.f32.mxu1 %vm591_vm3, %v22994_v4  ;;  %v16737_v47 = vld [vmem:[%s21568_s21 + $0x1e0] sm:$0xff] }
 0x1d0   : > { %19878 = vmatprep.mubr.msk.f32.mxu0 %vm591_vm3, %v22679_v48  ;;  %v23029_v48 = vld [vmem:[%s21568_s21 + $0x470] sm:$0xff] }
 0x1d2   : > { %18995 = vmatmul.mubr.msk.f32.gmra.mrb[92].mxu1 %vm591_vm3, %v23003_v37 }
 0x1d3   : > { %19879 = vmatmul.mubr.msk.f32.gmra.mrb[28].mxu0 %vm591_vm3, %v22684_v20  ;;  %18997 = vmatprep.mubr.msk.f32.mxu1 %vm591_vm3, %v23008_v46  ;;  %v23033_v20 = vld [vmem:[%s21568_s21 + $0x478] sm:$0xff] }
 0x1d4   : > { %19881 = vmatprep.mubr.msk.f32.mxu0 %vm591_vm3, %v22693_v14  ;;  %v23047_v14 = vld [vmem:[%s21568_s21 + $0x488] sm:$0xff] }
 0x1d6   : > { %18998 = vmatmul.mubr.msk.f32.gmra.mrb[94].mxu1 %vm591_vm3, %v22533_v38  ;;  %v23042_v38 = vld [vmem:[%s21568_s21 + $0x480] sm:$0xff] }
 0x1d7   : > { %19882 = vmatmul.mubr.msk.f32.gmra.mrb[30].mxu0 %vm591_vm3, %v22698_v26  ;;  %19000 = vmatprep.mubr.msk.f32.mxu1 %vm591_vm3, %v23019_v10  ;;  %v23056_v26 = vld [vmem:[%s21568_s21 + $0x490] sm:$0xff] }
 0x1d8   : > { %19884 = vmatprep.mubr.msk.f32.mxu0 %vm591_vm3, %v16737_v47  ;;  %v16766_v47 = vld [vmem:[%s21568_s21 + $0x2f8] sm:$0xff] }
 0x1da   : > { %19001 = vmatmul.mubr.msk.f32.gmra.mrb[96].mxu1 %vm591_vm3, %v23029_v48 }
 0x1db   : > { %19885 = vmatmul.mubr.msk.f32.gmra.mrb[32].mxu0 %vm591_vm3, %v22714_v5  ;;  %19003 = vmatprep.mubr.msk.f32.mxu1 %vm591_vm3, %v23033_v20  ;;  %v23061_v5 = vld [vmem:[%s21568_s21 + $0x498] sm:$0xff] }
 0x1dc   : > { %19887 = vmatprep.mubr.msk.f32.mxu0 %vm591_vm3, %v22721_v23  ;;  %v23072_v23 = vld [vmem:[%s21568_s21 + $0x4b8] sm:$0xff] }
 0x1de   : > { %19004 = vmatmul.mubr.msk.f32.gmra.mrb[98].mxu1 %vm591_vm3, %v23042_v38 }
 0x1df   : > { %19888 = vmatmul.mubr.msk.f32.gmra.mrb[34].mxu0 %vm591_vm3, %v22726_v28  ;;  %19006 = vmatprep.mubr.msk.f32.mxu1 %vm591_vm3, %v23047_v14  ;;  %v16745_v28 = vld [vmem:[%s21568_s21 + $0x230] sm:$0xff] }
 0x1e0   : > { %19890 = vmatprep.mubr.msk.f32.mxu0 %vm591_vm3, %v22735_v31  ;;  %v23082_v31 = vld [vmem:[%s21568_s21 + $0x4c0] sm:$0xff] }
 0x1e2   : > { %19007 = vmatmul.mubr.msk.f32.gmra.mrb[100].mxu1 %vm591_vm3, %v23056_v26 }
 0x1e3   : > { %19891 = vmatmul.mubr.msk.f32.gmra.mrb[36].mxu0 %vm591_vm3, %v22740_v24  ;;  %19009 = vmatprep.mubr.msk.f32.mxu1 %vm591_vm3, %v23061_v5  ;;  %v23086_v24 = vld [vmem:[%s21568_s21 + $0x4c8] sm:$0xff] }
 0x1e4   : > { %19893 = vmatprep.mubr.msk.f32.mxu0 %vm591_vm3, %v22749_v30  ;;  %v23100_v30 = vld [vmem:[%s21568_s21 + $0x4d8] sm:$0xff] }
 0x1e6   : > { %19010 = vmatmul.mubr.msk.f32.gmra.mrb[102].mxu1 %vm591_vm3, %v22589_v18  ;;  %v23095_v18 = vld [vmem:[%s21568_s21 + $0x4d0] sm:$0xff] }
 0x1e7   : > { %19894 = vmatmul.mubr.msk.f32.gmra.mrb[38].mxu0 %vm591_vm3, %v22754_v34  ;;  %19012 = vmatprep.mubr.msk.f32.mxu1 %vm591_vm3, %v23072_v23  ;;  %v23109_v34 = vld [vmem:[%s21568_s21 + $0x4e0] sm:$0xff] }
 0x1e8   : > { %19896 = vmatprep.mubr.msk.f32.mxu0 %vm591_vm3, %v16745_v28  ;;  %v23221_v28 = vld [vmem:[%s21568_s21 + $0x588] sm:$0xff] }
 0x1ea   : > { %19013 = vmatmul.mubr.msk.f32.gmra.mrb[104].mxu1 %vm591_vm3, %v23082_v31 }
 0x1eb   : > { %19897 = vmatmul.mubr.msk.f32.gmra.mrb[40].mxu0 %vm591_vm3, %v22770_v57  ;;  %19015 = vmatprep.mubr.msk.f32.mxu1 %vm591_vm3, %v23086_v24  ;;  %v23114_v57 = vld [vmem:[%s21568_s21 + $0x4e8] sm:$0xff] }
 0x1ec   : > { %19899 = vmatprep.mubr.msk.f32.mxu0 %vm591_vm3, %v22780_v50  ;;  %v23125_v50 = vld [vmem:[%s21568_s21 + $0x508] sm:$0xff] }
 0x1ee   : > { %19016 = vmatmul.mubr.msk.f32.gmra.mrb[106].mxu1 %vm591_vm3, %v23095_v18 }
 0x1ef   : > { %19900 = vmatmul.mubr.msk.f32.gmra.mrb[42].mxu0 %vm591_vm3, %v22788_v1  ;;  %19018 = vmatprep.mubr.msk.f32.mxu1 %vm591_vm3, %v23100_v30  ;;  %v16753_v1 = vld [vmem:[%s21568_s21 + $0x280] sm:$0xff] }
 0x1f0   : > { %19902 = vmatprep.mubr.msk.f32.mxu0 %vm591_vm3, %v22800_v15  ;;  %v23135_v15 = vld [vmem:[%s21568_s21 + $0x510] sm:$0xff] }
 0x1f2   : > { %19019 = vmatmul.mubr.msk.f32.gmra.mrb[108].mxu1 %vm591_vm3, %v23109_v34 }
 0x1f3   : > { %19903 = vmatmul.mubr.msk.f32.gmra.mrb[44].mxu0 %vm591_vm3, %v22808_v17  ;;  %19021 = vmatprep.mubr.msk.f32.mxu1 %vm591_vm3, %v23114_v57  ;;  %v16754_v17 = vld [vmem:[%s21568_s21 + $0x288] sm:$0xff] }
 0x1f4   : > { %19905 = vmatprep.mubr.msk.f32.mxu0 %vm591_vm3, %v22820_v52  ;;  %v23140_v52 = vld [vmem:[%s21568_s21 + $0x518] sm:$0xff] }
 0x1f6   : > { %19022 = vmatmul.mubr.msk.f32.gmra.mrb[110].mxu1 %vm591_vm3, %v22645_v8  ;;  %v23149_v8 = vld [vmem:[%s21568_s21 + $0x520] sm:$0xff] }
 0x1f7   : > { %19906 = vmatmul.mubr.msk.f32.gmra.mrb[46].mxu0 %vm591_vm3, %v22828_v61  ;;  %19024 = vmatprep.mubr.msk.f32.mxu1 %vm591_vm3, %v23125_v50  ;;  %v16756_v61 = vld [vmem:[%s21568_s21 + $0x298] sm:$0xff] }
 0x1f8   : > { %19908 = vmatprep.mubr.msk.f32.mxu0 %vm591_vm3, %v16753_v1  ;;  %v16767_v1 = vld [vmem:[%s21568_s21 + $0x300] sm:$0xff] }
 0x1fa   : > { %19025 = vmatmul.mubr.msk.f32.gmra.mrb[112].mxu1 %vm591_vm3, %v23135_v15 }
 0x1fb   : > { %19909 = vmatmul.mubr.msk.f32.gmra.mrb[48].mxu0 %vm591_vm3, %v16754_v17  ;;  %19027 = vmatprep.mubr.msk.f32.mxu1 %vm591_vm3, %v23140_v52  ;;  %v16768_v17 = vld [vmem:[%s21568_s21 + $0x308] sm:$0xff] }
 0x1fc   : > { %19911 = vmatprep.mubr.msk.f32.mxu0 %vm591_vm3, %v16755_v41  ;;  %v15669_v41 = vld [vmem:[%s21568_s21 + $0x10] sm:$0xff] }
 0x1fe   : > { %19028 = vmatmul.mubr.msk.f32.gmra.mrb[114].mxu1 %vm591_vm3, %v23149_v8 }
 0x1ff   : > { %19912 = vmatmul.mubr.msk.f32.gmra.mrb[50].mxu0 %vm591_vm3, %v16756_v61  ;;  %19030 = vmatprep.mubr.msk.f32.mxu1 %vm591_vm3, %v23154_v42  ;;  %v16769_v61 = vld [vmem:[%s21568_s21 + $0x3c0] sm:$0xff] }
 0x200   : > { %19914 = vmatprep.mubr.msk.f32.mxu0 %vm591_vm3, %v16757_v62  ;;  %v15670_v62 = vld [vmem:[%s21568_s21 + $0x18] sm:$0xff] }
 0x202   : > { %19031 = vmatmul.mubr.msk.f32.gmra.mrb[116].mxu1 %vm591_vm3, %v23163_v7 }
 0x203   : > { %19915 = vmatmul.mubr.msk.f32.gmra.mrb[52].mxu0 %vm591_vm3, %v16758_v19  ;;  %19033 = vmatprep.mubr.msk.f32.mxu1 %vm591_vm3, %v23168_v11  ;;  %v15671_v19 = vld [vmem:[%s21568_s21 + $0x20] sm:$0xff] }
 0x204   : > { %19917 = vmatprep.mubr.msk.f32.mxu0 %vm591_vm3, %v16759_v55  ;;  %v17351_v55 = vld [vmem:[%s21556_s18 + $0x80] sm:$0xff] }
 0x206   : > { %19034 = vmatmul.mubr.msk.f32.gmra.mrb[118].mxu1 %vm591_vm3, %v22701_v22  ;;  %v23202_v22 = vld [vmem:[%s21568_s21 + $0x570] sm:$0xff] }
 0x207   : > { %19918 = vmatmul.mubr.msk.f32.gmra.mrb[54].mxu0 %vm591_vm3, %v16760_v44  ;;  %19036 = vmatprep.mubr.msk.f32.mxu1 %vm591_vm3, %v23179_v45  ;;  %v17352_v44 = vld [vmem:[%s21556_s18 + $0x88] sm:$0xf] }
 0x208   : > { %19920 = vmatprep.mubr.msk.f32.mxu0 %vm591_vm3, %v16761_v53  ;;  %v15673_v53 = vld [vmem:[%s21568_s21 + $0x30] sm:$0xff] }
 0x20a   : > { %19037 = vmatmul.mubr.msk.f32.gmra.mrb[120].mxu1 %vm591_vm3, %v23188_v12 }
 0x20b   : > { %19921 = vmatmul.mubr.msk.f32.gmra.mrb[56].mxu0 %vm591_vm3, %v16762_v36  ;;  %19039 = vmatprep.mubr.msk.f32.mxu1 %vm591_vm3, %v23193_v49  ;;  %v23253_v36 = vpack.c.bf16 %v17352_v44, %v17351_v55  ;;  %v16818_v55 = vld [vmem:[%s21568_s21 + $0x5a8] sm:$0xff]  ;;  %v23553_v44 = vld [vmem:[%s21568_s21 + $0x200] sm:$0xff] }
 0x20c   : > { %19923 = vmatprep.mubr.msk.f32.mxu0 %vm591_vm3, %v16763_v13  ;;  %v15676_v13 = vld [vmem:[%s21568_s21 + $0x48] sm:$0xff]  ;;  %25453 = vst [vmem:[#allocation13_spill] sm:$0xff] %v23553_v44 }
 0x20d   : > { %20470 = vmatprep.subr.msk.bf16.mxu0 %vm21558_vm2, %v23253_v36 }
 0x20e   : > { %19040 = vmatmul.mubr.msk.f32.gmra.mrb[122].mxu1 %vm591_vm3, %v23202_v22 }
 0x20f   : > { %19924 = vmatmul.mubr.msk.f32.gmra.mrb[58].mxu0 %vm591_vm3, %v16764_v21  ;;  %19042 = vmatprep.mubr.msk.f32.mxu1 %vm591_vm3, %v23207_v25  ;;  %v16777_v21 = vld [vmem:[%s21568_s21 + $0x410] sm:$0xff] }
 0x210   : > { %19926 = vmatprep.mubr.msk.f32.mxu0 %vm591_vm3, %v16765_v27  ;;  %v15683_v27 = vld [vmem:[%s21568_s21 + $0x90] sm:$0xff] }
 0x212   : > { %19043 = vmatmul.mubr.msk.f32.gmra.mrb[124].mxu1 %vm591_vm3, %v23216_v35 }
 0x213   : > { %19927 = vmatmul.mubr.msk.f32.gmra.mrb[60].mxu0 %vm591_vm3, %v16766_v47  ;;  %19045 = vmatprep.mubr.msk.f32.mxu1 %vm591_vm3, %v23221_v28  ;;  %v16785_v47 = vld [vmem:[%s21568_s21 + $0x460] sm:$0xff] }
 0x214   : > { %19929 = vmatprep.mubr.msk.f32.mxu0 %vm591_vm3, %v16767_v1  ;;  %v23368_v1 = vld [vmem:[%s21568_s21 + $0xe0] sm:$0xff] }
 0x216   : > { %19046 = vmatmul.mubr.msk.f32.gmra.mrb[126].mxu1 %vm591_vm3, %v22757_v56  ;;  %v15672_v56 = vld [vmem:[%s21568_s21 + $0x28] sm:$0xff] }
 0x217   : > { %19930 = vmatmul.mubr.msk.f32.gmra.mrb[62].mxu0 %vm591_vm3, %v16768_v17  ;;  %19052 = vmatprep.mubr.msk.f32.mxu1 %vm591_vm3, %v15669_v41  ;;  %v23393_v17 = vld [vmem:[%s21568_s21 + $0x110] sm:$0xff] }
 0x218   : > { %19932 = vmatprep.mubr.msk.f32.mxu0 %vm591_vm3, %v16769_v61  ;;  %v23421_v41 = vld [vmem:[%s21568_s21 + $0x130] sm:$0xff]  ;;  %v23446_v61 = vld [vmem:[%s21568_s21 + $0x160] sm:$0xff] }
 0x21a   : > { %19053 = vmatmul.mubr.msk.f32.vlgmr.msra.gmra.mrb[0].mxu1 %vm591_vm3, %v15670_v62  ;;  %v23474_v62 = vld [vmem:[%s21568_s21 + $0x180] sm:$0xff] }
 0x21b   : > { %19933 = vmatmul.mubr.msk.f32.gmra.mrb[64].mxu0 %vm591_vm3, %v22913_v54  ;;  %20443 = vmatpush3.bf16.msk.msra.mxu1 %vm21558_vm2, %v22855_v9  ;;  %v25443_v54 = vld [vmem:[#allocation3_spill] sm:$0xff]  ;;  %v15674_v9 = vld [vmem:[%s21568_s21 + $0x38] sm:$0xff] }
 0x21c   : > { %19055 = vmatprep.mubr.msk.f32.mxu1 %vm591_vm3, %v15671_v19  ;;  %19935 = vmatprep.mubr.msk.f32.mxu0 %vm591_vm3, %v22923_v29  ;;  %v15675_v29 = vld [vmem:[%s21568_s21 + $0x40] sm:$0xff]  ;;  %v23499_v19 = vld [vmem:[%s21568_s21 + $0x1b0] sm:$0xff] }
 0x21d   : > { %20474 = vmatprep.subr.msk.bf16.mxu1 %vm21558_vm2, %v25443_v54  ;;  %25447 = vst [vmem:[#allocation7_spill] sm:$0xff] %v23499_v19 }
 0x21e   : > { %19056 = vmatmul.mubr.msk.f32.gmra.mrb[2].mxu1 %vm591_vm3, %v15672_v56  ;;  %v23539_v56 = vld [vmem:[%s21568_s21 + $0x1f0] sm:$0xff] }
 0x21f   : > { %19936 = vmatmul.mubr.msk.f32.gmra.mrb[66].mxu0 %vm591_vm3, %v22927_v16  ;;  %19058 = vmatprep.mubr.msk.f32.mxu1 %vm591_vm3, %v15673_v53  ;;  %v23277_v16 = vld [vmem:[%s21568_s21 + $0x60] sm:$0xff]  ;;  %25451 = vst [vmem:[#allocation11_spill] sm:$0xff] %v23539_v56  ;;  %v23575_v53 = vld [vmem:[%s21568_s21 + $0x218] sm:$0xff] }
 0x220   : > { %19938 = vmatprep.mubr.msk.f32.mxu0 %vm591_vm3, %v22936_v6  ;;  %v23286_v6 = vld [vmem:[%s21568_s21 + $0x68] sm:$0xff]  ;;  %25456 = vst [vmem:[#allocation16_spill] sm:$0xff] %v23575_v53 }
 0x222   : > { %19059 = vmatmul.mubr.msk.f32.gmra.mrb[4].mxu1 %vm591_vm3, %v15674_v9  ;;  %v23592_v9 = vld [vmem:[%s21568_s21 + $0x240] sm:$0xff] }
 0x223   : > { %19939 = vmatmul.mubr.msk.f32.gmra.mrb[68].mxu0 %vm591_vm3, %v22941_v58  ;;  %19061 = vmatprep.mubr.msk.f32.mxu1 %vm591_vm3, %v15675_v29  ;;  %v23290_v58 = vld [vmem:[%s21568_s21 + $0x70] sm:$0xff]  ;;  %25457 = vst [vmem:[#allocation17_spill] sm:$0xff] %v23592_v9  ;;  %v25458_v29 = vld [vmem:[#allocation4_spill] sm:$0xff] }
 0x224   : > { %19941 = vmatprep.mubr.msk.f32.mxu0 %vm591_vm3, %v22950_v51  ;;  %v23299_v51 = vld [vmem:[%s21568_s21 + $0x78] sm:$0xff] }
 0x226   : > { %19062 = vmatmul.mubr.msk.f32.gmra.mrb[6].mxu1 %vm591_vm3, %v15676_v13  ;;  %v23606_v13 = vld [vmem:[%s21568_s21 + $0x250] sm:$0xff] }
 0x227   : > { %19942 = vmatmul.mubr.msk.f32.gmra.mrb[70].mxu0 %vm591_vm3, %v22955_v59  ;;  %19064 = vmatprep.mubr.msk.f32.mxu1 %vm591_vm3, %v23277_v16  ;;  %v23304_v59 = vld [vmem:[%s21568_s21 + $0x80] sm:$0xff]  ;;  %25460 = vst [vmem:[#allocation18_spill] sm:$0xff] %v23606_v13 }
 0x228   : > { %19944 = vmatprep.mubr.msk.f32.mxu0 %vm591_vm3, %v16777_v21  ;;  %v16827_v21 = vld [vmem:[%s21568_s21 + $0x600] sm:$0xff] }
 0x22a   : > { %19065 = vmatmul.mubr.msk.f32.gmra.mrb[8].mxu1 %vm591_vm3, %v23286_v6 }
 0x22b   : > { %19945 = vmatmul.mubr.msk.f32.gmra.mrb[72].mxu0 %vm591_vm3, %v22966_v63  ;;  %19067 = vmatprep.mubr.msk.f32.mxu1 %vm591_vm3, %v23290_v58  ;;  %v23313_v63 = vld [vmem:[%s21568_s21 + $0x88] sm:$0xff] }
 0x22c   : > { %19947 = vmatprep.mubr.msk.f32.mxu0 %vm591_vm3, %v22976_v60  ;;  %v15684_v60 = vld [vmem:[%s21568_s21 + $0x98] sm:$0xff] }
 0x22e   : > { %19068 = vmatmul.mubr.msk.f32.gmra.mrb[10].mxu1 %vm591_vm3, %v23299_v51 }
 0x22f   : > { %19948 = vmatmul.mubr.msk.f32.gmra.mrb[74].mxu0 %vm591_vm3, %v22980_v39  ;;  %19070 = vmatprep.mubr.msk.f32.mxu1 %vm591_vm3, %v23304_v59  ;;  %v23327_v39 = vld [vmem:[%s21568_s21 + $0xb0] sm:$0xff] }
 0x230   : > { %19950 = vmatprep.mubr.msk.f32.mxu0 %vm591_vm3, %v22989_v3  ;;  %v23336_v3 = vld [vmem:[%s21568_s21 + $0xb8] sm:$0xff] }
 0x232   : > { %19071 = vmatmul.mubr.msk.f32.gmra.mrb[12].mxu1 %vm591_vm3, %v23313_v63 }
 0x233   : > { %19951 = vmatmul.mubr.msk.f32.gmra.mrb[76].mxu0 %vm591_vm3, %v22994_v4  ;;  %19073 = vmatprep.mubr.msk.f32.mxu1 %vm591_vm3, %v15683_v27  ;;  %v23340_v4 = vld [vmem:[%s21568_s21 + $0xc0] sm:$0xff]  ;;  %v23615_v27 = vld [vmem:[%s21568_s21 + $0x258] sm:$0xff] }
 0x234   : > { %19953 = vmatprep.mubr.msk.f32.mxu0 %vm591_vm3, %v23003_v37  ;;  %v23349_v37 = vld [vmem:[%s21568_s21 + $0xc8] sm:$0xff]  ;;  %25461 = vst [vmem:[#allocation19_spill] sm:$0xff] %v23615_v27 }
 0x236   : > { %19074 = vmatmul.mubr.msk.f32.gmra.mrb[14].mxu1 %vm591_vm3, %v15684_v60  ;;  %v16828_v60 = vld [vmem:[%s21568_s21 + $0x608] sm:$0xff] }
 0x237   : > { %19954 = vmatmul.mubr.msk.f32.gmra.mrb[78].mxu0 %vm591_vm3, %v23008_v46  ;;  %19076 = vmatprep.mubr.msk.f32.mxu1 %vm591_vm3, %v23327_v39  ;;  %v23354_v46 = vld [vmem:[%s21568_s21 + $0xd0] sm:$0xff] }
 0x238   : > { %19956 = vmatprep.mubr.msk.f32.mxu0 %vm591_vm3, %v16785_v47  ;;  %v23620_v47 = vld [vmem:[%s21568_s21 + $0x260] sm:$0xff] }
 0x239   : > { %25462 = vst [vmem:[#allocation20_spill] sm:$0xff] %v23620_v47 }
 0x23a   : > { %19077 = vmatmul.mubr.msk.f32.gmra.mrb[16].mxu1 %vm591_vm3, %v23336_v3 }
 0x23b   : > { %19957 = vmatmul.mubr.msk.f32.gmra.mrb[80].mxu0 %vm591_vm3, %v23019_v10  ;;  %19079 = vmatprep.mubr.msk.f32.mxu1 %vm591_vm3, %v23340_v4  ;;  %v23363_v10 = vld [vmem:[%s21568_s21 + $0xd8] sm:$0xff] }
 0x23c   : > { %19959 = vmatprep.mubr.msk.f32.mxu0 %vm591_vm3, %v23029_v48  ;;  %v15692_v48 = vld [vmem:[%s21568_s21 + $0xe8] sm:$0xff] }
 0x23e   : > { %19080 = vmatmul.mubr.msk.f32.gmra.mrb[18].mxu1 %vm591_vm3, %v23349_v37 }
 0x23f   : > { %19960 = vmatmul.mubr.msk.f32.gmra.mrb[82].mxu0 %vm591_vm3, %v23033_v20  ;;  %19082 = vmatprep.mubr.msk.f32.mxu1 %vm591_vm3, %v23354_v46  ;;  %v23380_v20 = vld [vmem:[%s21568_s21 + $0x100] sm:$0xff] }
 0x240   : > { %19962 = vmatprep.mubr.msk.f32.mxu0 %vm591_vm3, %v23042_v38  ;;  %v16793_v38 = vld [vmem:[%s21568_s21 + $0x4b0] sm:$0xff] }
 0x242   : > { %19083 = vmatmul.mubr.msk.f32.gmra.mrb[20].mxu1 %vm591_vm3, %v23363_v10 }
 0x243   : > { %19963 = vmatmul.mubr.msk.f32.gmra.mrb[84].mxu0 %vm591_vm3, %v23047_v14  ;;  %19085 = vmatprep.mubr.msk.f32.mxu1 %vm591_vm3, %v23368_v1  ;;  %v23389_v14 = vld [vmem:[%s21568_s21 + $0x108] sm:$0xff] }
 0x244   : > { %19965 = vmatprep.mubr.msk.f32.mxu0 %vm591_vm3, %v23056_v26  ;;  %v23402_v26 = vld [vmem:[%s21568_s21 + $0x118] sm:$0xff] }
 0x246   : > { %19086 = vmatmul.mubr.msk.f32.gmra.mrb[22].mxu1 %vm591_vm3, %v15692_v48  ;;  %v16829_v48 = vld [vmem:[%s21568_s21 + $0x610] sm:$0xff] }
 0x247   : > { %19966 = vmatmul.mubr.msk.f32.gmra.mrb[86].mxu0 %vm591_vm3, %v23061_v5  ;;  %19088 = vmatprep.mubr.msk.f32.mxu1 %vm591_vm3, %v23380_v20  ;;  %v23407_v5 = vld [vmem:[%s21568_s21 + $0x120] sm:$0xff] }
 0x248   : > { %19968 = vmatprep.mubr.msk.f32.mxu0 %vm591_vm3, %v16793_v38  ;;  %v23629_v38 = vld [vmem:[%s21568_s21 + $0x268] sm:$0xff] }
 0x249   : > { %25463 = vst [vmem:[#allocation21_spill] sm:$0xff] %v23629_v38 }
 0x24a   : > { %19089 = vmatmul.mubr.msk.f32.gmra.mrb[24].mxu1 %vm591_vm3, %v23389_v14 }
 0x24b   : > { %19969 = vmatmul.mubr.msk.f32.gmra.mrb[88].mxu0 %vm591_vm3, %v23072_v23  ;;  %19091 = vmatprep.mubr.msk.f32.mxu1 %vm591_vm3, %v23393_v17  ;;  %v23416_v23 = vld [vmem:[%s21568_s21 + $0x128] sm:$0xff] }
 0x24c   : > { %19971 = vmatprep.mubr.msk.f32.mxu0 %vm591_vm3, %v23082_v31  ;;  %v15700_v31 = vld [vmem:[%s21568_s21 + $0x138] sm:$0xff] }
 0x24e   : > { %19092 = vmatmul.mubr.msk.f32.gmra.mrb[26].mxu1 %vm591_vm3, %v23402_v26 }
 0x24f   : > { %19972 = vmatmul.mubr.msk.f32.gmra.mrb[90].mxu0 %vm591_vm3, %v23086_v24  ;;  %19094 = vmatprep.mubr.msk.f32.mxu1 %vm591_vm3, %v23407_v5  ;;  %v23433_v24 = vld [vmem:[%s21568_s21 + $0x150] sm:$0xff] }
 0x250   : > { %19974 = vmatprep.mubr.msk.f32.mxu0 %vm591_vm3, %v23095_v18  ;;  %v16801_v18 = vld [vmem:[%s21568_s21 + $0x500] sm:$0xff] }
 0x252   : > { %19095 = vmatmul.mubr.msk.f32.gmra.mrb[28].mxu1 %vm591_vm3, %v23416_v23 }
 0x253   : > { %19975 = vmatmul.mubr.msk.f32.gmra.mrb[92].mxu0 %vm591_vm3, %v23100_v30  ;;  %19097 = vmatprep.mubr.msk.f32.mxu1 %vm591_vm3, %v23421_v41  ;;  %v23442_v30 = vld [vmem:[%s21568_s21 + $0x158] sm:$0xff] }
 0x254   : > { %19977 = vmatprep.mubr.msk.f32.mxu0 %vm591_vm3, %v23109_v34  ;;  %v23455_v34 = vld [vmem:[%s21568_s21 + $0x168] sm:$0xff] }
 0x256   : > { %19098 = vmatmul.mubr.msk.f32.gmra.mrb[30].mxu1 %vm591_vm3, %v15700_v31  ;;  %v16830_v31 = vld [vmem:[%s21568_s21 + $0x618] sm:$0xff] }
 0x257   : > { %19978 = vmatmul.mubr.msk.f32.gmra.mrb[94].mxu0 %vm591_vm3, %v23114_v57  ;;  %19100 = vmatprep.mubr.msk.f32.mxu1 %vm591_vm3, %v23433_v24  ;;  %v23460_v57 = vld [vmem:[%s21568_s21 + $0x170] sm:$0xff] }
 0x258   : > { %19980 = vmatprep.mubr.msk.f32.mxu0 %vm591_vm3, %v16801_v18  ;;  %v23634_v18 = vld [vmem:[%s21568_s21 + $0x270] sm:$0xff] }
 0x25a   : > { %19101 = vmatmul.mubr.msk.f32.gmra.mrb[32].mxu1 %vm591_vm3, %v23442_v30 }
 0x25b   : > { %19981 = vmatmul.mubr.msk.f32.gmra.mrb[96].mxu0 %vm591_vm3, %v23125_v50  ;;  %19103 = vmatprep.mubr.msk.f32.mxu1 %vm591_vm3, %v23446_v61  ;;  %v23469_v50 = vld [vmem:[%s21568_s21 + $0x178] sm:$0xff] }
 0x25c   : > { %19983 = vmatprep.mubr.msk.f32.mxu0 %vm591_vm3, %v23135_v15  ;;  %25444 = vst [vmem:[#allocation3_spill] sm:$0xff] %v23469_v50  ;;  %v15708_v15 = vld [vmem:[%s21568_s21 + $0x188] sm:$0xff] }
 0x25e   : > { %19104 = vmatmul.mubr.msk.f32.gmra.mrb[34].mxu1 %vm591_vm3, %v23455_v34 }
 0x25f   : > { %19984 = vmatmul.mubr.msk.f32.gmra.mrb[98].mxu0 %vm591_vm3, %v23140_v52  ;;  %19106 = vmatprep.mubr.msk.f32.mxu1 %vm591_vm3, %v23460_v57  ;;  %v23486_v52 = vld [vmem:[%s21568_s21 + $0x1a0] sm:$0xff] }
 0x260   : > { %19986 = vmatprep.mubr.msk.f32.mxu0 %vm591_vm3, %v23149_v8  ;;  %25445 = vst [vmem:[#allocation5_spill] sm:$0xff] %v23486_v52  ;;  %v16809_v8 = vld [vmem:[%s21568_s21 + $0x550] sm:$0xff] }
 0x262   : > { %19107 = vmatmul.mubr.msk.f32.gmra.mrb[36].mxu1 %vm591_vm3, %v23469_v50 }
 0x263   : > { %19987 = vmatmul.mubr.msk.f32.gmra.mrb[100].mxu0 %vm591_vm3, %v23154_v42  ;;  %19109 = vmatprep.mubr.msk.f32.mxu1 %vm591_vm3, %v23474_v62  ;;  %v23495_v42 = vld [vmem:[%s21568_s21 + $0x1a8] sm:$0xff] }
 0x264   : > { %19989 = vmatprep.mubr.msk.f32.mxu0 %vm591_vm3, %v23163_v7  ;;  %25446 = vst [vmem:[#allocation6_spill] sm:$0xff] %v23495_v42  ;;  %v23508_v7 = vld [vmem:[%s21568_s21 + $0x1b8] sm:$0xff] }
 0x265   : > { %25448 = vst [vmem:[#allocation8_spill] sm:$0xff] %v23508_v7 }
 0x266   : > { %19110 = vmatmul.mubr.msk.f32.gmra.mrb[38].mxu1 %vm591_vm3, %v15708_v15  ;;  %v16831_v15 = vld [vmem:[%s21568_s21 + $0x620] sm:$0xff] }
 0x267   : > { %19990 = vmatmul.mubr.msk.f32.gmra.mrb[102].mxu0 %vm591_vm3, %v23168_v11  ;;  %19112 = vmatprep.mubr.msk.f32.mxu1 %vm591_vm3, %v23486_v52  ;;  %v23513_v11 = vld [vmem:[%s21568_s21 + $0x1c0] sm:$0xff] }
 0x268   : > { %19992 = vmatprep.mubr.msk.f32.mxu0 %vm591_vm3, %v16809_v8  ;;  %25449 = vst [vmem:[#allocation9_spill] sm:$0xff] %v23513_v11  ;;  %v15732_v8 = vld [vmem:[%s21568_s21 + $0x278] sm:$0xff] }
 0x26a   : > { %19113 = vmatmul.mubr.msk.f32.gmra.mrb[40].mxu1 %vm591_vm3, %v23495_v42 }
 0x26b   : > { %19993 = vmatmul.mubr.msk.f32.gmra.mrb[104].mxu0 %vm591_vm3, %v23179_v45  ;;  %19115 = vmatprep.mubr.msk.f32.mxu1 %vm591_vm3, %v23499_v19  ;;  %v23522_v45 = vld [vmem:[%s21568_s21 + $0x1c8] sm:$0xff] }
 0x26c   : > { %19995 = vmatprep.mubr.msk.f32.mxu0 %vm591_vm3, %v23188_v12  ;;  %25450 = vst [vmem:[#allocation10_spill] sm:$0xff] %v23522_v45  ;;  %v23527_v12 = vld [vmem:[%s21568_s21 + $0x1d0] sm:$0xff] }
 0x26e   : > { %19116 = vmatmul.mubr.msk.f32.gmra.mrb[42].mxu1 %vm591_vm3, %v23508_v7 }
 0x26f   : > { %19996 = vmatmul.mubr.msk.f32.gmra.mrb[106].mxu0 %vm591_vm3, %v23193_v49  ;;  %19118 = vmatprep.mubr.msk.f32.mxu1 %vm591_vm3, %v23513_v11  ;;  %v15716_v49 = vld [vmem:[%s21568_s21 + $0x1d8] sm:$0xff] }
 0x270   : > { %19998 = vmatprep.mubr.msk.f32.mxu0 %vm591_vm3, %v23202_v22  ;;  %v16817_v22 = vld [vmem:[%s21568_s21 + $0x5a0] sm:$0xff] }
 0x272   : > { %19119 = vmatmul.mubr.msk.f32.gmra.mrb[44].mxu1 %vm591_vm3, %v23522_v45 }
 0x273   : > { %19999 = vmatmul.mubr.msk.f32.gmra.mrb[108].mxu0 %vm591_vm3, %v23207_v25  ;;  %19121 = vmatprep.mubr.msk.f32.mxu1 %vm591_vm3, %v23527_v12  ;;  %v23548_v25 = vld [vmem:[%s21568_s21 + $0x1f8] sm:$0xff] }
 0x274   : > { %20001 = vmatprep.mubr.msk.f32.mxu0 %vm591_vm3, %v23216_v35  ;;  %25452 = vst [vmem:[#allocation12_spill] sm:$0xff] %v23548_v25  ;;  %v23561_v35 = vld [vmem:[%s21568_s21 + $0x208] sm:$0xff] }
 0x275   : > { %25454 = vst [vmem:[#allocation14_spill] sm:$0xff] %v23561_v35 }
 0x276   : > { %19122 = vmatmul.mubr.msk.f32.gmra.mrb[46].mxu1 %vm591_vm3, %v15716_v49  ;;  %v16832_v49 = vld [vmem:[%s21568_s21 + $0x628] sm:$0xff] }
 0x277   : > { %20002 = vmatmul.mubr.msk.f32.gmra.mrb[110].mxu0 %vm591_vm3, %v23221_v28  ;;  %19124 = vmatprep.mubr.msk.f32.mxu1 %vm591_vm3, %v23539_v56  ;;  %v23566_v28 = vld [vmem:[%s21568_s21 + $0x210] sm:$0xff] }
 0x278   : > { %20004 = vmatprep.mubr.msk.f32.mxu0 %vm591_vm3, %v16817_v22  ;;  %25455 = vst [vmem:[#allocation15_spill] sm:$0xff] %v23566_v28  ;;  %v15733_v22 = vld [vmem:[%s21568_s21 + $0x330] sm:$0xff] }
 0x27a   : > { %19125 = vmatmul.mubr.msk.f32.gmra.mrb[48].mxu1 %vm591_vm3, %v23548_v25 }
 0x27b   : > { %20005 = vmatmul.mubr.msk.f32.gmra.mrb[112].mxu0 %vm591_vm3, %v16818_v55  ;;  %19127 = vmatprep.mubr.msk.f32.mxu1 %vm591_vm3, %v23553_v44  ;;  %v23647_v55 = vld [vmem:[%s21568_s21 + $0xa8] sm:$0xff] }
 0x27c   : > { %20007 = vmatprep.mubr.msk.f32.mxu0 %vm591_vm3, %v22773_v32  ;;  %v23580_v32 = vld [vmem:[%s21568_s21 + $0x220] sm:$0xff] }
 0x27e   : > { %19128 = vmatmul.mubr.msk.f32.gmra.mrb[50].mxu1 %vm591_vm3, %v23561_v35 }
 0x27f   : > { %20008 = vmatmul.mubr.msk.f32.gmra.mrb[114].mxu0 %vm591_vm3, %v22785_v33  ;;  %19130 = vmatprep.mubr.msk.f32.mxu1 %vm591_vm3, %v23566_v28  ;;  %v15724_v33 = vld [vmem:[%s21568_s21 + $0x228] sm:$0xff] }
 0x280   : > { %20010 = vmatprep.mubr.msk.f32.mxu0 %vm591_vm3, %v22791_v2  ;;  %v16825_v2 = vld [vmem:[%s21568_s21 + $0x5f0] sm:$0xff] }
 0x282   : > { %19131 = vmatmul.mubr.msk.f32.gmra.mrb[52].mxu1 %vm591_vm3, %v23575_v53 }
 0x283   : > { %20011 = vmatmul.mubr.msk.f32.gmra.mrb[116].mxu0 %vm591_vm3, %v22805_v40  ;;  %19133 = vmatprep.mubr.msk.f32.mxu1 %vm591_vm3, %v23580_v32  ;;  %v23601_v40 = vld [vmem:[%s21568_s21 + $0x248] sm:$0xff] }
 0x284   : > { %20013 = vmatprep.mubr.msk.f32.mxu0 %vm591_vm3, %v22811_v43  ;;  %25459 = vst [vmem:[#allocation4_spill] sm:$0xff] %v23601_v40  ;;  %v16826_v43 = vld [vmem:[%s21568_s21 + $0x5f8] sm:$0xff] }
 0x286   : > { %19134 = vmatmul.mubr.msk.f32.gmra.mrb[54].mxu1 %vm591_vm3, %v15724_v33  ;;  %v15734_v33 = vld [vmem:[%s21568_s21 + $0x338] sm:$0xff] }
 0x287   : > { %20014 = vmatmul.mubr.msk.f32.gmra.mrb[118].mxu0 %vm591_vm3, %v25458_v29  ;;  %19136 = vmatprep.mubr.msk.f32.mxu1 %vm591_vm3, %v23592_v9  ;;  %v15736_v29 = vld [vmem:[%s21568_s21 + $0x348] sm:$0xff] }
 0x288   : > { %20016 = vmatprep.mubr.msk.f32.mxu0 %vm591_vm3, %v16825_v2  ;;  %v15735_v2 = vld [vmem:[%s21568_s21 + $0x340] sm:$0xff] }
 0x28a   : > { %19137 = vmatmul.mubr.msk.f32.gmra.mrb[56].mxu1 %vm591_vm3, %v23601_v40 }
 0x28b   : > { %20017 = vmatmul.mubr.msk.f32.gmra.mrb[120].mxu0 %vm591_vm3, %v16826_v43  ;;  %19139 = vmatprep.mubr.msk.f32.mxu1 %vm591_vm3, %v23606_v13  ;;  %v15737_v43 = vld [vmem:[%s21568_s21 + $0x350] sm:$0xff] }
 0x28c   : > { %20019 = vmatprep.mubr.msk.f32.mxu0 %vm591_vm3, %v16827_v21  ;;  %v15738_v21 = vld [vmem:[%s21568_s21 + $0x358] sm:$0xff] }
 0x28e   : > { %19140 = vmatmul.mubr.msk.f32.gmra.mrb[58].mxu1 %vm591_vm3, %v23615_v27 }
 0x28f   : > { %20020 = vmatmul.mubr.msk.f32.gmra.mrb[122].mxu0 %vm591_vm3, %v16828_v60  ;;  %19142 = vmatprep.mubr.msk.f32.mxu1 %vm591_vm3, %v23620_v47  ;;  %v15739_v60 = vld [vmem:[%s21568_s21 + $0x360] sm:$0xff] }
 0x290   : > { %20022 = vmatprep.mubr.msk.f32.mxu0 %vm591_vm3, %v16829_v48  ;;  %v23683_v48 = vld [vmem:[%s21568_s21 + $0x380] sm:$0xff] }
 0x291   : > { %25464 = vst [vmem:[#allocation22_spill] sm:$0xff] %v23683_v48 }
 0x292   : > { %19143 = vmatmul.mubr.msk.f32.gmra.mrb[60].mxu1 %vm591_vm3, %v23629_v38 }
 0x293   : > { %20023 = vmatmul.mubr.msk.f32.gmra.mrb[124].mxu0 %vm591_vm3, %v16830_v31  ;;  %19145 = vmatprep.mubr.msk.f32.mxu1 %vm591_vm3, %v23634_v18  ;;  %v23686_v31 = vld [vmem:[%s21568_s21 + $0xf8] sm:$0xff] }
 0x294   : > { %20025 = vmatprep.mubr.msk.f32.mxu0 %vm591_vm3, %v16831_v15  ;;  %v23694_v15 = vld [vmem:[%s21568_s21 + $0x388] sm:$0xff] }
 0x295   : > { %25465 = vst [vmem:[#allocation23_spill] sm:$0xff] %v23694_v15 }
 0x296   : > { %19146 = vmatmul.mubr.msk.f32.gmra.mrb[62].mxu1 %vm591_vm3, %v15732_v8  ;;  %v23699_v8 = vld [vmem:[%s21568_s21 + $0x390] sm:$0xff] }
 0x297   : > { %20026 = vmatmul.mubr.msk.f32.gmra.mrb[126].mxu0 %vm591_vm3, %v16832_v49  ;;  %19148 = vmatprep.mubr.msk.f32.mxu1 %vm591_vm3, %v15733_v22  ;;  %25466 = vst [vmem:[#allocation24_spill] sm:$0xff] %v23699_v8  ;;  %v23713_v49 = vld [vmem:[%s21568_s21 + $0x3a0] sm:$0xff]  ;;  %v23722_v22 = vld [vmem:[%s21568_s21 + $0x3a8] sm:$0xff] }
 0x298   : > { %20032 = vmatprep.mubr.msk.f32.mxu0 %vm591_vm3, %v23647_v55  ;;  %25468 = vst [vmem:[#allocation26_spill] sm:$0xff] %v23713_v49  ;;  %25469 = vst [vmem:[#allocation27_spill] sm:$0xff] %v23722_v22 }
 0x29a   : > { %19149 = vmatmul.mubr.msk.f32.gmra.mrb[64].mxu1 %vm591_vm3, %v15734_v33  ;;  %v15747_v33 = vld [vmem:[%s21568_s21 + $0x3b0] sm:$0xff] }
 0x29b   : > { %20033 = vmatmul.mubr.msk.f32.vlgmr.msra.gmra.mrb[0].mxu0 %vm591_vm3, %v23327_v39  ;;  %19151 = vmatprep.mubr.msk.f32.mxu1 %vm591_vm3, %v15735_v2  ;;  %v15748_v2 = vld [vmem:[%s21568_s21 + $0x3b8] sm:$0xff] }
 0x29c   : > { %20473 = vmatpush3.bf16.msk.msra.mxu0 %vm21558_vm2, %v23253_v36  ;;  %20035 = vmatprep.mubr.msk.f32.mxu0 %vm591_vm3, %v23336_v3  ;;  %v15740_v36 = vld [vmem:[%s21568_s21 + $0x368] sm:$0xff] }
 0x29e   : > { %19152 = vmatmul.mubr.msk.f32.gmra.mrb[66].mxu1 %vm591_vm3, %v15736_v29  ;;  %v23736_v29 = vld [vmem:[%s21568_s21 + $0x3d0] sm:$0xff] }
 0x29f   : > { %20036 = vmatmul.mubr.msk.f32.gmra.mrb[2].mxu0 %vm591_vm3, %v23340_v4  ;;  %19154 = vmatprep.mubr.msk.f32.mxu1 %vm591_vm3, %v15737_v43  ;;  %v23739_v43 = vld [vmem:[%s21568_s21 + $0x148] sm:$0xff] }
 0x2a0   : > { %20038 = vmatprep.mubr.msk.f32.mxu0 %vm591_vm3, %v23349_v37 }
 0x2a2   : > { %19155 = vmatmul.mubr.msk.f32.gmra.mrb[68].mxu1 %vm591_vm3, %v15738_v21  ;;  %v23747_v21 = vld [vmem:[%s21568_s21 + $0x3d8] sm:$0xff] }
 0x2a3   : > { %20039 = vmatmul.mubr.msk.f32.gmra.mrb[4].mxu0 %vm591_vm3, %v23354_v46  ;;  %19157 = vmatprep.mubr.msk.f32.mxu1 %vm591_vm3, %v15739_v60  ;;  %v23752_v60 = vld [vmem:[%s21568_s21 + $0x3e0] sm:$0xff] }
 0x2a4   : > { %20041 = vmatprep.mubr.msk.f32.mxu0 %vm591_vm3, %v23363_v10 }
 0x2a6   : > { %19158 = vmatmul.mubr.msk.f32.gmra.mrb[70].mxu1 %vm591_vm3, %v15740_v36  ;;  %v23766_v36 = vld [vmem:[%s21568_s21 + $0x3f0] sm:$0xff] }
 0x2a7   : > { %20042 = vmatmul.mubr.msk.f32.gmra.mrb[6].mxu0 %vm591_vm3, %v23368_v1  ;;  %19160 = vmatprep.mubr.msk.f32.mxu1 %vm591_vm3, %v23683_v48  ;;  %v23708_v1 = vld [vmem:[%s21568_s21 + $0x398] sm:$0xff]  ;;  %v23831_v48 = vld [vmem:[%s21568_s21 + $0x448] sm:$0xff] }
 0x2a8   : > { %20044 = vmatprep.mubr.msk.f32.mxu0 %vm591_vm3, %v23686_v31  ;;  %25467 = vst [vmem:[#allocation25_spill] sm:$0xff] %v23708_v1 }
 0x2aa   : > { %19161 = vmatmul.mubr.msk.f32.gmra.mrb[72].mxu1 %vm591_vm3, %v23694_v15  ;;  %v23808_v15 = vld [vmem:[%s21568_s21 + $0x430] sm:$0xff] }
 0x2ab   : > { %20045 = vmatmul.mubr.msk.f32.gmra.mrb[8].mxu0 %vm591_vm3, %v23380_v20  ;;  %19163 = vmatprep.mubr.msk.f32.mxu1 %vm591_vm3, %v23699_v8  ;;  %v23803_v8 = vld [vmem:[%s21568_s21 + $0x428] sm:$0xff] }
 0x2ac   : > { %20047 = vmatprep.mubr.msk.f32.mxu0 %vm591_vm3, %v23389_v14 }
 0x2ae   : > { %19164 = vmatmul.mubr.msk.f32.gmra.mrb[74].mxu1 %vm591_vm3, %v23708_v1  ;;  %v23795_v1 = vld [vmem:[%s21568_s21 + $0x198] sm:$0xff] }
 0x2af   : > { %20048 = vmatmul.mubr.msk.f32.gmra.mrb[10].mxu0 %vm591_vm3, %v23393_v17  ;;  %19166 = vmatprep.mubr.msk.f32.mxu1 %vm591_vm3, %v23713_v49  ;;  %v23792_v49 = vld [vmem:[%s21568_s21 + $0x420] sm:$0xff]  ;;  %25470 = vst [vmem:[#allocation28_spill] sm:$0xff] %v23795_v1 }
 0x2b0   : > { %20050 = vmatprep.mubr.msk.f32.mxu0 %vm591_vm3, %v23402_v26 }
 0x2b2   : > { %19167 = vmatmul.mubr.msk.f32.gmra.mrb[76].mxu1 %vm591_vm3, %v23722_v22  ;;  %v15756_v22 = vld [vmem:[%s21568_s21 + $0x408] sm:$0xff] }
 0x2b3   : > { %20051 = vmatmul.mubr.msk.f32.gmra.mrb[12].mxu0 %vm591_vm3, %v23407_v5  ;;  %19169 = vmatprep.mubr.msk.f32.mxu1 %vm591_vm3, %v15747_v33  ;;  %v23775_v33 = vld [vmem:[%s21568_s21 + $0x3f8] sm:$0xff] }
 0x2b4   : > { %20053 = vmatprep.mubr.msk.f32.mxu0 %vm591_vm3, %v23416_v23 }
 0x2b6   : > { %19170 = vmatmul.mubr.msk.f32.gmra.mrb[78].mxu1 %vm591_vm3, %v15748_v2  ;;  %v23780_v2 = vld [vmem:[%s21568_s21 + $0x400] sm:$0xff] }
 0x2b7   : > { %20054 = vmatmul.mubr.msk.f32.gmra.mrb[14].mxu0 %vm591_vm3, %v23421_v41  ;;  %19172 = vmatprep.mubr.msk.f32.mxu1 %vm591_vm3, %v23736_v29  ;;  %v23761_v41 = vld [vmem:[%s21568_s21 + $0x3e8] sm:$0xff] }
 0x2b8   : > { %20056 = vmatprep.mubr.msk.f32.mxu0 %vm591_vm3, %v23739_v43 }
 0x2ba   : > { %19173 = vmatmul.mubr.msk.f32.gmra.mrb[80].mxu1 %vm591_vm3, %v23747_v21 }
 0x2bb   : > { %20057 = vmatmul.mubr.msk.f32.gmra.mrb[16].mxu0 %vm591_vm3, %v23433_v24  ;;  %19175 = vmatprep.mubr.msk.f32.mxu1 %vm591_vm3, %v23752_v60 }
 0x2bc   : > { %20059 = vmatprep.mubr.msk.f32.mxu0 %vm591_vm3, %v23442_v30 }
 0x2be   : > { %19176 = vmatmul.mubr.msk.f32.gmra.mrb[82].mxu1 %vm591_vm3, %v23761_v41 }
 0x2bf   : > { %20060 = vmatmul.mubr.msk.f32.gmra.mrb[18].mxu0 %vm591_vm3, %v23446_v61  ;;  %19178 = vmatprep.mubr.msk.f32.mxu1 %vm591_vm3, %v23766_v36 }
 0x2c0   : > { %20062 = vmatprep.mubr.msk.f32.mxu0 %vm591_vm3, %v23455_v34 }
 0x2c2   : > { %19179 = vmatmul.mubr.msk.f32.gmra.mrb[84].mxu1 %vm591_vm3, %v23775_v33 }
 0x2c3   : > { %20063 = vmatmul.mubr.msk.f32.gmra.mrb[20].mxu0 %vm591_vm3, %v23460_v57  ;;  %19181 = vmatprep.mubr.msk.f32.mxu1 %vm591_vm3, %v23780_v2 }
 0x2c4   : > { %20065 = vmatprep.mubr.msk.f32.mxu0 %vm591_vm3, %v23469_v50  ;;  %v24089_v50 = vld [vmem:[%s21568_s21 + $0x3c8] sm:$0xff] }
 0x2c6   : > { %19182 = vmatmul.mubr.msk.f32.gmra.mrb[86].mxu1 %vm591_vm3, %v15756_v22  ;;  %v23822_v22 = vld [vmem:[%s21568_s21 + $0x440] sm:$0xff] }
 0x2c7   : > { %20066 = vmatmul.mubr.msk.f32.gmra.mrb[22].mxu0 %vm591_vm3, %v23474_v62  ;;  %19184 = vmatprep.mubr.msk.f32.mxu1 %vm591_vm3, %v23792_v49  ;;  %v23817_v62 = vld [vmem:[%s21568_s21 + $0x438] sm:$0xff] }
 0x2c8   : > { %20068 = vmatprep.mubr.msk.f32.mxu0 %vm591_vm3, %v23795_v1  ;;  %v23979_v1 = vld [vmem:[%s21568_s21 + $0x520] sm:$0xff] }
 0x2c9   : > { %25478 = vst [vmem:[#allocation36_spill] sm:$0xff] %v23979_v1 }
 0x2ca   : > { %19185 = vmatmul.mubr.msk.f32.gmra.mrb[88].mxu1 %vm591_vm3, %v23803_v8 }
 0x2cb   : > { %20069 = vmatmul.mubr.msk.f32.gmra.mrb[24].mxu0 %vm591_vm3, %v23486_v52  ;;  %19187 = vmatprep.mubr.msk.f32.mxu1 %vm591_vm3, %v23808_v15  ;;  %v23836_v52 = vld [vmem:[%s21568_s21 + $0x450] sm:$0xff] }
 0x2cc   : > { %20071 = vmatprep.mubr.msk.f32.mxu0 %vm591_vm3, %v23495_v42  ;;  %v23848_v42 = vld [vmem:[%s21568_s21 + $0x470] sm:$0xff] }
 0x2ce   : > { %19188 = vmatmul.mubr.msk.f32.gmra.mrb[90].mxu1 %vm591_vm3, %v23817_v62 }
 0x2cf   : > { %20072 = vmatmul.mubr.msk.f32.gmra.mrb[26].mxu0 %vm591_vm3, %v23499_v19  ;;  %19190 = vmatprep.mubr.msk.f32.mxu1 %vm591_vm3, %v23822_v22  ;;  %v15764_v19 = vld [vmem:[%s21568_s21 + $0x458] sm:$0xff] }
 0x2d0   : > { %20074 = vmatprep.mubr.msk.f32.mxu0 %vm591_vm3, %v23508_v7  ;;  %v23851_v7 = vld [vmem:[%s21568_s21 + $0x1e8] sm:$0xff] }
 0x2d1   : > { %25471 = vst [vmem:[#allocation29_spill] sm:$0xff] %v23851_v7 }
 0x2d2   : > { %19191 = vmatmul.mubr.msk.f32.gmra.mrb[92].mxu1 %vm591_vm3, %v23831_v48 }
 0x2d3   : > { %20075 = vmatmul.mubr.msk.f32.gmra.mrb[28].mxu0 %vm591_vm3, %v23513_v11  ;;  %19193 = vmatprep.mubr.msk.f32.mxu1 %vm591_vm3, %v23836_v52  ;;  %v23859_v11 = vld [vmem:[%s21568_s21 + $0x478] sm:$0xff] }
 0x2d4   : > { %20077 = vmatprep.mubr.msk.f32.mxu0 %vm591_vm3, %v23522_v45  ;;  %v23864_v45 = vld [vmem:[%s21568_s21 + $0x480] sm:$0xff] }
 0x2d6   : > { %19194 = vmatmul.mubr.msk.f32.gmra.mrb[94].mxu1 %vm591_vm3, %v15764_v19  ;;  %v23873_v19 = vld [vmem:[%s21568_s21 + $0x488] sm:$0xff] }
 0x2d7   : > { %20078 = vmatmul.mubr.msk.f32.gmra.mrb[30].mxu0 %vm591_vm3, %v23527_v12  ;;  %19196 = vmatprep.mubr.msk.f32.mxu1 %vm591_vm3, %v23848_v42  ;;  %v23878_v12 = vld [vmem:[%s21568_s21 + $0x490] sm:$0xff] }
 0x2d8   : > { %20080 = vmatprep.mubr.msk.f32.mxu0 %vm591_vm3, %v23851_v7  ;;  %v23892_v7 = vld [vmem:[%s21568_s21 + $0x4a0] sm:$0xff] }
 0x2da   : > { %19197 = vmatmul.mubr.msk.f32.gmra.mrb[96].mxu1 %vm591_vm3, %v23859_v11 }
 0x2db   : > { %20081 = vmatmul.mubr.msk.f32.gmra.mrb[32].mxu0 %vm591_vm3, %v23539_v56  ;;  %19199 = vmatprep.mubr.msk.f32.mxu1 %vm591_vm3, %v23864_v45  ;;  %v23887_v56 = vld [vmem:[%s21568_s21 + $0x498] sm:$0xff] }
 0x2dc   : > { %20083 = vmatprep.mubr.msk.f32.mxu0 %vm591_vm3, %v23548_v25  ;;  %v23904_v25 = vld [vmem:[%s21568_s21 + $0x4c0] sm:$0xff] }
 0x2de   : > { %19200 = vmatmul.mubr.msk.f32.gmra.mrb[98].mxu1 %vm591_vm3, %v23873_v19 }
 0x2df   : > { %20084 = vmatmul.mubr.msk.f32.gmra.mrb[34].mxu0 %vm591_vm3, %v23553_v44  ;;  %19202 = vmatprep.mubr.msk.f32.mxu1 %vm591_vm3, %v23878_v12  ;;  %v15772_v44 = vld [vmem:[%s21568_s21 + $0x4a8] sm:$0xff] }
 0x2e0   : > { %20086 = vmatprep.mubr.msk.f32.mxu0 %vm591_vm3, %v23561_v35  ;;  %v23907_v35 = vld [vmem:[%s21568_s21 + $0x238] sm:$0xff] }
 0x2e1   : > { %25472 = vst [vmem:[#allocation30_spill] sm:$0xff] %v23907_v35 }
 0x2e2   : > { %19203 = vmatmul.mubr.msk.f32.gmra.mrb[100].mxu1 %vm591_vm3, %v23887_v56 }
 0x2e3   : > { %20087 = vmatmul.mubr.msk.f32.gmra.mrb[36].mxu0 %vm591_vm3, %v23566_v28  ;;  %19205 = vmatprep.mubr.msk.f32.mxu1 %vm591_vm3, %v23892_v7  ;;  %v23915_v28 = vld [vmem:[%s21568_s21 + $0x4c8] sm:$0xff] }
 0x2e4   : > { %20089 = vmatprep.mubr.msk.f32.mxu0 %vm591_vm3, %v23575_v53  ;;  %v23920_v53 = vld [vmem:[%s21568_s21 + $0x4d0] sm:$0xff] }
 0x2e6   : > { %19206 = vmatmul.mubr.msk.f32.gmra.mrb[102].mxu1 %vm591_vm3, %v15772_v44  ;;  %v23929_v44 = vld [vmem:[%s21568_s21 + $0x4d8] sm:$0xff] }
 0x2e7   : > { %20090 = vmatmul.mubr.msk.f32.gmra.mrb[38].mxu0 %vm591_vm3, %v23580_v32  ;;  %19208 = vmatprep.mubr.msk.f32.mxu1 %vm591_vm3, %v23904_v25  ;;  %v23934_v32 = vld [vmem:[%s21568_s21 + $0x4e0] sm:$0xff] }
 0x2e8   : > { %20092 = vmatprep.mubr.msk.f32.mxu0 %vm591_vm3, %v23907_v35  ;;  %v23960_v35 = vld [vmem:[%s21568_s21 + $0x510] sm:$0xff] }
 0x2e9   : > { %25474 = vst [vmem:[#allocation32_spill] sm:$0xff] %v23960_v35 }
 0x2ea   : > { %19209 = vmatmul.mubr.msk.f32.gmra.mrb[104].mxu1 %vm591_vm3, %v23915_v28 }
 0x2eb   : > { %20093 = vmatmul.mubr.msk.f32.gmra.mrb[40].mxu0 %vm591_vm3, %v23592_v9  ;;  %19211 = vmatprep.mubr.msk.f32.mxu1 %vm591_vm3, %v23920_v53  ;;  %v23943_v9 = vld [vmem:[%s21568_s21 + $0x4e8] sm:$0xff] }
 0x2ec   : > { %20095 = vmatprep.mubr.msk.f32.mxu0 %vm591_vm3, %v23601_v40  ;;  %v23948_v40 = vld [vmem:[%s21568_s21 + $0x4f0] sm:$0xff] }
 0x2ed   : > { %25473 = vst [vmem:[#allocation31_spill] sm:$0xff] %v23948_v40 }
 0x2ee   : > { %19212 = vmatmul.mubr.msk.f32.gmra.mrb[106].mxu1 %vm591_vm3, %v23929_v44 }
 0x2ef   : > { %20096 = vmatmul.mubr.msk.f32.gmra.mrb[42].mxu0 %vm591_vm3, %v23606_v13  ;;  %19214 = vmatprep.mubr.msk.f32.mxu1 %vm591_vm3, %v23934_v32  ;;  %v15780_v13 = vld [vmem:[%s21568_s21 + $0x4f8] sm:$0xff] }
 0x2f0   : > { %20098 = vmatprep.mubr.msk.f32.mxu0 %vm591_vm3, %v23615_v27  ;;  %v23963_v27 = vld [vmem:[%s21568_s21 + $0x288] sm:$0xff] }
 0x2f1   : > { %25475 = vst [vmem:[#allocation33_spill] sm:$0xff] %v23963_v27 }
 0x2f2   : > { %19215 = vmatmul.mubr.msk.f32.gmra.mrb[108].mxu1 %vm591_vm3, %v23943_v9 }
 0x2f3   : > { %20099 = vmatmul.mubr.msk.f32.gmra.mrb[44].mxu0 %vm591_vm3, %v23620_v47  ;;  %19217 = vmatprep.mubr.msk.f32.mxu1 %vm591_vm3, %v23948_v40  ;;  %v23971_v47 = vld [vmem:[%s21568_s21 + $0x518] sm:$0xff] }
 0x2f4   : > { %20101 = vmatprep.mubr.msk.f32.mxu0 %vm591_vm3, %v23629_v38  ;;  %25476 = vst [vmem:[#allocation34_spill] sm:$0xff] %v23971_v47  ;;  %v23976_v38 = vld [vmem:[%s21568_s21 + $0x290] sm:$0xff]  ;;  %v23982_v40 = vld [vmem:[%s21568_s21 + $0x298] sm:$0xff] }
 0x2f5   : > { %25477 = vst [vmem:[#allocation35_spill] sm:$0xff] %v23976_v38  ;;  %25479 = vst [vmem:[#allocation37_spill] sm:$0xff] %v23982_v40 }
 0x2f6   : > { %19218 = vmatmul.mubr.msk.f32.gmra.mrb[110].mxu1 %vm591_vm3, %v15780_v13  ;;  %v23991_v13 = vld [vmem:[%s21568_s21 + $0x528] sm:$0xff] }
 0x2f7   : > { %20102 = vmatmul.mubr.msk.f32.gmra.mrb[46].mxu0 %vm591_vm3, %v23634_v18  ;;  %19220 = vmatprep.mubr.msk.f32.mxu1 %vm591_vm3, %v23960_v35  ;;  %25480 = vst [vmem:[#allocation38_spill] sm:$0xff] %v23991_v13  ;;  %v23996_v18 = vld [vmem:[%s21568_s21 + $0x2a0] sm:$0xff]  ;;  %v24002_v35 = vld [vmem:[%s21568_s21 + $0x2a8] sm:$0xff] }
 0x2f8   : > { %20104 = vmatprep.mubr.msk.f32.mxu0 %vm591_vm3, %v23963_v27  ;;  %25481 = vst [vmem:[#allocation39_spill] sm:$0xff] %v23996_v18  ;;  %v23999_v27 = vld [vmem:[%s21568_s21 + $0x530] sm:$0xff]  ;;  %25483 = vst [vmem:[#allocation41_spill] sm:$0xff] %v24002_v35 }
 0x2f9   : > { %25482 = vst [vmem:[#allocation40_spill] sm:$0xff] %v23999_v27 }
 0x2fa   : > { %19221 = vmatmul.mubr.msk.f32.gmra.mrb[112].mxu1 %vm591_vm3, %v23971_v47  ;;  %v24022_v47 = vld [vmem:[%s21568_s21 + $0x2b8] sm:$0xff] }
 0x2fb   : > { %20105 = vmatmul.mubr.msk.f32.gmra.mrb[48].mxu0 %vm591_vm3, %v23976_v38  ;;  %19223 = vmatprep.mubr.msk.f32.mxu1 %vm591_vm3, %v23979_v1  ;;  %v24011_v38 = vld [vmem:[%s21568_s21 + $0x538] sm:$0xff]  ;;  %v24019_v1 = vld [vmem:[%s21568_s21 + $0x540] sm:$0xff]  ;;  %25487 = vst [vmem:[#allocation45_spill] sm:$0xff] %v24022_v47 }
 0x2fc   : > { %20107 = vmatprep.mubr.msk.f32.mxu0 %vm591_vm3, %v23982_v40  ;;  %25484 = vst [vmem:[#allocation42_spill] sm:$0xff] %v24011_v38  ;;  %v24016_v40 = vld [vmem:[%s21568_s21 + $0x2b0] sm:$0xff]  ;;  %25486 = vst [vmem:[#allocation44_spill] sm:$0xff] %v24019_v1 }
 0x2fd   : > { %25485 = vst [vmem:[#allocation43_spill] sm:$0xff] %v24016_v40 }
 0x2fe   : > { %19224 = vmatmul.mubr.msk.f32.gmra.mrb[114].mxu1 %vm591_vm3, %v23991_v13  ;;  %v17020_v13 = vld [vmem:[%s21568_s21 + $0x2d8] sm:$0xff] }
 0x2ff   : > { %20108 = vmatmul.mubr.msk.f32.gmra.mrb[50].mxu0 %vm591_vm3, %v23996_v18  ;;  %19226 = vmatprep.mubr.msk.f32.mxu1 %vm591_vm3, %v23999_v27  ;;  %v15788_v18 = vld [vmem:[%s21568_s21 + $0x548] sm:$0xff]  ;;  %v24035_v27 = vld [vmem:[%s21568_s21 + $0x560] sm:$0xff] }
 0x300   : > { %20110 = vmatprep.mubr.msk.f32.mxu0 %vm591_vm3, %v24002_v35  ;;  %v17019_v35 = vld [vmem:[%s21568_s21 + $0x2c0] sm:$0xff]  ;;  %25488 = vst [vmem:[#allocation46_spill] sm:$0xff] %v24035_v27 }
 0x302   : > { %19227 = vmatmul.mubr.msk.f32.gmra.mrb[116].mxu1 %vm591_vm3, %v24011_v38  ;;  %v17022_v38 = vld [vmem:[%s21568_s21 + $0x2e8] sm:$0xff] }
 0x303   : > { %20111 = vmatmul.mubr.msk.f32.gmra.mrb[52].mxu0 %vm591_vm3, %v24016_v40  ;;  %19229 = vmatprep.mubr.msk.f32.mxu1 %vm591_vm3, %v24019_v1  ;;  %v24043_v40 = vld [vmem:[%s21568_s21 + $0x568] sm:$0xff]  ;;  %v24048_v1 = vld [vmem:[%s21568_s21 + $0x570] sm:$0xff] }
 0x304   : > { %20113 = vmatprep.mubr.msk.f32.mxu0 %vm591_vm3, %v24022_v47  ;;  %25489 = vst [vmem:[#allocation47_spill] sm:$0xff] %v24043_v40  ;;  %v17021_v47 = vld [vmem:[%s21568_s21 + $0x2e0] sm:$0xff]  ;;  %25490 = vst [vmem:[#allocation48_spill] sm:$0xff] %v24048_v1 }
 0x306   : > { %19230 = vmatmul.mubr.msk.f32.gmra.mrb[118].mxu1 %vm591_vm3, %v15788_v18  ;;  %v24062_v18 = vld [vmem:[%s21568_s21 + $0x580] sm:$0xff] }
 0x307   : > { %20114 = vmatmul.mubr.msk.f32.gmra.mrb[54].mxu0 %vm591_vm3, %v17019_v35  ;;  %19232 = vmatprep.mubr.msk.f32.mxu1 %vm591_vm3, %v24035_v27  ;;  %v24057_v35 = vld [vmem:[%s21568_s21 + $0x578] sm:$0xff]  ;;  %25492 = vst [vmem:[#allocation50_spill] sm:$0xff] %v24062_v18 }
 0x308   : > { %20116 = vmatprep.mubr.msk.f32.mxu0 %vm591_vm3, %v17020_v13  ;;  %25491 = vst [vmem:[#allocation49_spill] sm:$0xff] %v24057_v35  ;;  %v17023_v13 = vld [vmem:[%s21568_s21 + $0x2f0] sm:$0xff]  ;;  %v17024_v27 = vld [vmem:[%s21568_s21 + $0x2f8] sm:$0xff] }
 0x30a   : > { %19233 = vmatmul.mubr.msk.f32.gmra.mrb[120].mxu1 %vm591_vm3, %v24043_v40  ;;  %v17026_v40 = vld [vmem:[%s21568_s21 + $0x308] sm:$0xff] }
 0x30b   : > { %20117 = vmatmul.mubr.msk.f32.gmra.mrb[56].mxu0 %vm591_vm3, %v17021_v47  ;;  %19235 = vmatprep.mubr.msk.f32.mxu1 %vm591_vm3, %v24048_v1  ;;  %v24071_v47 = vld [vmem:[%s21568_s21 + $0x588] sm:$0xff]  ;;  %v24076_v1 = vld [vmem:[%s21568_s21 + $0x590] sm:$0xff] }
 0x30c   : > { %20119 = vmatprep.mubr.msk.f32.mxu0 %vm591_vm3, %v17022_v38  ;;  %v17025_v38 = vld [vmem:[%s21568_s21 + $0x300] sm:$0xff] }
 0x30e   : > { %19236 = vmatmul.mubr.msk.f32.gmra.mrb[122].mxu1 %vm591_vm3, %v24057_v35  ;;  %v15928_v35 = vld [vmem:[%s21568_s21 + $0x50] sm:$0xff] }
 0x30f   : > { %20120 = vmatmul.mubr.msk.f32.gmra.mrb[58].mxu0 %vm591_vm3, %v17023_v13  ;;  %19238 = vmatprep.mubr.msk.f32.mxu1 %vm591_vm3, %v24062_v18  ;;  %v15796_v13 = vld [vmem:[%s21568_s21 + $0x598] sm:$0xff]  ;;  %v17027_v18 = vld [vmem:[%s21568_s21 + $0x310] sm:$0xff] }
 0x310   : > { %20122 = vmatprep.mubr.msk.f32.mxu0 %vm591_vm3, %v17024_v27  ;;  %v15929_v27 = vld [vmem:[%s21568_s21 + $0x58] sm:$0xff] }
 0x312   : > { %19239 = vmatmul.mubr.msk.f32.gmra.mrb[124].mxu1 %vm591_vm3, %v24071_v47 }
 0x313   : > { %20123 = vmatmul.mubr.msk.f32.gmra.mrb[60].mxu0 %vm591_vm3, %v17025_v38  ;;  %19241 = vmatprep.mubr.msk.f32.mxu1 %vm591_vm3, %v24076_v1  ;;  %v25517_v38 = vld [vmem:[#allocation14_spill] sm:$0xff] }
 0x314   : > { %20125 = vmatprep.mubr.msk.f32.mxu0 %vm591_vm3, %v17026_v40  ;;  %v25510_v40 = vld [vmem:[#allocation46_spill] sm:$0xff] }
 0x316   : > { %19242 = vmatmul.mubr.msk.f32.gmra.mrb[126].mxu1 %vm591_vm3, %v15796_v13  ;;  %v25518_v13 = vld [vmem:[#allocation50_spill] sm:$0xff] }
 0x317   : > { %20126 = vmatmul.mubr.msk.f32.gmra.mrb[62].mxu0 %vm591_vm3, %v17027_v18  ;;  %19248 = vmatprep.mubr.msk.f32.mxu1 %vm591_vm3, %v15928_v35  ;;  %v25515_v35 = vld [vmem:[#allocation13_spill] sm:$0xff] }
 0x318   : > { %20128 = vmatprep.mubr.msk.f32.mxu0 %vm591_vm3, %v24089_v50  ;;  %v25516_v18 = vld [vmem:[#allocation49_spill] sm:$0xff] }
 0x31a   : > { %19249 = vmatmul.mubr.msk.f32.vlgmr.msra.gmra.mrb[0].mxu1 %vm591_vm3, %v15929_v27  ;;  %v25519_v27 = vld [vmem:[#allocation15_spill] sm:$0xff] }
 0x31b   : > { %20129 = vmatmul.mubr.msk.f32.gmra.mrb[64].mxu0 %vm591_vm3, %v23736_v29  ;;  %20475 = vmatpush3.bf16.msk.msra.mxu1 %vm21558_vm2, %v25443_v54  ;;  %v24125_v54 = vld [vmem:[%s21568_s21 + $0x418] sm:$0xff] }
 0x31c   : > { %19251 = vmatprep.mubr.msk.f32.mxu1 %vm591_vm3, %v23277_v16  ;;  %20131 = vmatprep.mubr.msk.f32.mxu0 %vm591_vm3, %v23747_v21  ;;  %v15944_v16 = vld [vmem:[%s21568_s21 + $0xf0] sm:$0xff] }
 0x31e   : > { %19252 = vmatmul.mubr.msk.f32.gmra.mrb[2].mxu1 %vm591_vm3, %v23286_v6  ;;  %v24160_v6 = vld [vmem:[%s21568_s21 + $0x468] sm:$0xff] }
 0x31f   : > { %20132 = vmatmul.mubr.msk.f32.gmra.mrb[66].mxu0 %vm591_vm3, %v23752_v60  ;;  %19254 = vmatprep.mubr.msk.f32.mxu1 %vm591_vm3, %v23290_v58  ;;  %v15952_v58 = vld [vmem:[%s21568_s21 + $0x140] sm:$0xff] }
 0x320   : > { %20134 = vmatprep.mubr.msk.f32.mxu0 %vm591_vm3, %v23761_v41 }
 0x322   : > { %19255 = vmatmul.mubr.msk.f32.gmra.mrb[4].mxu1 %vm591_vm3, %v23299_v51  ;;  %v24195_v51 = vld [vmem:[%s21568_s21 + $0x4b8] sm:$0xff] }
 0x323   : > { %20135 = vmatmul.mubr.msk.f32.gmra.mrb[68].mxu0 %vm591_vm3, %v23766_v36  ;;  %19257 = vmatprep.mubr.msk.f32.mxu1 %vm591_vm3, %v23304_v59  ;;  %v15960_v59 = vld [vmem:[%s21568_s21 + $0x190] sm:$0xff] }
 0x324   : > { %20137 = vmatprep.mubr.msk.f32.mxu0 %vm591_vm3, %v23775_v33 }
 0x326   : > { %19258 = vmatmul.mubr.msk.f32.gmra.mrb[6].mxu1 %vm591_vm3, %v23313_v63  ;;  %v24230_v63 = vld [vmem:[%s21568_s21 + $0x508] sm:$0xff] }
 0x327   : > { %20138 = vmatmul.mubr.msk.f32.gmra.mrb[70].mxu0 %vm591_vm3, %v23780_v2  ;;  %19260 = vmatprep.mubr.msk.f32.mxu1 %vm591_vm3, %v15936_v0  ;;  %v25514_v2 = vld [vmem:[#allocation48_spill] sm:$0xff]  ;;  %v15976_v0 = vld [vmem:[%s21568_s21 + $0x230] sm:$0xff] }
 0x328   : > { %20140 = vmatprep.mubr.msk.f32.mxu0 %vm591_vm3, %v24125_v54 }
 0x32a   : > { %19261 = vmatmul.mubr.msk.f32.gmra.mrb[8].mxu1 %vm591_vm3, %v23647_v55  ;;  %v25511_v55 = vld [vmem:[#allocation11_spill] sm:$0xff] }
 0x32b   : > { %20141 = vmatmul.mubr.msk.f32.gmra.mrb[72].mxu0 %vm591_vm3, %v23792_v49  ;;  %19263 = vmatprep.mubr.msk.f32.mxu1 %vm591_vm3, %v23327_v39  ;;  %v25493_v39 = vld [vmem:[#allocation3_spill] sm:$0xff] }
 0x32c   : > { %20143 = vmatprep.mubr.msk.f32.mxu0 %vm591_vm3, %v23803_v8 }
 0x32e   : > { %19264 = vmatmul.mubr.msk.f32.gmra.mrb[10].mxu1 %vm591_vm3, %v23336_v3  ;;  %v25494_v3 = vld [vmem:[#allocation31_spill] sm:$0xff] }
 0x32f   : > { %20144 = vmatmul.mubr.msk.f32.gmra.mrb[74].mxu0 %vm591_vm3, %v23808_v15  ;;  %19266 = vmatprep.mubr.msk.f32.mxu1 %vm591_vm3, %v23340_v4  ;;  %v25495_v4 = vld [vmem:[#allocation28_spill] sm:$0xff] }
 0x330   : > { %20146 = vmatprep.mubr.msk.f32.mxu0 %vm591_vm3, %v23817_v62 }
 0x332   : > { %19267 = vmatmul.mubr.msk.f32.gmra.mrb[12].mxu1 %vm591_vm3, %v23349_v37  ;;  %v25496_v37 = vld [vmem:[#allocation32_spill] sm:$0xff] }
 0x333   : > { %20147 = vmatmul.mubr.msk.f32.gmra.mrb[76].mxu0 %vm591_vm3, %v23822_v22  ;;  %19269 = vmatprep.mubr.msk.f32.mxu1 %vm591_vm3, %v23354_v46  ;;  %v25497_v46 = vld [vmem:[#allocation5_spill] sm:$0xff] }
 0x334   : > { %20149 = vmatprep.mubr.msk.f32.mxu0 %vm591_vm3, %v23831_v48 }
 0x336   : > { %19270 = vmatmul.mubr.msk.f32.gmra.mrb[14].mxu1 %vm591_vm3, %v23363_v10  ;;  %v25498_v10 = vld [vmem:[#allocation34_spill] sm:$0xff] }
 0x337   : > { %20150 = vmatmul.mubr.msk.f32.gmra.mrb[78].mxu0 %vm591_vm3, %v23836_v52  ;;  %19272 = vmatprep.mubr.msk.f32.mxu1 %vm591_vm3, %v15944_v16  ;;  %v25508_v52 = vld [vmem:[#allocation44_spill] sm:$0xff] }
 0x338   : > { %20152 = vmatprep.mubr.msk.f32.mxu0 %vm591_vm3, %v24160_v6  ;;  %v24300_v16 = vld [vmem:[%s21568_s21 + $0x5a8] sm:$0xff] }
 0x33a   : > { %19273 = vmatmul.mubr.msk.f32.gmra.mrb[16].mxu1 %vm591_vm3, %v23686_v31  ;;  %v25512_v31 = vld [vmem:[#allocation47_spill] sm:$0xff] }
 0x33b   : > { %20153 = vmatmul.mubr.msk.f32.gmra.mrb[80].mxu0 %vm591_vm3, %v23848_v42  ;;  %19275 = vmatprep.mubr.msk.f32.mxu1 %vm591_vm3, %v23380_v20  ;;  %v25499_v20 = vld [vmem:[#allocation6_spill] sm:$0xff] }
 0x33c   : > { %20155 = vmatprep.mubr.msk.f32.mxu0 %vm591_vm3, %v23859_v11 }
 0x33e   : > { %19276 = vmatmul.mubr.msk.f32.gmra.mrb[18].mxu1 %vm591_vm3, %v23389_v14  ;;  %v25500_v14 = vld [vmem:[#allocation36_spill] sm:$0xff] }
 0x33f   : > { %20156 = vmatmul.mubr.msk.f32.gmra.mrb[82].mxu0 %vm591_vm3, %v23864_v45  ;;  %19278 = vmatprep.mubr.msk.f32.mxu1 %vm591_vm3, %v23393_v17  ;;  %v25501_v17 = vld [vmem:[#allocation7_spill] sm:$0xff] }
 0x340   : > { %20158 = vmatprep.mubr.msk.f32.mxu0 %vm591_vm3, %v23873_v19 }
 0x342   : > { %19279 = vmatmul.mubr.msk.f32.gmra.mrb[20].mxu1 %vm591_vm3, %v23402_v26  ;;  %v25502_v26 = vld [vmem:[#allocation38_spill] sm:$0xff] }
 0x343   : > { %20159 = vmatmul.mubr.msk.f32.gmra.mrb[84].mxu0 %vm591_vm3, %v23878_v12  ;;  %19281 = vmatprep.mubr.msk.f32.mxu1 %vm591_vm3, %v23407_v5  ;;  %v25503_v5 = vld [vmem:[#allocation8_spill] sm:$0xff] }
 0x344   : > { %20161 = vmatprep.mubr.msk.f32.mxu0 %vm591_vm3, %v23887_v56 }
 0x346   : > { %19282 = vmatmul.mubr.msk.f32.gmra.mrb[22].mxu1 %vm591_vm3, %v23416_v23  ;;  %v25504_v23 = vld [vmem:[#allocation40_spill] sm:$0xff] }
 0x347   : > { %20162 = vmatmul.mubr.msk.f32.gmra.mrb[86].mxu0 %vm591_vm3, %v23892_v7  ;;  %19284 = vmatprep.mubr.msk.f32.mxu1 %vm591_vm3, %v15952_v58  ;;  %v25509_v7 = vld [vmem:[#allocation29_spill] sm:$0xff]  ;;  %v25520_v58 = vld [vmem:[#allocation16_spill] sm:$0xff] }
 0x348   : > { %20164 = vmatprep.mubr.msk.f32.mxu0 %vm591_vm3, %v24195_v51 }
 0x34a   : > { %19285 = vmatmul.mubr.msk.f32.gmra.mrb[24].mxu1 %vm591_vm3, %v23739_v43  ;;  %v25513_v43 = vld [vmem:[#allocation12_spill] sm:$0xff] }
 0x34b   : > { %20165 = vmatmul.mubr.msk.f32.gmra.mrb[88].mxu0 %vm591_vm3, %v23904_v25  ;;  %19287 = vmatprep.mubr.msk.f32.mxu1 %vm591_vm3, %v23433_v24  ;;  %v25505_v24 = vld [vmem:[#allocation9_spill] sm:$0xff] }
 0x34c   : > { %20167 = vmatprep.mubr.msk.f32.mxu0 %vm591_vm3, %v23915_v28 }
 0x34e   : > { %19288 = vmatmul.mubr.msk.f32.gmra.mrb[26].mxu1 %vm591_vm3, %v23442_v30  ;;  %v25506_v30 = vld [vmem:[#allocation42_spill] sm:$0xff] }
 0x34f   : > { %20168 = vmatmul.mubr.msk.f32.gmra.mrb[90].mxu0 %vm591_vm3, %v23920_v53  ;;  %19290 = vmatprep.mubr.msk.f32.mxu1 %vm591_vm3, %v23446_v61  ;;  %v15968_v61 = vld [vmem:[%s21568_s21 + $0x1e0] sm:$0xff] }
 0x350   : > { %20170 = vmatprep.mubr.msk.f32.mxu0 %vm591_vm3, %v23929_v44 }
 0x352   : > { %19291 = vmatmul.mubr.msk.f32.gmra.mrb[28].mxu1 %vm591_vm3, %v23455_v34  ;;  %v24265_v34 = vld [vmem:[%s21568_s21 + $0x558] sm:$0xff] }
 0x353   : > { %20171 = vmatmul.mubr.msk.f32.gmra.mrb[92].mxu0 %vm591_vm3, %v23934_v32  ;;  %19293 = vmatprep.mubr.msk.f32.mxu1 %vm591_vm3, %v23460_v57  ;;  %v25507_v57 = vld [vmem:[#allocation10_spill] sm:$0xff] }
 0x354   : > { %20173 = vmatprep.mubr.msk.f32.mxu0 %vm591_vm3, %v23943_v9 }
 0x356   : > { %19294 = vmatmul.mubr.msk.f32.gmra.mrb[30].mxu1 %vm591_vm3, %v25493_v39  ;;  %v24313_v39 = vld [vmem:[%s21568_s21 + $0x5b8] sm:$0xff] }
 0x357   : > { %20174 = vmatmul.mubr.msk.f32.gmra.mrb[94].mxu0 %vm591_vm3, %v25494_v3  ;;  %19296 = vmatprep.mubr.msk.f32.mxu1 %vm591_vm3, %v15960_v59  ;;  %v24310_v59 = vld [vmem:[%s21568_s21 + $0x5b0] sm:$0xff]  ;;  %v25521_v3 = vld [vmem:[#allocation30_spill] sm:$0xff] }
 0x358   : > { %20176 = vmatprep.mubr.msk.f32.mxu0 %vm591_vm3, %v24230_v63 }
 0x35a   : > { %19297 = vmatmul.mubr.msk.f32.gmra.mrb[32].mxu1 %vm591_vm3, %v25495_v4  ;;  %v25522_v4 = vld [vmem:[#allocation17_spill] sm:$0xff] }
 0x35b   : > { %20177 = vmatmul.mubr.msk.f32.gmra.mrb[96].mxu0 %vm591_vm3, %v25496_v37  ;;  %19299 = vmatprep.mubr.msk.f32.mxu1 %vm591_vm3, %v25497_v46  ;;  %v24327_v46 = vld [vmem:[%s21568_s21 + $0x5c8] sm:$0xff] }
 0x35c   : > { %20179 = vmatprep.mubr.msk.f32.mxu0 %vm591_vm3, %v25498_v10 }
 0x35e   : > { %19300 = vmatmul.mubr.msk.f32.gmra.mrb[34].mxu1 %vm591_vm3, %v25499_v20  ;;  %v25523_v20 = vld [vmem:[#allocation4_spill] sm:$0xff] }
 0x35f   : > { %20180 = vmatmul.mubr.msk.f32.gmra.mrb[98].mxu0 %vm591_vm3, %v25500_v14  ;;  %19302 = vmatprep.mubr.msk.f32.mxu1 %vm591_vm3, %v25501_v17  ;;  %v25524_v17 = vld [vmem:[#allocation18_spill] sm:$0xff] }
 0x360   : > { %20182 = vmatprep.mubr.msk.f32.mxu0 %vm591_vm3, %v25502_v26 }
 0x362   : > { %19303 = vmatmul.mubr.msk.f32.gmra.mrb[36].mxu1 %vm591_vm3, %v25503_v5  ;;  %v24338_v5 = vld [vmem:[%s21568_s21 + $0x5d0] sm:$0xff] }
 0x363   : > { %20183 = vmatmul.mubr.msk.f32.gmra.mrb[100].mxu0 %vm591_vm3, %v25504_v23  ;;  %19305 = vmatprep.mubr.msk.f32.mxu1 %vm591_vm3, %v25505_v24  ;;  %v24341_v24 = vld [vmem:[%s21568_s21 + $0x5d8] sm:$0xff] }
 0x364   : > { %20185 = vmatprep.mubr.msk.f32.mxu0 %vm591_vm3, %v25506_v30 }
 0x366   : > { %19306 = vmatmul.mubr.msk.f32.gmra.mrb[38].mxu1 %vm591_vm3, %v25507_v57  ;;  %v25526_v57 = vld [vmem:[#allocation20_spill] sm:$0xff] }
 0x367   : > { %20186 = vmatmul.mubr.msk.f32.gmra.mrb[102].mxu0 %vm591_vm3, %v25508_v52  ;;  %19308 = vmatprep.mubr.msk.f32.mxu1 %vm591_vm3, %v15968_v61  ;;  %v25525_v61 = vld [vmem:[#allocation19_spill] sm:$0xff] }
 0x368   : > { %20188 = vmatprep.mubr.msk.f32.mxu0 %vm591_vm3, %v24265_v34  ;;  %v17083_v52 = vld [vmem:[%s21568_s21 + $0x5e0] sm:$0xff] }
 0x36a   : > { %19309 = vmatmul.mubr.msk.f32.gmra.mrb[40].mxu1 %vm591_vm3, %v25509_v7  ;;  %v15984_v7 = vld [vmem:[%s21568_s21 + $0x280] sm:$0xff] }
 0x36b   : > { %20189 = vmatmul.mubr.msk.f32.gmra.mrb[104].mxu0 %vm591_vm3, %v25510_v40  ;;  %19311 = vmatprep.mubr.msk.f32.mxu1 %vm591_vm3, %v25511_v55  ;;  %v17084_v55 = vld [vmem:[%s21568_s21 + $0x5f8] sm:$0xff] }
 0x36c   : > { %20191 = vmatprep.mubr.msk.f32.mxu0 %vm591_vm3, %v25512_v31 }
 0x36e   : > { %19312 = vmatmul.mubr.msk.f32.gmra.mrb[42].mxu1 %vm591_vm3, %v25513_v43  ;;  %v25527_v43 = vld [vmem:[#allocation21_spill] sm:$0xff] }
 0x36f   : > { %20192 = vmatmul.mubr.msk.f32.gmra.mrb[106].mxu0 %vm591_vm3, %v25514_v2  ;;  %19314 = vmatprep.mubr.msk.f32.mxu1 %vm591_vm3, %v25515_v35  ;;  %v17085_v35 = vld [vmem:[%s21568_s21 + $0x600] sm:$0xff] }
 0x370   : > { %20194 = vmatprep.mubr.msk.f32.mxu0 %vm591_vm3, %v25516_v18 }
 0x372   : > { %19315 = vmatmul.mubr.msk.f32.gmra.mrb[44].mxu1 %vm591_vm3, %v25517_v38  ;;  %v17086_v38 = vld [vmem:[%s21568_s21 + $0x608] sm:$0xff] }
 0x373   : > { %20195 = vmatmul.mubr.msk.f32.gmra.mrb[108].mxu0 %vm591_vm3, %v25518_v13  ;;  %19317 = vmatprep.mubr.msk.f32.mxu1 %vm591_vm3, %v25519_v27  ;;  %v25528_v27 = vld [vmem:[#allocation33_spill] sm:$0xff] }
 0x374   : > { %20197 = vmatprep.mubr.msk.f32.mxu0 %vm591_vm3, %v24071_v47 }
 0x376   : > { %19318 = vmatmul.mubr.msk.f32.gmra.mrb[46].mxu1 %vm591_vm3, %v25520_v58  ;;  %v17087_v58 = vld [vmem:[%s21568_s21 + $0x610] sm:$0xff] }
 0x377   : > { %20198 = vmatmul.mubr.msk.f32.gmra.mrb[110].mxu0 %vm591_vm3, %v24076_v1  ;;  %19320 = vmatprep.mubr.msk.f32.mxu1 %vm591_vm3, %v15976_v0  ;;  %v24324_v1 = vld [vmem:[%s21568_s21 + $0x5c0] sm:$0xff] }
 0x378   : > { %20200 = vmatprep.mubr.msk.f32.mxu0 %vm591_vm3, %v24300_v16  ;;  %v25529_v0 = vld [vmem:[#allocation35_spill] sm:$0xff] }
 0x37a   : > { %19321 = vmatmul.mubr.msk.f32.gmra.mrb[48].mxu1 %vm591_vm3, %v25521_v3  ;;  %v17088_v3 = vld [vmem:[%s21568_s21 + $0x618] sm:$0xff] }
 0x37b   : > { %20201 = vmatmul.mubr.msk.f32.gmra.mrb[112].mxu0 %vm591_vm3, %v24310_v59  ;;  %19323 = vmatprep.mubr.msk.f32.mxu1 %vm591_vm3, %v25522_v4  ;;  %v25530_v4 = vld [vmem:[#allocation37_spill] sm:$0xff] }
 0x37c   : > { %20203 = vmatprep.mubr.msk.f32.mxu0 %vm591_vm3, %v24313_v39 }
 0x37e   : > { %19324 = vmatmul.mubr.msk.f32.gmra.mrb[50].mxu1 %vm591_vm3, %v25523_v20  ;;  %v25531_v20 = vld [vmem:[#allocation39_spill] sm:$0xff] }
 0x37f   : > { %20204 = vmatmul.mubr.msk.f32.gmra.mrb[114].mxu0 %vm591_vm3, %v24324_v1  ;;  %19326 = vmatprep.mubr.msk.f32.mxu1 %vm591_vm3, %v25524_v17  ;;  %v17089_v17 = vld [vmem:[%s21568_s21 + $0x620] sm:$0xff] }
 0x380   : > { %20206 = vmatprep.mubr.msk.f32.mxu0 %vm591_vm3, %v24327_v46 }
 0x382   : > { %19327 = vmatmul.mubr.msk.f32.gmra.mrb[52].mxu1 %vm591_vm3, %v25525_v61  ;;  %v17090_v61 = vld [vmem:[%s21568_s21 + $0x628] sm:$0xff] }
 0x383   : > { %20207 = vmatmul.mubr.msk.f32.gmra.mrb[116].mxu0 %vm591_vm3, %v24338_v5  ;;  %19329 = vmatprep.mubr.msk.f32.mxu1 %vm591_vm3, %v25526_v57  ;;  %v25532_v57 = vld [vmem:[#allocation41_spill] sm:$0xff] }
 0x384   : > { %20209 = vmatprep.mubr.msk.f32.mxu0 %vm591_vm3, %v24341_v24 }
 0x386   : > { %19330 = vmatmul.mubr.msk.f32.gmra.mrb[54].mxu1 %vm591_vm3, %v25527_v43  ;;  %v17223_v43 = vld [vmem:[%s21568_s21 + $0xb0] sm:$0xff] }
 0x387   : > { %20210 = vmatmul.mubr.msk.f32.gmra.mrb[118].mxu0 %vm591_vm3, %v17083_v52  ;;  %19332 = vmatprep.mubr.msk.f32.mxu1 %vm591_vm3, %v15984_v7  ;;  %v25533_v52 = vld [vmem:[#allocation43_spill] sm:$0xff]  ;;  %v17091_v7 = vld [vmem:[%s21568_s21 + $0x630] sm:$0xff] }
 0x388   : > { %20212 = vmatprep.mubr.msk.f32.mxu0 %vm591_vm3, %v17084_v55  ;;  %v15992_v55 = vld [vmem:[%s21568_s21 + $0x370] sm:$0xff] }
 0x38a   : > { %19333 = vmatmul.mubr.msk.f32.gmra.mrb[56].mxu1 %vm591_vm3, %v25528_v27  ;;  %v17224_v27 = vld [vmem:[%s21568_s21 + $0xb8] sm:$0xff] }
 0x38b   : > { %20213 = vmatmul.mubr.msk.f32.gmra.mrb[120].mxu0 %vm591_vm3, %v17085_v35  ;;  %19335 = vmatprep.mubr.msk.f32.mxu1 %vm591_vm3, %v25529_v0  ;;  %v25534_v35 = vld [vmem:[#allocation45_spill] sm:$0xff]  ;;  %v17225_v0 = vld [vmem:[%s21568_s21 + $0xc0] sm:$0xff] }
 0x38c   : > { %20215 = vmatprep.mubr.msk.f32.mxu0 %vm591_vm3, %v17086_v38  ;;  %v24391_v38 = vld [vmem:[%s21568_s21 + $0x378] sm:$0xff] }
 0x38e   : > { %19336 = vmatmul.mubr.msk.f32.gmra.mrb[58].mxu1 %vm591_vm3, %v25530_v4  ;;  %v17227_v4 = vld [vmem:[%s21568_s21 + $0xd0] sm:$0xff] }
 0x38f   : > { %20216 = vmatmul.mubr.msk.f32.gmra.mrb[122].mxu0 %vm591_vm3, %v17087_v58  ;;  %19338 = vmatprep.mubr.msk.f32.mxu1 %vm591_vm3, %v25531_v20  ;;  %v25535_v58 = vld [vmem:[#allocation22_spill] sm:$0xff]  ;;  %v25536_v20 = vld [vmem:[#allocation23_spill] sm:$0xff] }
 0x390   : > { %20218 = vmatprep.mubr.msk.f32.mxu0 %vm591_vm3, %v17088_v3  ;;  %v17226_v3 = vld [vmem:[%s21568_s21 + $0xc8] sm:$0xff] }
 0x392   : > { %19339 = vmatmul.mubr.msk.f32.gmra.mrb[60].mxu1 %vm591_vm3, %v25532_v57  ;;  %v17229_v57 = vld [vmem:[%s21568_s21 + $0xe0] sm:$0xff] }
 0x393   : > { %20219 = vmatmul.mubr.msk.f32.gmra.mrb[124].mxu0 %vm591_vm3, %v17089_v17  ;;  %19341 = vmatprep.mubr.msk.f32.mxu1 %vm591_vm3, %v25533_v52  ;;  %v25537_v17 = vld [vmem:[#allocation24_spill] sm:$0xff]  ;;  %v25538_v52 = vld [vmem:[#allocation25_spill] sm:$0xff] }
 0x394   : > { %20221 = vmatprep.mubr.msk.f32.mxu0 %vm591_vm3, %v17090_v61  ;;  %v17228_v61 = vld [vmem:[%s21568_s21 + $0xd8] sm:$0xff] }
 0x396   : > { %19342 = vmatmul.mubr.msk.f32.gmra.mrb[62].mxu1 %vm591_vm3, %v25534_v35  ;;  %v17231_v35 = vld [vmem:[%s21568_s21 + $0x100] sm:$0xff] }
 0x397   : > { %20222 = vmatmul.mubr.msk.f32.gmra.mrb[126].mxu0 %vm591_vm3, %v17091_v7  ;;  %19344 = vmatprep.mubr.msk.f32.mxu1 %vm591_vm3, %v15992_v55  ;;  %v25539_v7 = vld [vmem:[#allocation26_spill] sm:$0xff]  ;;  %v17230_v55 = vld [vmem:[%s21568_s21 + $0xe8] sm:$0xff] }
 0x398   : > { %20228 = vmatprep.mubr.msk.f32.mxu0 %vm591_vm3, %v17223_v43  ;;  %v16000_v43 = vld [vmem:[%s21568_s21 + $0x3c0] sm:$0xff] }
 0x39a   : > { %19345 = vmatmul.mubr.msk.f32.gmra.mrb[64].mxu1 %vm591_vm3, %v24391_v38 }
 0x39b   : > { %20229 = vmatmul.mubr.msk.f32.vlgmr.msra.gmra.mrb[0].mxu0 %vm591_vm3, %v17224_v27  ;;  %19347 = vmatprep.mubr.msk.f32.mxu1 %vm591_vm3, %v25535_v58  ;;  %v25540_v27 = vld [vmem:[#allocation27_spill] sm:$0xff]  ;;  %v17233_v58 = vld [vmem:[%s21568_s21 + $0x110] sm:$0xff] }
 0x39c   : > { %20231 = vmatprep.mubr.msk.f32.mxu0 %vm591_vm3, %v17225_v0  ;;  %v17232_v0 = vld [vmem:[%s21568_s21 + $0x108] sm:$0xff] }
 0x39e   : > { %19348 = vmatmul.mubr.msk.f32.gmra.mrb[66].mxu1 %vm591_vm3, %v25536_v20  ;;  %v17237_v20 = vld [vmem:[%s21568_s21 + $0x130] sm:$0xff] }
 0x39f   : > { %20232 = vmatmul.mubr.msk.f32.gmra.mrb[2].mxu0 %vm591_vm3, %v17226_v3  ;;  %19350 = vmatprep.mubr.msk.f32.mxu1 %vm591_vm3, %v25537_v17  ;;  %v17234_v3 = vld [vmem:[%s21568_s21 + $0x118] sm:$0xff]  ;;  %v17241_v17 = vld [vmem:[%s21568_s21 + $0x160] sm:$0xff] }
 0x3a0   : > { %20234 = vmatprep.mubr.msk.f32.mxu0 %vm591_vm3, %v17227_v4  ;;  %v17235_v4 = vld [vmem:[%s21568_s21 + $0x120] sm:$0xff] }
 0x3a2   : > { %19351 = vmatmul.mubr.msk.f32.gmra.mrb[68].mxu1 %vm591_vm3, %v25538_v52  ;;  %v17253_v52 = vld [vmem:[%s21568_s21 + $0x1d0] sm:$0xff] }
 0x3a3   : > { %20235 = vmatmul.mubr.msk.f32.gmra.mrb[4].mxu0 %vm591_vm3, %v17228_v61  ;;  %19353 = vmatprep.mubr.msk.f32.mxu1 %vm591_vm3, %v25539_v7  ;;  %v17245_v61 = vld [vmem:[%s21568_s21 + $0x180] sm:$0xff] }
 0x3a4   : > { %20237 = vmatprep.mubr.msk.f32.mxu0 %vm591_vm3, %v17229_v57  ;;  %v17249_v57 = vld [vmem:[%s21568_s21 + $0x1b0] sm:$0xff]  ;;  %v17257_v7 = vld [vmem:[%s21568_s21 + $0x200] sm:$0xff] }
 0x3a6   : > { %19354 = vmatmul.mubr.msk.f32.gmra.mrb[70].mxu1 %vm591_vm3, %v25540_v27 }
 0x3a7   : > { %20238 = vmatmul.mubr.msk.f32.gmra.mrb[6].mxu0 %vm591_vm3, %v17230_v55  ;;  %19356 = vmatprep.mubr.msk.f32.mxu1 %vm591_vm3, %v16000_v43  ;;  %v17261_v55 = vld [vmem:[%s21568_s21 + $0x220] sm:$0xff]  ;;  %v17265_v43 = vld [vmem:[%s21568_s21 + $0x250] sm:$0xff] }
 0x3a8   : > { %20240 = vmatprep.mubr.msk.f32.mxu0 %vm591_vm3, %v17231_v35  ;;  %v17267_v35 = vld [vmem:[%s21568_s21 + $0x260] sm:$0xff] }
 0x3aa   : > { %19357 = vmatmul.mubr.msk.f32.gmra.mrb[72].mxu1 %vm591_vm3, %v24089_v50  ;;  %v17236_v50 = vld [vmem:[%s21568_s21 + $0x128] sm:$0xff] }
 0x3ab   : > { %20241 = vmatmul.mubr.msk.f32.gmra.mrb[8].mxu0 %vm591_vm3, %v17232_v0  ;;  %19359 = vmatprep.mubr.msk.f32.mxu1 %vm591_vm3, %v23736_v29  ;;  %v17238_v29 = vld [vmem:[%s21568_s21 + $0x138] sm:$0xff]  ;;  %v17269_v0 = vld [vmem:[%s21568_s21 + $0x270] sm:$0xff] }
 0x3ac   : > { %20243 = vmatprep.mubr.msk.f32.mxu0 %vm591_vm3, %v17233_v58 }
 0x3ae   : > { %19360 = vmatmul.mubr.msk.f32.gmra.mrb[74].mxu1 %vm591_vm3, %v23747_v21  ;;  %v16008_v21 = vld [vmem:[%s21568_s21 + $0x410] sm:$0xff] }
 0x3af   : > { %20244 = vmatmul.mubr.msk.f32.gmra.mrb[10].mxu0 %vm591_vm3, %v17234_v3  ;;  %19362 = vmatprep.mubr.msk.f32.mxu1 %vm591_vm3, %v23752_v60  ;;  %v17239_v60 = vld [vmem:[%s21568_s21 + $0x150] sm:$0xff] }
 0x3b0   : > { %20246 = vmatprep.mubr.msk.f32.mxu0 %vm591_vm3, %v17235_v4  ;;  %v17271_v4 = vld [vmem:[%s21568_s21 + $0x290] sm:$0xff] }
 0x3b2   : > { %19363 = vmatmul.mubr.msk.f32.gmra.mrb[76].mxu1 %vm591_vm3, %v23761_v41  ;;  %v17240_v41 = vld [vmem:[%s21568_s21 + $0x158] sm:$0xff] }
 0x3b3   : > { %20247 = vmatmul.mubr.msk.f32.gmra.mrb[12].mxu0 %vm591_vm3, %v17236_v50  ;;  %19365 = vmatprep.mubr.msk.f32.mxu1 %vm591_vm3, %v23766_v36  ;;  %v17242_v36 = vld [vmem:[%s21568_s21 + $0x168] sm:$0xff] }
 0x3b4   : > { %20249 = vmatprep.mubr.msk.f32.mxu0 %vm591_vm3, %v17237_v20  ;;  %v17273_v20 = vld [vmem:[%s21568_s21 + $0x2a0] sm:$0xff] }
 0x3b6   : > { %19366 = vmatmul.mubr.msk.f32.gmra.mrb[78].mxu1 %vm591_vm3, %v23775_v33  ;;  %v17243_v33 = vld [vmem:[%s21568_s21 + $0x170] sm:$0xff] }
 0x3b7   : > { %20250 = vmatmul.mubr.msk.f32.gmra.mrb[14].mxu0 %vm591_vm3, %v17238_v29  ;;  %19368 = vmatprep.mubr.msk.f32.mxu1 %vm591_vm3, %v16008_v21 }
 0x3b8   : > { %20252 = vmatprep.mubr.msk.f32.mxu0 %vm591_vm3, %v17239_v60  ;;  %v17275_v60 = vld [vmem:[%s21568_s21 + $0x2b0] sm:$0xff] }
 0x3ba   : > { %19369 = vmatmul.mubr.msk.f32.gmra.mrb[80].mxu1 %vm591_vm3, %v24125_v54  ;;  %v17244_v54 = vld [vmem:[%s21568_s21 + $0x178] sm:$0xff] }
 0x3bb   : > { %20253 = vmatmul.mubr.msk.f32.gmra.mrb[16].mxu0 %vm591_vm3, %v17240_v41  ;;  %19371 = vmatprep.mubr.msk.f32.mxu1 %vm591_vm3, %v23792_v49  ;;  %v16016_v49 = vld [vmem:[%s21568_s21 + $0x460] sm:$0xff] }
 0x3bc   : > { %20255 = vmatprep.mubr.msk.f32.mxu0 %vm591_vm3, %v17241_v17  ;;  %v17277_v17 = vld [vmem:[%s21568_s21 + $0x2c0] sm:$0xff] }
 0x3be   : > { %19372 = vmatmul.mubr.msk.f32.gmra.mrb[82].mxu1 %vm591_vm3, %v23803_v8  ;;  %v17246_v8 = vld [vmem:[%s21568_s21 + $0x188] sm:$0xff] }
 0x3bf   : > { %20256 = vmatmul.mubr.msk.f32.gmra.mrb[18].mxu0 %vm591_vm3, %v17242_v36  ;;  %19374 = vmatprep.mubr.msk.f32.mxu1 %vm591_vm3, %v23808_v15  ;;  %v17247_v15 = vld [vmem:[%s21568_s21 + $0x1a0] sm:$0xff] }
 0x3c0   : > { %20258 = vmatprep.mubr.msk.f32.mxu0 %vm591_vm3, %v17243_v33 }
 0x3c2   : > { %19375 = vmatmul.mubr.msk.f32.gmra.mrb[84].mxu1 %vm591_vm3, %v23817_v62  ;;  %v17248_v62 = vld [vmem:[%s21568_s21 + $0x1a8] sm:$0xff] }
 0x3c3   : > { %20259 = vmatmul.mubr.msk.f32.gmra.mrb[20].mxu0 %vm591_vm3, %v17244_v54  ;;  %19377 = vmatprep.mubr.msk.f32.mxu1 %vm591_vm3, %v23822_v22  ;;  %v17251_v22 = vld [vmem:[%s21568_s21 + $0x1c0] sm:$0xff] }
 0x3c4   : > { %20261 = vmatprep.mubr.msk.f32.mxu0 %vm591_vm3, %v17245_v61  ;;  %v17279_v54 = vld [vmem:[%s21568_s21 + $0x2e0] sm:$0xff] }
 0x3c6   : > { %19378 = vmatmul.mubr.msk.f32.gmra.mrb[86].mxu1 %vm591_vm3, %v23831_v48  ;;  %v17250_v48 = vld [vmem:[%s21568_s21 + $0x1b8] sm:$0xff] }
 0x3c7   : > { %20262 = vmatmul.mubr.msk.f32.gmra.mrb[22].mxu0 %vm591_vm3, %v17246_v8  ;;  %19380 = vmatprep.mubr.msk.f32.mxu1 %vm591_vm3, %v16016_v49  ;;  %v17281_v8 = vld [vmem:[%s21568_s21 + $0x2f0] sm:$0xff] }
 0x3c8   : > { %20264 = vmatprep.mubr.msk.f32.mxu0 %vm591_vm3, %v17247_v15 }
 0x3ca   : > { %19381 = vmatmul.mubr.msk.f32.gmra.mrb[88].mxu1 %vm591_vm3, %v24160_v6  ;;  %v17252_v6 = vld [vmem:[%s21568_s21 + $0x1c8] sm:$0xff] }
 0x3cb   : > { %20265 = vmatmul.mubr.msk.f32.gmra.mrb[24].mxu0 %vm591_vm3, %v17248_v62  ;;  %19383 = vmatprep.mubr.msk.f32.mxu1 %vm591_vm3, %v23848_v42  ;;  %v17254_v42 = vld [vmem:[%s21568_s21 + $0x1d8] sm:$0xff]  ;;  %v17283_v62 = vld [vmem:[%s21568_s21 + $0x300] sm:$0xff] }
 0x3cc   : > { %20267 = vmatprep.mubr.msk.f32.mxu0 %vm591_vm3, %v17249_v57 }
 0x3ce   : > { %19384 = vmatmul.mubr.msk.f32.gmra.mrb[90].mxu1 %vm591_vm3, %v23859_v11  ;;  %v16024_v11 = vld [vmem:[%s21568_s21 + $0x4b0] sm:$0xff] }
 0x3cf   : > { %20268 = vmatmul.mubr.msk.f32.gmra.mrb[26].mxu0 %vm591_vm3, %v17250_v48  ;;  %19386 = vmatprep.mubr.msk.f32.mxu1 %vm591_vm3, %v23864_v45  ;;  %v17255_v45 = vld [vmem:[%s21568_s21 + $0x1f0] sm:$0xff] }
 0x3d0   : > { %20270 = vmatprep.mubr.msk.f32.mxu0 %vm591_vm3, %v17251_v22  ;;  %v17285_v48 = vld [vmem:[%s21568_s21 + $0x310] sm:$0xff] }
 0x3d2   : > { %19387 = vmatmul.mubr.msk.f32.gmra.mrb[92].mxu1 %vm591_vm3, %v23873_v19  ;;  %v17256_v19 = vld [vmem:[%s21568_s21 + $0x1f8] sm:$0xff] }
 0x3d3   : > { %20271 = vmatmul.mubr.msk.f32.gmra.mrb[28].mxu0 %vm591_vm3, %v17252_v6  ;;  %19389 = vmatprep.mubr.msk.f32.mxu1 %vm591_vm3, %v23878_v12  ;;  %v17259_v12 = vld [vmem:[%s21568_s21 + $0x210] sm:$0xff] }
 0x3d4   : > { %20273 = vmatprep.mubr.msk.f32.mxu0 %vm591_vm3, %v17253_v52  ;;  %v17287_v6 = vld [vmem:[%s21568_s21 + $0x3d0] sm:$0xff] }
 0x3d6   : > { %19390 = vmatmul.mubr.msk.f32.gmra.mrb[94].mxu1 %vm591_vm3, %v23887_v56  ;;  %v17258_v56 = vld [vmem:[%s21568_s21 + $0x208] sm:$0xff] }
 0x3d7   : > { %20274 = vmatmul.mubr.msk.f32.gmra.mrb[30].mxu0 %vm591_vm3, %v17254_v42  ;;  %19392 = vmatprep.mubr.msk.f32.mxu1 %vm591_vm3, %v16024_v11  ;;  %v16253_v42 = vld [vmem:[%s21568_s21 + $0x388] sm:$0xff] }
 0x3d8   : > { %20276 = vmatprep.mubr.msk.f32.mxu0 %vm591_vm3, %v17255_v45  ;;  %v17289_v45 = vld [vmem:[%s21568_s21 + $0x3e0] sm:$0xff] }
 0x3da   : > { %19393 = vmatmul.mubr.msk.f32.gmra.mrb[96].mxu1 %vm591_vm3, %v24195_v51  ;;  %v17260_v51 = vld [vmem:[%s21568_s21 + $0x218] sm:$0xff] }
 0x3db   : > { %20277 = vmatmul.mubr.msk.f32.gmra.mrb[32].mxu0 %vm591_vm3, %v17256_v19  ;;  %19395 = vmatprep.mubr.msk.f32.mxu1 %vm591_vm3, %v23904_v25  ;;  %v17262_v25 = vld [vmem:[%s21568_s21 + $0x228] sm:$0xff] }
 0x3dc   : > { %20279 = vmatprep.mubr.msk.f32.mxu0 %vm591_vm3, %v17257_v7  ;;  %v16255_v7 = vld [vmem:[%s21568_s21 + $0x398] sm:$0xff] }
 0x3de   : > { %19396 = vmatmul.mubr.msk.f32.gmra.mrb[98].mxu1 %vm591_vm3, %v23915_v28  ;;  %v16032_v28 = vld [vmem:[%s21568_s21 + $0x500] sm:$0xff] }
 0x3df   : > { %20280 = vmatmul.mubr.msk.f32.gmra.mrb[34].mxu0 %vm591_vm3, %v17258_v56  ;;  %19398 = vmatprep.mubr.msk.f32.mxu1 %vm591_vm3, %v23920_v53  ;;  %v17263_v53 = vld [vmem:[%s21568_s21 + $0x240] sm:$0xff] }
 0x3e0   : > { %20282 = vmatprep.mubr.msk.f32.mxu0 %vm591_vm3, %v17259_v12  ;;  %v17291_v12 = vld [vmem:[%s21568_s21 + $0x3f0] sm:$0xff] }
 0x3e2   : > { %19399 = vmatmul.mubr.msk.f32.gmra.mrb[100].mxu1 %vm591_vm3, %v23929_v44  ;;  %v17264_v44 = vld [vmem:[%s21568_s21 + $0x248] sm:$0xff] }
 0x3e3   : > { %20283 = vmatmul.mubr.msk.f32.gmra.mrb[36].mxu0 %vm591_vm3, %v17260_v51  ;;  %19401 = vmatprep.mubr.msk.f32.mxu1 %vm591_vm3, %v23934_v32 }
 0x3e4   : > { %20285 = vmatprep.mubr.msk.f32.mxu0 %vm591_vm3, %v17261_v55  ;;  %v16256_v55 = vld [vmem:[%s21568_s21 + $0x3a0] sm:$0xff] }
 0x3e6   : > { %19402 = vmatmul.mubr.msk.f32.gmra.mrb[102].mxu1 %vm591_vm3, %v23943_v9  ;;  %v17266_v9 = vld [vmem:[%s21568_s21 + $0x258] sm:$0xff] }
 0x3e7   : > { %20286 = vmatmul.mubr.msk.f32.gmra.mrb[38].mxu0 %vm591_vm3, %v17262_v25  ;;  %19404 = vmatprep.mubr.msk.f32.mxu1 %vm591_vm3, %v16032_v28  ;;  %v17292_v25 = vld [vmem:[%s21568_s21 + $0x3f8] sm:$0xff]  ;;  %v16257_v28 = vld [vmem:[%s21568_s21 + $0x3a8] sm:$0xff] }
 0x3e8   : > { %20288 = vmatprep.mubr.msk.f32.mxu0 %vm591_vm3, %v17263_v53 }
 0x3ea   : > { %19405 = vmatmul.mubr.msk.f32.gmra.mrb[104].mxu1 %vm591_vm3, %v24230_v63  ;;  %v17268_v63 = vld [vmem:[%s21568_s21 + $0x268] sm:$0xff] }
 0x3eb   : > { %20289 = vmatmul.mubr.msk.f32.gmra.mrb[40].mxu0 %vm591_vm3, %v17264_v44  ;;  %19407 = vmatprep.mubr.msk.f32.mxu1 %vm591_vm3, %v25496_v37  ;;  %v17293_v44 = vld [vmem:[%s21568_s21 + $0x400] sm:$0xff] }
 0x3ec   : > { %20291 = vmatprep.mubr.msk.f32.mxu0 %vm591_vm3, %v17265_v43 }
 0x3ed   : > { %v24563_v32 = vpop.f32.mrb[0].mxu1 }
 0x3ee   : > { %v24566_v27 = vpop.f32.mrb[1].mxu1  ;;  %19408 = vmatmul.mubr.msk.f32.gmra.mrb[106].mxu1 %vm591_vm3, %v25498_v10  ;;  %v17270_v10 = vld [vmem:[%s21568_s21 + $0x278] sm:$0xff] }
 0x3ef   : > { %20292 = vmatmul.mubr.msk.f32.gmra.mrb[42].mxu0 %vm591_vm3, %v17266_v9  ;;  %19410 = vmatprep.mubr.msk.f32.mxu1 %vm591_vm3, %v25500_v14  ;;  %v16040_v14 = vld [vmem:[%s21568_s21 + $0x550] sm:$0xff] }
 0x3f0   : > { %20294 = vmatprep.mubr.msk.f32.mxu0 %vm591_vm3, %v17267_v35  ;;  %v16258_v9 = vld [vmem:[%s21568_s21 + $0x3b0] sm:$0xff]  ;;  %v17294_v35 = vld [vmem:[%s21568_s21 + $0x408] sm:$0xff] }
 0x3f1   : > { %v24575_v37 = vpop.f32.mrb[2].mxu1 }
 0x3f2   : > { %v24578_v58 = vpop.f32.mrb[3].mxu1  ;;  %19411 = vmatmul.mubr.msk.f32.gmra.mrb[108].mxu1 %vm591_vm3, %v25502_v26  ;;  %v17272_v26 = vld [vmem:[%s21568_s21 + $0x298] sm:$0xff] }
 0x3f3   : > { %20295 = vmatmul.mubr.msk.f32.gmra.mrb[44].mxu0 %vm591_vm3, %v17268_v63  ;;  %19413 = vmatprep.mubr.msk.f32.mxu1 %vm591_vm3, %v25504_v23  ;;  %v16259_v63 = vld [vmem:[%s21568_s21 + $0x3c8] sm:$0xff] }
 0x3f4   : > { %20297 = vmatprep.mubr.msk.f32.mxu0 %vm591_vm3, %v17269_v0 }
 0x3f5   : > { %v24588_v3 = vpop.f32.mrb[4].mxu1 }
 0x3f6   : > { %v24591_v50 = vpop.f32.mrb[5].mxu1  ;;  %19414 = vmatmul.mubr.msk.f32.gmra.mrb[110].mxu1 %vm591_vm3, %v25506_v30  ;;  %v17274_v30 = vld [vmem:[%s21568_s21 + $0x2a8] sm:$0xff] }
 0x3f7   : > { %20298 = vmatmul.mubr.msk.f32.gmra.mrb[46].mxu0 %vm591_vm3, %v17270_v10  ;;  %19416 = vmatprep.mubr.msk.f32.mxu1 %vm591_vm3, %v16040_v14  ;;  %v17295_v10 = vld [vmem:[%s21568_s21 + $0x420] sm:$0xff] }
 0x3f8   : > { %20300 = vmatprep.mubr.msk.f32.mxu0 %vm591_vm3, %v17271_v4  ;;  %v17296_v4 = vld [vmem:[%s21568_s21 + $0x428] sm:$0xff] }
 0x3f9   : > { %v24599_v23 = vpop.f32.mrb[6].mxu1 }
 0x3fa   : > { %v24602_v29 = vpop.f32.mrb[7].mxu1  ;;  %19417 = vmatmul.mubr.msk.f32.gmra.mrb[112].mxu1 %vm591_vm3, %v24265_v34  ;;  %v17276_v34 = vld [vmem:[%s21568_s21 + $0x2b8] sm:$0xff] }
 0x3fb   : > { %20301 = vmatmul.mubr.msk.f32.gmra.mrb[48].mxu0 %vm591_vm3, %v17272_v26  ;;  %19419 = vmatprep.mubr.msk.f32.mxu1 %vm591_vm3, %v25510_v40 }
 0x3fc   : > { %20303 = vmatprep.mubr.msk.f32.mxu0 %vm591_vm3, %v17273_v20  ;;  %v17297_v20 = vld [vmem:[%s21568_s21 + $0x430] sm:$0xff] }
 0x3fd   : > { %v24611_v21 = vpop.f32.mrb[8].mxu1 }
 0x3fe   : > { %v24614_v41 = vpop.f32.mrb[9].mxu1  ;;  %19420 = vmatmul.mubr.msk.f32.gmra.mrb[114].mxu1 %vm591_vm3, %v25512_v31  ;;  %v17278_v31 = vld [vmem:[%s21568_s21 + $0x2c8] sm:$0xff] }
 0x3ff   : > { %20304 = vmatmul.mubr.msk.f32.gmra.mrb[50].mxu0 %vm591_vm3, %v17274_v30  ;;  %19422 = vmatprep.mubr.msk.f32.mxu1 %vm591_vm3, %v25514_v2  ;;  %v16048_v2 = vld [vmem:[%s21568_s21 + $0x5a0] sm:$0xff] }
 0x400   : > { %20306 = vmatprep.mubr.msk.f32.mxu0 %vm591_vm3, %v17275_v60  ;;  %v17298_v60 = vld [vmem:[%s21568_s21 + $0x438] sm:$0xff] }
 0x401   : > { %v24623_v40 = vpop.f32.mrb[10].mxu1 }
 0x402   : > { %v24626_v36 = vpop.f32.mrb[11].mxu1  ;;  %19423 = vmatmul.mubr.msk.f32.gmra.mrb[116].mxu1 %vm591_vm3, %v25516_v18  ;;  %v17280_v18 = vld [vmem:[%s21568_s21 + $0x2e8] sm:$0xff] }
 0x403   : > { %20307 = vmatmul.mubr.msk.f32.gmra.mrb[52].mxu0 %vm591_vm3, %v17276_v34  ;;  %19425 = vmatprep.mubr.msk.f32.mxu1 %vm591_vm3, %v25518_v13 }
 0x404   : > { %20309 = vmatprep.mubr.msk.f32.mxu0 %vm591_vm3, %v17277_v17  ;;  %v17299_v17 = vld [vmem:[%s21568_s21 + $0x440] sm:$0xff] }
 0x405   : > { %v24636_v33 = vpop.f32.mrb[12].mxu1 }
 0x406   : > { %v24639_v61 = vpop.f32.mrb[13].mxu1  ;;  %19426 = vmatmul.mubr.msk.f32.gmra.mrb[118].mxu1 %vm591_vm3, %v24071_v47  ;;  %v17282_v47 = vld [vmem:[%s21568_s21 + $0x2f8] sm:$0xff] }
 0x407   : > { %20310 = vmatmul.mubr.msk.f32.gmra.mrb[54].mxu0 %vm591_vm3, %v17278_v31  ;;  %19428 = vmatprep.mubr.msk.f32.mxu1 %vm591_vm3, %v16048_v2  ;;  %v17300_v2 = vld [vmem:[%s21568_s21 + $0x448] sm:$0xff] }
 0x408   : > { %20312 = vmatprep.mubr.msk.f32.mxu0 %vm591_vm3, %v17279_v54 }
 0x409   : > { %v24647_v13 = vpop.f32.mrb[14].mxu1 }
 0x40a   : > { %v24650_v49 = vpop.f32.mrb[15].mxu1  ;;  %19429 = vmatmul.mubr.msk.f32.gmra.mrb[120].mxu1 %vm591_vm3, %v24300_v16  ;;  %v17284_v16 = vld [vmem:[%s21568_s21 + $0x308] sm:$0xff] }
 0x40b   : > { %20313 = vmatmul.mubr.msk.f32.gmra.mrb[56].mxu0 %vm591_vm3, %v17280_v18  ;;  %19431 = vmatprep.mubr.msk.f32.mxu1 %vm591_vm3, %v24310_v59  ;;  %v17301_v18 = vld [vmem:[%s21568_s21 + $0x450] sm:$0xff] }
 0x40c   : > { %20315 = vmatprep.mubr.msk.f32.mxu0 %vm591_vm3, %v17281_v8 }
 0x40d   : > { %v24659_v15 = vpop.f32.mrb[16].mxu1 }
 0x40e   : > { %v24662_v57 = vpop.f32.mrb[17].mxu1  ;;  %19432 = vmatmul.mubr.msk.f32.gmra.mrb[122].mxu1 %vm591_vm3, %v24313_v39  ;;  %v17286_v39 = vld [vmem:[%s21568_s21 + $0x318] sm:$0xff] }
 0x40f   : > { %20316 = vmatmul.mubr.msk.f32.gmra.mrb[58].mxu0 %vm591_vm3, %v17282_v47  ;;  %19434 = vmatprep.mubr.msk.f32.mxu1 %vm591_vm3, %v24324_v1  ;;  %v17302_v47 = vld [vmem:[%s21568_s21 + $0x458] sm:$0xff] }
 0x410   : > { %20318 = vmatprep.mubr.msk.f32.mxu0 %vm591_vm3, %v17283_v62  ;;  %v16267_v62 = vld [vmem:[%s21568_s21 + $0x418] sm:$0xff] }
 0x411   : > { %v24671_v59 = vpop.f32.mrb[18].mxu1 }
 0x412   : > { %v24674_v22 = vpop.f32.mrb[19].mxu1  ;;  %19435 = vmatmul.mubr.msk.f32.gmra.mrb[124].mxu1 %vm591_vm3, %v24327_v46  ;;  %v16252_v46 = vld [vmem:[%s21568_s21 + $0x380] sm:$0xff] }
 0x413   : > { %20319 = vmatmul.mubr.msk.f32.gmra.mrb[60].mxu0 %vm591_vm3, %v17284_v16  ;;  %19437 = vmatprep.mubr.msk.f32.mxu1 %vm591_vm3, %v24338_v5  ;;  %v17288_v5 = vld [vmem:[%s21568_s21 + $0x3d8] sm:$0xff] }
 0x414   : > { %20321 = vmatprep.mubr.msk.f32.mxu0 %vm591_vm3, %v17285_v48  ;;  %v17303_v48 = vld [vmem:[%s21568_s21 + $0x470] sm:$0xff] }
 0x415   : > { %v24683_v1 = vpop.f32.mrb[20].mxu1 }
 0x416   : > { %v24686_v52 = vpop.f32.mrb[21].mxu1  ;;  %19438 = vmatmul.mubr.msk.f32.gmra.mrb[126].mxu1 %vm591_vm3, %v24341_v24  ;;  %v16254_v24 = vld [vmem:[%s21568_s21 + $0x390] sm:$0xff] }
 0x417   : > { %20322 = vmatmul.mubr.msk.f32.gmra.mrb[62].mxu0 %vm591_vm3, %v17286_v39  ;;  %19540 = vmatprep.mubr.msk.f32.mxu1 %vm591_vm3, %v24391_v38  ;;  %v17290_v38 = vld [vmem:[%s21568_s21 + $0x3e8] sm:$0xff] }
 0x418   : > { %20324 = vmatprep.mubr.msk.f32.mxu0 %vm591_vm3, %v17287_v6 }
 0x419   : > { %v24697_v11 = vpop.f32.mrb[22].mxu1 }
 0x41a   : > { %v24700_v19 = vpop.f32.mrb[23].mxu1  ;;  %19541 = vmatmul.mubr.msk.f32.vlgmr.msra.gmra.mrb[64].mxu1 %vm591_vm3, %v16252_v46 }
 0x41b   : > { %20325 = vmatmul.mubr.msk.f32.gmra.mrb[64].mxu0 %vm591_vm3, %v17288_v5  ;;  %19543 = vmatprep.mubr.msk.f32.mxu1 %vm591_vm3, %v16253_v42 }
 0x41c   : > { %20327 = vmatprep.mubr.msk.f32.mxu0 %vm591_vm3, %v17289_v45 }
 0x41d   : > { %v24709_v56 = vpop.f32.mrb[24].mxu1 }
 0x41e   : > { %v24712_v51 = vpop.f32.mrb[25].mxu1  ;;  %19544 = vmatmul.mubr.msk.f32.gmra.mrb[66].mxu1 %vm591_vm3, %v16254_v24 }
 0x41f   : > { %20328 = vmatmul.mubr.msk.f32.gmra.mrb[66].mxu0 %vm591_vm3, %v17290_v38  ;;  %19546 = vmatprep.mubr.msk.f32.mxu1 %vm591_vm3, %v16255_v7 }
 0x420   : > { %20330 = vmatprep.mubr.msk.f32.mxu0 %vm591_vm3, %v17291_v12 }
 0x421   : > { %v24721_v53 = vpop.f32.mrb[26].mxu1 }
 0x422   : > { %v24724_v43 = vpop.f32.mrb[27].mxu1  ;;  %19547 = vmatmul.mubr.msk.f32.gmra.mrb[68].mxu1 %vm591_vm3, %v16256_v55 }
 0x423   : > { %20331 = vmatmul.mubr.msk.f32.gmra.mrb[68].mxu0 %vm591_vm3, %v17292_v25  ;;  %19549 = vmatprep.mubr.msk.f32.mxu1 %vm591_vm3, %v16257_v28 }
 0x424   : > { %20333 = vmatprep.mubr.msk.f32.mxu0 %vm591_vm3, %v17293_v44 }
 0x425   : > { %v24733_v0 = vpop.f32.mrb[28].mxu1 }
 0x426   : > { %v24736_v14 = vpop.f32.mrb[29].mxu1  ;;  %19550 = vmatmul.mubr.msk.f32.gmra.mrb[70].mxu1 %vm591_vm3, %v16258_v9  ;;  %v16275_v9 = vld [vmem:[%s21568_s21 + $0x468] sm:$0xff] }
 0x427   : > { %20334 = vmatmul.mubr.msk.f32.gmra.mrb[70].mxu0 %vm591_vm3, %v17294_v35  ;;  %19552 = vmatprep.mubr.msk.f32.mxu1 %vm591_vm3, %v16259_v63  ;;  %v17311_v63 = vld [vmem:[%s21568_s21 + $0x4c0] sm:$0xff] }
 0x428   : > { %20336 = vmatprep.mubr.msk.f32.mxu0 %vm591_vm3, %v17295_v10 }
 0x429   : > { %v24743_v26 = vpop.f32.mrb[30].mxu1 }
 0x42a   : > { %v24746_v30 = vpop.f32.mrb[31].mxu1  ;;  %19553 = vmatmul.mubr.msk.f32.gmra.mrb[72].mxu1 %vm591_vm3, %v17287_v6  ;;  %v17304_v6 = vld [vmem:[%s21568_s21 + $0x478] sm:$0xff] }
 0x42b   : > { %20337 = vmatmul.mubr.msk.f32.gmra.mrb[72].mxu0 %vm591_vm3, %v17296_v4  ;;  %19555 = vmatprep.mubr.msk.f32.mxu1 %vm591_vm3, %v17288_v5  ;;  %v17305_v5 = vld [vmem:[%s21568_s21 + $0x480] sm:$0xff] }
 0x42c   : > { %20339 = vmatprep.mubr.msk.f32.mxu0 %vm591_vm3, %v17297_v20 }
 0x42d   : > { %v24753_v34 = vpop.f32.mrb[32].mxu1 }
 0x42e   : > { %v24756_v31 = vpop.f32.mrb[33].mxu1  ;;  %19556 = vmatmul.mubr.msk.f32.gmra.mrb[74].mxu1 %vm591_vm3, %v17289_v45  ;;  %v17306_v45 = vld [vmem:[%s21568_s21 + $0x488] sm:$0xff] }
 0x42f   : > { %20340 = vmatmul.mubr.msk.f32.gmra.mrb[74].mxu0 %vm591_vm3, %v17298_v60  ;;  %19558 = vmatprep.mubr.msk.f32.mxu1 %vm591_vm3, %v17290_v38  ;;  %v17307_v38 = vld [vmem:[%s21568_s21 + $0x490] sm:$0xff] }
 0x430   : > { %20342 = vmatprep.mubr.msk.f32.mxu0 %vm591_vm3, %v17299_v17 }
 0x431   : > { %v24763_v54 = vpop.f32.mrb[34].mxu1 }
 0x432   : > { %v24766_v8 = vpop.f32.mrb[35].mxu1  ;;  %19559 = vmatmul.mubr.msk.f32.gmra.mrb[76].mxu1 %vm591_vm3, %v17291_v12  ;;  %v17308_v12 = vld [vmem:[%s21568_s21 + $0x498] sm:$0xff] }
 0x433   : > { %20343 = vmatmul.mubr.msk.f32.gmra.mrb[76].mxu0 %vm591_vm3, %v17300_v2  ;;  %19561 = vmatprep.mubr.msk.f32.mxu1 %vm591_vm3, %v17292_v25  ;;  %v17309_v25 = vld [vmem:[%s21568_s21 + $0x4a0] sm:$0xff] }
 0x434   : > { %20345 = vmatprep.mubr.msk.f32.mxu0 %vm591_vm3, %v17301_v18 }
 0x435   : > { %v24774_v16 = vpop.f32.mrb[36].mxu1 }
 0x436   : > { %v24777_v39 = vpop.f32.mrb[37].mxu1  ;;  %19562 = vmatmul.mubr.msk.f32.gmra.mrb[78].mxu1 %vm591_vm3, %v17293_v44  ;;  %v17310_v44 = vld [vmem:[%s21568_s21 + $0x4a8] sm:$0xff] }
 0x437   : > { %20346 = vmatmul.mubr.msk.f32.gmra.mrb[78].mxu0 %vm591_vm3, %v17302_v47  ;;  %19564 = vmatprep.mubr.msk.f32.mxu1 %vm591_vm3, %v16267_v62  ;;  %v17315_v47 = vld [vmem:[%s21568_s21 + $0x4e0] sm:$0xff] }
 0x438   : > { %20348 = vmatprep.mubr.msk.f32.mxu0 %vm591_vm3, %v17303_v48 }
 0x439   : > { %v24784_v46 = vpop.f32.mrb[38].mxu1 }
 0x43a   : > { %v24787_v42 = vpop.f32.mrb[39].mxu1  ;;  %19565 = vmatmul.mubr.msk.f32.gmra.mrb[80].mxu1 %vm591_vm3, %v17295_v10 }
 0x43b   : > { %20349 = vmatmul.mubr.msk.f32.gmra.mrb[80].mxu0 %vm591_vm3, %v17304_v6  ;;  %19567 = vmatprep.mubr.msk.f32.mxu1 %vm591_vm3, %v17296_v4  ;;  %v17312_v4 = vld [vmem:[%s21568_s21 + $0x4c8] sm:$0xff] }
 0x43c   : > { %20351 = vmatprep.mubr.msk.f32.mxu0 %vm591_vm3, %v17305_v5 }
 0x43d   : > { %v24794_v24 = vpop.f32.mrb[40].mxu1 }
 0x43e   : > { %v24797_v7 = vpop.f32.mrb[41].mxu1  ;;  %19568 = vmatmul.mubr.msk.f32.gmra.mrb[82].mxu1 %vm591_vm3, %v17297_v20 }
 0x43f   : > { %20352 = vmatmul.mubr.msk.f32.gmra.mrb[82].mxu0 %vm591_vm3, %v17306_v45  ;;  %19570 = vmatprep.mubr.msk.f32.mxu1 %vm591_vm3, %v17298_v60  ;;  %v17313_v60 = vld [vmem:[%s21568_s21 + $0x4d0] sm:$0xff] }
 0x440   : > { %20354 = vmatprep.mubr.msk.f32.mxu0 %vm591_vm3, %v17307_v38 }
 0x441   : > { %v24804_v55 = vpop.f32.mrb[42].mxu1 }
 0x442   : > { %v24807_v28 = vpop.f32.mrb[43].mxu1  ;;  %19571 = vmatmul.mubr.msk.f32.gmra.mrb[84].mxu1 %vm591_vm3, %v17299_v17 }
 0x443   : > { %20355 = vmatmul.mubr.msk.f32.gmra.mrb[84].mxu0 %vm591_vm3, %v17308_v12  ;;  %19573 = vmatprep.mubr.msk.f32.mxu1 %vm591_vm3, %v17300_v2  ;;  %v17314_v2 = vld [vmem:[%s21568_s21 + $0x4d8] sm:$0xff] }
 0x444   : > { %20357 = vmatprep.mubr.msk.f32.mxu0 %vm591_vm3, %v17309_v25 }
 0x445   : > { %v24815_v35 = vpop.f32.mrb[44].mxu1 }
 0x446   : > { %v24818_v10 = vpop.f32.mrb[45].mxu1  ;;  %19574 = vmatmul.mubr.msk.f32.gmra.mrb[86].mxu1 %vm591_vm3, %v17301_v18 }
 0x447   : > { %20358 = vmatmul.mubr.msk.f32.gmra.mrb[86].mxu0 %vm591_vm3, %v17310_v44  ;;  %19576 = vmatprep.mubr.msk.f32.mxu1 %vm591_vm3, %v16275_v9  ;;  %v17317_v44 = vld [vmem:[%s21568_s21 + $0x4f0] sm:$0xff] }
 0x448   : > { %20360 = vmatprep.mubr.msk.f32.mxu0 %vm591_vm3, %v17311_v63 }
 0x449   : > { %v24825_v20 = vpop.f32.mrb[46].mxu1 }
 0x44a   : > { %v24828_v17 = vpop.f32.mrb[47].mxu1  ;;  %19577 = vmatmul.mubr.msk.f32.gmra.mrb[88].mxu1 %vm591_vm3, %v17303_v48  ;;  %v17316_v48 = vld [vmem:[%s21568_s21 + $0x4e8] sm:$0xff] }
 0x44b   : > { %25541 = vst [vmem:[#allocation3_spill] sm:$0xff] %v24828_v17  ;;  %20361 = vmatmul.mubr.msk.f32.gmra.mrb[88].mxu0 %vm591_vm3, %v17312_v4  ;;  %19579 = vmatprep.mubr.msk.f32.mxu1 %vm591_vm3, %v17304_v6 }
 0x44c   : > { %20363 = vmatprep.mubr.msk.f32.mxu0 %vm591_vm3, %v17313_v60 }
 0x44d   : > { %v24835_v18 = vpop.f32.mrb[48].mxu1 }
 0x44e   : > { %25542 = vst [vmem:[#allocation31_spill] sm:$0xff] %v24835_v18  ;;  %v24838_v62 = vpop.f32.mrb[49].mxu1  ;;  %19580 = vmatmul.mubr.msk.f32.gmra.mrb[90].mxu1 %vm591_vm3, %v17305_v5  ;;  %v17318_v5 = vld [vmem:[%s21568_s21 + $0x4f8] sm:$0xff]  ;;  %v17319_v18 = vld [vmem:[%s21568_s21 + $0x510] sm:$0xff] }
 0x44f   : > { %25543 = vst [vmem:[#allocation28_spill] sm:$0xff] %v24838_v62  ;;  %20364 = vmatmul.mubr.msk.f32.gmra.mrb[90].mxu0 %vm591_vm3, %v17314_v2  ;;  %19582 = vmatprep.mubr.msk.f32.mxu1 %vm591_vm3, %v17306_v45  ;;  %v16283_v45 = vld [vmem:[%s21568_s21 + $0x4b8] sm:$0xff] }
 0x450   : > { %20366 = vmatprep.mubr.msk.f32.mxu0 %vm591_vm3, %v17315_v47 }
 0x451   : > { %v24845_v6 = vpop.f32.mrb[50].mxu1 }
 0x452   : > { %25544 = vst [vmem:[#allocation32_spill] sm:$0xff] %v24845_v6  ;;  %v24848_v9 = vpop.f32.mrb[51].mxu1  ;;  %19583 = vmatmul.mubr.msk.f32.gmra.mrb[92].mxu1 %vm591_vm3, %v17307_v38  ;;  %v17320_v38 = vld [vmem:[%s21568_s21 + $0x518] sm:$0xff] }
 0x453   : > { %25545 = vst [vmem:[#allocation5_spill] sm:$0xff] %v24848_v9  ;;  %20367 = vmatmul.mubr.msk.f32.gmra.mrb[92].mxu0 %vm591_vm3, %v17316_v48  ;;  %19585 = vmatprep.mubr.msk.f32.mxu1 %vm591_vm3, %v17308_v12  ;;  %v17321_v9 = vld [vmem:[%s21568_s21 + $0x520] sm:$0xff] }
 0x454   : > { %20369 = vmatprep.mubr.msk.f32.mxu0 %vm591_vm3, %v17317_v44 }
 0x455   : > { %v24856_v62 = vpop.f32.mrb[52].mxu1 }
 0x456   : > { %25546 = vst [vmem:[#allocation34_spill] sm:$0xff] %v24856_v62  ;;  %v24859_v6 = vpop.f32.mrb[53].mxu1  ;;  %19586 = vmatmul.mubr.msk.f32.gmra.mrb[94].mxu1 %vm591_vm3, %v17309_v25  ;;  %v17322_v25 = vld [vmem:[%s21568_s21 + $0x528] sm:$0xff] }
 0x457   : > { %25547 = vst [vmem:[#allocation6_spill] sm:$0xff] %v24859_v6  ;;  %20370 = vmatmul.mubr.msk.f32.gmra.mrb[94].mxu0 %vm591_vm3, %v17318_v5  ;;  %19588 = vmatprep.mubr.msk.f32.mxu1 %vm591_vm3, %v16283_v45  ;;  %v17323_v45 = vld [vmem:[%s21568_s21 + $0x530] sm:$0xff] }
 0x458   : > { %20372 = vmatprep.mubr.msk.f32.mxu0 %vm591_vm3, %v17319_v18 }
 0x459   : > { %v24866_v12 = vpop.f32.mrb[54].mxu1 }
 0x45a   : > { %25548 = vst [vmem:[#allocation36_spill] sm:$0xff] %v24866_v12  ;;  %v24869_v17 = vpop.f32.mrb[55].mxu1  ;;  %19589 = vmatmul.mubr.msk.f32.gmra.mrb[96].mxu1 %vm591_vm3, %v17311_v63  ;;  %v17324_v63 = vld [vmem:[%s21568_s21 + $0x538] sm:$0xff] }
 0x45b   : > { %25549 = vst [vmem:[#allocation7_spill] sm:$0xff] %v24869_v17  ;;  %20373 = vmatmul.mubr.msk.f32.gmra.mrb[96].mxu0 %vm591_vm3, %v17320_v38  ;;  %19591 = vmatprep.mubr.msk.f32.mxu1 %vm591_vm3, %v17312_v4  ;;  %v17325_v17 = vld [vmem:[%s21568_s21 + $0x540] sm:$0xff] }
 0x45c   : > { %20375 = vmatprep.mubr.msk.f32.mxu0 %vm591_vm3, %v17321_v9 }
 0x45d   : > { %v24876_v5 = vpop.f32.mrb[56].mxu1 }
 0x45e   : > { %25550 = vst [vmem:[#allocation38_spill] sm:$0xff] %v24876_v5  ;;  %v24879_v6 = vpop.f32.mrb[57].mxu1  ;;  %19592 = vmatmul.mubr.msk.f32.gmra.mrb[98].mxu1 %vm591_vm3, %v17313_v60  ;;  %v17326_v60 = vld [vmem:[%s21568_s21 + $0x548] sm:$0xff] }
 0x45f   : > { %25551 = vst [vmem:[#allocation8_spill] sm:$0xff] %v24879_v6  ;;  %20376 = vmatmul.mubr.msk.f32.gmra.mrb[98].mxu0 %vm591_vm3, %v17322_v25  ;;  %19594 = vmatprep.mubr.msk.f32.mxu1 %vm591_vm3, %v17314_v2  ;;  %v16291_v2 = vld [vmem:[%s21568_s21 + $0x508] sm:$0xff] }
 0x460   : > { %20378 = vmatprep.mubr.msk.f32.mxu0 %vm591_vm3, %v17323_v45 }
 0x461   : > { %v24886_v4 = vpop.f32.mrb[58].mxu1 }
 0x462   : > { %25552 = vst [vmem:[#allocation40_spill] sm:$0xff] %v24886_v4  ;;  %v24889_v12 = vpop.f32.mrb[59].mxu1  ;;  %19595 = vmatmul.mubr.msk.f32.gmra.mrb[100].mxu1 %vm591_vm3, %v17315_v47  ;;  %v17327_v4 = vld [vmem:[%s21568_s21 + $0x560] sm:$0xff]  ;;  %v17328_v47 = vld [vmem:[%s21568_s21 + $0x568] sm:$0xff] }
 0x463   : > { %25553 = vst [vmem:[#allocation9_spill] sm:$0xff] %v24889_v12  ;;  %20379 = vmatmul.mubr.msk.f32.gmra.mrb[100].mxu0 %vm591_vm3, %v17324_v63  ;;  %19597 = vmatprep.mubr.msk.f32.mxu1 %vm591_vm3, %v17316_v48  ;;  %v24910_v12 = vld [vmem:[%s21568_s21 + $0x570] sm:$0xff] }
 0x464   : > { %20381 = vmatprep.mubr.msk.f32.mxu0 %vm591_vm3, %v17325_v17 }
 0x465   : > { %v24897_v6 = vpop.f32.mrb[60].mxu1 }
 0x466   : > { %25554 = vst [vmem:[#allocation42_spill] sm:$0xff] %v24897_v6  ;;  %v24900_v5 = vpop.f32.mrb[61].mxu1  ;;  %19598 = vmatmul.mubr.msk.f32.gmra.mrb[102].mxu1 %vm591_vm3, %v17317_v44  ;;  %v24926_v44 = vld [vmem:[%s21568_s21 + $0x578] sm:$0xff] }
 0x467   : > { %25555 = vst [vmem:[#allocation10_spill] sm:$0xff] %v24900_v5  ;;  %20382 = vmatmul.mubr.msk.f32.gmra.mrb[102].mxu0 %vm591_vm3, %v17326_v60  ;;  %19600 = vmatprep.mubr.msk.f32.mxu1 %vm591_vm3, %v16291_v2  ;;  %v24930_v60 = vld [vmem:[%s21568_s21 + $0x580] sm:$0xff] }
 0x468   : > { %20384 = vmatprep.mubr.msk.f32.mxu0 %vm591_vm3, %v17327_v4  ;;  %v24933_v2 = vld [vmem:[%s24921_s24] ss:$0 sm:$0xff] }
 0x469   : > { %v24907_v48 = vpop.f32.mrb[62].mxu1 }
 0x46a   : > { %25556 = vst [vmem:[#allocation44_spill] sm:$0xff] %v24907_v48  ;;  %v24912_v6 = vpop.f32.mrb[63].mxu1  ;;  %19601 = vmatmul.mubr.msk.f32.gmra.mrb[104].mxu1 %vm591_vm3, %v17319_v18 }
 0x46b   : > { %25557 = vst [vmem:[#allocation29_spill] sm:$0xff] %v24912_v6  ;;  %20385 = vmatmul.mubr.msk.f32.gmra.mrb[104].mxu0 %vm591_vm3, %v17328_v47  ;;  %19603 = vmatprep.mubr.msk.f32.mxu1 %vm591_vm3, %v17320_v38 }
 0x46c   : > { %20387 = vmatprep.mubr.msk.f32.mxu0 %vm591_vm3, %v24910_v12 }
 0x46e   : > { %v20230_v18 = vpop.f32.mrb[0].mxu0  ;;  %19604 = vmatmul.mubr.msk.f32.gmra.mrb[106].mxu1 %vm591_vm3, %v17321_v9 }
 0x46f   : > { %v20476_v38 = vadd.f32 %v20230_v18, %v24563_v32  ;;  %v13910_v6 = vpop.f32.mrb[1].mxu0  ;;  %20388 = vmatmul.mubr.msk.f32.gmra.mrb[106].mxu0 %vm591_vm3, %v24926_v44  ;;  %19606 = vmatprep.mubr.msk.f32.mxu1 %vm591_vm3, %v17322_v25  ;;  %v24949_v32 = vld [vmem:[%s21568_s21 + $0x588] sm:$0xff]  ;;  %v24953_v25 = vld [vmem:[%s21568_s21 + $0x590] sm:$0xff] }
 0x470   : > { %v20477_v48 = vadd.f32 %v13910_v6, %v24566_v27  ;;  %20390 = vmatprep.mubr.msk.f32.mxu0 %vm591_vm3, %v24930_v60 }
 0x471   : > { %v14941_v9 = vadd.f32 %v20476_v38, %v24933_v2 }
 0x472   : > { %v14940_v18 = vadd.f32 %v20477_v48, %v24933_v2  ;;  %v20233_v5 = vpop.f32.mrb[2].mxu0  ;;  %19607 = vmatmul.mubr.msk.f32.gmra.mrb[108].mxu1 %vm591_vm3, %v17323_v45  ;;  %v17334_v48 = vld [vmem:[%s21568_s21 + $0x598] sm:$0xff] }
 0x473   : > { %15069 = vst [vmem:[%s24943_s28 + $0x8] sm:$0xff] %v14941_v9  ;;  %v20478_v27 = vadd.f32 %v20233_v5, %v24575_v37  ;;  %v13920_v6 = vpop.f32.mrb[3].mxu0  ;;  %20391 = vmatmul.mubr.msk.f32.gmra.mrb[108].mxu0 %vm591_vm3, %v24949_v32  ;;  %19609 = vmatprep.mubr.msk.f32.mxu1 %vm591_vm3, %v17324_v63  ;;  %v16299_v45 = vld [vmem:[%s21568_s21 + $0x558] sm:$0xff]  ;;  %v24970_v37 = vld [vmem:[%s21568_s21 + $0x5b0] sm:$0xff] }
 0x474   : > { %15068 = vst [vmem:[%s24943_s28] sm:$0xff] %v14940_v18  ;;  %v20479_v38 = vadd.f32 %v13920_v6, %v24578_v58  ;;  %20393 = vmatprep.mubr.msk.f32.mxu0 %vm591_vm3, %v24953_v25  ;;  %v24987_v6 = vld [vmem:[%s21568_s21 + $0x5c0] sm:$0xff] }
 0x475   : > { %v14943_v9 = vadd.f32 %v20478_v27, %v24933_v2  ;;  %v24983_v27 = vld [vmem:[%s21568_s21 + $0x5b8] sm:$0xff] }
 0x476   : > { %v14942_v5 = vadd.f32 %v20479_v38, %v24933_v2  ;;  %v20236_v62 = vpop.f32.mrb[4].mxu0  ;;  %19610 = vmatmul.mubr.msk.f32.gmra.mrb[110].mxu1 %vm591_vm3, %v17325_v17 }
 0x477   : > { %15071 = vst [vmem:[%s24943_s28 + $0x18] sm:$0xff] %v14943_v9  ;;  %v20480_v58 = vadd.f32 %v20236_v62, %v24588_v3  ;;  %v13930_v63 = vpop.f32.mrb[5].mxu0  ;;  %20394 = vmatmul.mubr.msk.f32.gmra.mrb[110].mxu0 %vm591_vm3, %v17334_v48  ;;  %19612 = vmatprep.mubr.msk.f32.mxu1 %vm591_vm3, %v16299_v45  ;;  %v25001_v45 = vld [vmem:[%s21568_s21 + $0x5c8] sm:$0xff] }
 0x478   : > { %15070 = vst [vmem:[%s24943_s28 + $0x10] sm:$0xff] %v14942_v5  ;;  %v20481_v18 = vadd.f32 %v13930_v63, %v24591_v50  ;;  %20396 = vmatprep.mubr.msk.f32.mxu0 %vm591_vm3, %v24970_v37  ;;  %v25025_v63 = vld [vmem:[%s21568_s21 + $0x5e0] sm:$0xff] }
 0x479   : > { %v14945_v17 = vadd.f32 %v20480_v58, %v24933_v2 }
 0x47a   : > { %v14944_v3 = vadd.f32 %v20481_v18, %v24933_v2  ;;  %v20239_v62 = vpop.f32.mrb[6].mxu0  ;;  %19613 = vmatmul.mubr.msk.f32.gmra.mrb[112].mxu1 %vm591_vm3, %v17327_v4 }
 0x47b   : > { %15073 = vst [vmem:[%s24943_s28 + $0x28] sm:$0xff] %v14945_v17  ;;  %v20482_v50 = vadd.f32 %v20239_v62, %v24599_v23  ;;  %v13940_v38 = vpop.f32.mrb[7].mxu0  ;;  %20397 = vmatmul.mubr.msk.f32.gmra.mrb[112].mxu0 %vm591_vm3, %v24983_v27  ;;  %19615 = vmatprep.mubr.msk.f32.mxu1 %vm591_vm3, %v17328_v47  ;;  %v25005_v23 = vld [vmem:[%s21568_s21 + $0x5d0] sm:$0xff]  ;;  %v16307_v62 = vld [vmem:[%s21568_s21 + $0x5a8] sm:$0xff] }
 0x47c   : > { %15072 = vst [vmem:[%s24943_s28 + $0x20] sm:$0xff] %v14944_v3  ;;  %v20483_v48 = vadd.f32 %v13940_v38, %v24602_v29  ;;  %20399 = vmatprep.mubr.msk.f32.mxu0 %vm591_vm3, %v24987_v6 }
 0x47d   : > { %v14947_v4 = vadd.f32 %v20482_v50, %v24933_v2  ;;  %v17343_v50 = vld [vmem:[%s21568_s21 + $0x600] sm:$0xff] }
 0x47e   : > { %v14946_v9 = vadd.f32 %v20483_v48, %v24933_v2  ;;  %v20242_v5 = vpop.f32.mrb[8].mxu0  ;;  %19616 = vmatmul.mubr.msk.f32.gmra.mrb[114].mxu1 %vm591_vm3, %v24910_v12  ;;  %v25021_v12 = vld [vmem:[%s21568_s21 + $0x5d8] sm:$0xff] }
 0x47f   : > { %15075 = vst [vmem:[%s24943_s28 + $0x38] sm:$0xff] %v14947_v4  ;;  %v20484_v29 = vadd.f32 %v20242_v5, %v24611_v21  ;;  %v13950_v47 = vpop.f32.mrb[9].mxu0  ;;  %20400 = vmatmul.mubr.msk.f32.gmra.mrb[114].mxu0 %vm591_vm3, %v25001_v45  ;;  %19618 = vmatprep.mubr.msk.f32.mxu1 %vm591_vm3, %v24926_v44 }
 0x480   : > { %15074 = vst [vmem:[%s24943_s28 + $0x30] sm:$0xff] %v14946_v9  ;;  %v20485_v58 = vadd.f32 %v13950_v47, %v24614_v41  ;;  %20402 = vmatprep.mubr.msk.f32.mxu0 %vm591_vm3, %v25005_v23  ;;  %v17344_v9 = vld [vmem:[%s21568_s21 + $0x608] sm:$0xff] }
 0x481   : > { %v14949_v21 = vadd.f32 %v20484_v29, %v24933_v2 }
 0x482   : > { %v14948_v18 = vadd.f32 %v20485_v58, %v24933_v2  ;;  %v20245_v17 = vpop.f32.mrb[10].mxu0  ;;  %19619 = vmatmul.mubr.msk.f32.gmra.mrb[116].mxu1 %vm591_vm3, %v24930_v60  ;;  %v17342_v60 = vld [vmem:[%s21568_s21 + $0x5e8] sm:$0xff] }
 0x483   : > { %15077 = vst [vmem:[%s24943_s28 + $0x48] sm:$0xff] %v14949_v21  ;;  %v20486_v41 = vadd.f32 %v20245_v17, %v24623_v40  ;;  %v13960_v44 = vpop.f32.mrb[11].mxu0  ;;  %20403 = vmatmul.mubr.msk.f32.gmra.mrb[116].mxu0 %vm591_vm3, %v25021_v12  ;;  %19621 = vmatprep.mubr.msk.f32.mxu1 %vm591_vm3, %v24949_v32  ;;  %v17346_v21 = vld [vmem:[%s21568_s21 + $0x618] sm:$0xff] }
 0x484   : > { %15076 = vst [vmem:[%s24943_s28 + $0x40] sm:$0xff] %v14948_v18  ;;  %v20487_v3 = vadd.f32 %v13960_v44, %v24626_v36  ;;  %20405 = vmatprep.mubr.msk.f32.mxu0 %vm591_vm3, %v25025_v63  ;;  %v17347_v18 = vld [vmem:[%s21568_s21 + $0x620] sm:$0xff]  ;;  %v17348_v44 = vld [vmem:[%s21568_s21 + $0x628] sm:$0xff] }
 0x485   : > { %v14951_v40 = vadd.f32 %v20486_v41, %v24933_v2 }
 0x486   : > { %v14950_v38 = vadd.f32 %v20487_v3, %v24933_v2  ;;  %v20248_v48 = vpop.f32.mrb[12].mxu0  ;;  %19622 = vmatmul.mubr.msk.f32.gmra.mrb[118].mxu1 %vm591_vm3, %v24953_v25  ;;  %v17345_v25 = vld [vmem:[%s21568_s21 + $0x610] sm:$0xff] }
 0x487   : > { %15079 = vst [vmem:[%s24943_s28 + $0x58] sm:$0xff] %v14951_v40  ;;  %v20488_v36 = vadd.f32 %v20248_v48, %v24636_v33  ;;  %v13970_v32 = vpop.f32.mrb[13].mxu0  ;;  %20406 = vmatmul.mubr.msk.f32.gmra.mrb[118].mxu0 %vm591_vm3, %v17342_v60  ;;  %19624 = vmatprep.mubr.msk.f32.mxu1 %vm591_vm3, %v16307_v62  ;;  %v17350_v40 = vld [vmem:[%s21568_s21 + $0x638] sm:$0xff] }
 0x488   : > { %15078 = vst [vmem:[%s24943_s28 + $0x50] sm:$0xff] %v14950_v38  ;;  %v20489_v4 = vadd.f32 %v13970_v32, %v24639_v61  ;;  %20408 = vmatprep.mubr.msk.f32.mxu0 %vm591_vm3, %v17343_v50 }
 0x489   : > { %v14953_v5 = vadd.f32 %v20488_v36, %v24933_v2 }
 0x48a   : > { %v14952_v29 = vadd.f32 %v20489_v4, %v24933_v2  ;;  %v20251_v33 = vpop.f32.mrb[14].mxu0  ;;  %19625 = vmatmul.mubr.msk.f32.gmra.mrb[120].mxu1 %vm591_vm3, %v24970_v37 }
 0x48b   : > { %15081 = vst [vmem:[%s24943_s28 + $0x68] sm:$0xff] %v14953_v5  ;;  %v20490_v47 = vadd.f32 %v20251_v33, %v24647_v13  ;;  %v13980_v58 = vpop.f32.mrb[15].mxu0  ;;  %20409 = vmatmul.mubr.msk.f32.gmra.mrb[120].mxu0 %vm591_vm3, %v17344_v9  ;;  %19627 = vmatprep.mubr.msk.f32.mxu1 %vm591_vm3, %v24983_v27 }
 0x48c   : > { %15080 = vst [vmem:[%s24943_s28 + $0x60] sm:$0xff] %v14952_v29  ;;  %v20491_v61 = vadd.f32 %v13980_v58, %v24650_v49  ;;  %20411 = vmatprep.mubr.msk.f32.mxu0 %vm591_vm3, %v17345_v25 }
 0x48d   : > { %v14955_v37 = vadd.f32 %v20490_v47, %v24933_v2 }
 0x48e   : > { %v14954_v13 = vadd.f32 %v20491_v61, %v24933_v2  ;;  %v20254_v17 = vpop.f32.mrb[16].mxu0  ;;  %19628 = vmatmul.mubr.msk.f32.gmra.mrb[122].mxu1 %vm591_vm3, %v24987_v6  ;;  %v17349_v6 = vld [vmem:[%s21568_s21 + $0x630] sm:$0xff] }
 0x48f   : > { %15083 = vst [vmem:[%s24943_s28 + $0x78] sm:$0xff] %v14955_v37  ;;  %v20492_v27 = vadd.f32 %v20254_v17, %v24659_v15  ;;  %v13990_v41 = vpop.f32.mrb[17].mxu0  ;;  %20412 = vmatmul.mubr.msk.f32.gmra.mrb[122].mxu0 %vm591_vm3, %v17346_v21  ;;  %19630 = vmatprep.mubr.msk.f32.mxu1 %vm591_vm3, %v25001_v45 }
 0x490   : > { %15082 = vst [vmem:[%s24943_s28 + $0x70] sm:$0xff] %v14954_v13  ;;  %v20493_v49 = vadd.f32 %v13990_v41, %v24662_v57  ;;  %20414 = vmatprep.mubr.msk.f32.mxu0 %vm591_vm3, %v17347_v18 }
 0x491   : > { %v14957_v3 = vadd.f32 %v20492_v27, %v24933_v2 }
 0x492   : > { %v14956_v60 = vadd.f32 %v20493_v49, %v24933_v2  ;;  %v20257_v15 = vpop.f32.mrb[18].mxu0  ;;  %19631 = vmatmul.mubr.msk.f32.gmra.mrb[124].mxu1 %vm591_vm3, %v25005_v23 }
 0x493   : > { %15085 = vst [vmem:[%s24943_s28 + $0x88] sm:$0xff] %v14957_v3  ;;  %v20494_v45 = vadd.f32 %v20257_v15, %v24671_v59  ;;  %v14000_v62 = vpop.f32.mrb[19].mxu0  ;;  %20415 = vmatmul.mubr.msk.f32.gmra.mrb[124].mxu0 %vm591_vm3, %v17348_v44  ;;  %19633 = vmatprep.mubr.msk.f32.mxu1 %vm591_vm3, %v25021_v12 }
 0x494   : > { %15084 = vst [vmem:[%s24943_s28 + $0x80] sm:$0xff] %v14956_v60  ;;  %v20495_v57 = vadd.f32 %v14000_v62, %v24674_v22  ;;  %20417 = vmatprep.mubr.msk.f32.mxu0 %vm591_vm3, %v17349_v6 }
 0x495   : > { %v14959_v50 = vadd.f32 %v20494_v45, %v24933_v2 }
 0x496   : > { %v14958_v23 = vadd.f32 %v20495_v57, %v24933_v2  ;;  %v20260_v59 = vpop.f32.mrb[20].mxu0  ;;  %19634 = vmatmul.mubr.msk.f32.gmra.mrb[126].mxu1 %vm591_vm3, %v25025_v63 }
 0x497   : > { %15087 = vst [vmem:[%s24943_s28 + $0x98] sm:$0xff] %v14959_v50  ;;  %v20496_v38 = vadd.f32 %v20260_v59, %v24683_v1  ;;  %v14010_v12 = vpop.f32.mrb[21].mxu0  ;;  %20418 = vmatmul.mubr.msk.f32.gmra.mrb[126].mxu0 %vm591_vm3, %v17350_v40 }
 0x498   : > { %15086 = vst [vmem:[%s24943_s28 + $0x90] sm:$0xff] %v14958_v23  ;;  %v20497_v22 = vadd.f32 %v14010_v12, %v24686_v52 }
 0x499   : > { %v14961_v48 = vadd.f32 %v20496_v38, %v24933_v2 }
 0x49a   : > { %v14960_v36 = vadd.f32 %v20497_v22, %v24933_v2  ;;  %v20263_v32 = vpop.f32.mrb[22].mxu0 }
 0x49b   : > { %15089 = vst [vmem:[%s24943_s28 + $0xa8] sm:$0xff] %v14961_v48  ;;  %v20498_v63 = vadd.f32 %v20263_v32, %v24697_v11  ;;  %v14020_v4 = vpop.f32.mrb[23].mxu0 }
 0x49c   : > { %15088 = vst [vmem:[%s24943_s28 + $0xa0] sm:$0xff] %v14960_v36  ;;  %v20499_v1 = vadd.f32 %v14020_v4, %v24700_v19 }
 0x49d   : > { %v14963_v9 = vadd.f32 %v20498_v63, %v24933_v2 }
 0x49e   : > { %v14962_v5 = vadd.f32 %v20499_v1, %v24933_v2  ;;  %v20266_v25 = vpop.f32.mrb[24].mxu0 }
 0x49f   : > { %15091 = vst [vmem:[%s24943_s28 + $0xb8] sm:$0xff] %v14963_v9  ;;  %v20500_v52 = vadd.f32 %v20266_v25, %v24709_v56  ;;  %v14030_v29 = vpop.f32.mrb[25].mxu0 }
 0x4a0   : > { %15090 = vst [vmem:[%s24943_s28 + $0xb0] sm:$0xff] %v14962_v5  ;;  %v20501_v33 = vadd.f32 %v14030_v29, %v24712_v51 }
 0x4a1   : > { %v14965_v11 = vadd.f32 %v20500_v52, %v24933_v2 }
 0x4a2   : > { %v14964_v47 = vadd.f32 %v20501_v33, %v24933_v2  ;;  %v20269_v58 = vpop.f32.mrb[26].mxu0 }
 0x4a3   : > { %15093 = vst [vmem:[%s24943_s28 + $0xc8] sm:$0xff] %v14965_v11  ;;  %v20502_v19 = vadd.f32 %v20269_v58, %v24721_v53  ;;  %v14040_v61 = vpop.f32.mrb[27].mxu0 }
 0x4a4   : > { %15092 = vst [vmem:[%s24943_s28 + $0xc0] sm:$0xff] %v14964_v47  ;;  %v20503_v21 = vadd.f32 %v14040_v61, %v24724_v43 }
 0x4a5   : > { %v14967_v56 = vadd.f32 %v20502_v19, %v24933_v2 }
 0x4a6   : > { %v14966_v37 = vadd.f32 %v20503_v21, %v24933_v2  ;;  %v20272_v18 = vpop.f32.mrb[28].mxu0  ;;  %v25558_v21 = vld [vmem:[#allocation3_spill] sm:$0xff] }
 0x4a7   : > { %15095 = vst [vmem:[%s24943_s28 + $0xd8] sm:$0xff] %v14967_v56  ;;  %v20504_v51 = vadd.f32 %v20272_v18, %v24733_v0  ;;  %v14050_v13 = vpop.f32.mrb[29].mxu0 }
 0x4a8   : > { %15094 = vst [vmem:[%s24943_s28 + $0xd0] sm:$0xff] %v14966_v37  ;;  %v20505_v17 = vadd.f32 %v14050_v13, %v24736_v14 }
 0x4a9   : > { %v14969_v53 = vadd.f32 %v20504_v51, %v24933_v2 }
 0x4aa   : > { %v14968_v27 = vadd.f32 %v20505_v17, %v24933_v2  ;;  %v20275_v41 = vpop.f32.mrb[30].mxu0  ;;  %v25560_v17 = vld [vmem:[#allocation28_spill] sm:$0xff] }
 0x4ab   : > { %15097 = vst [vmem:[%s24943_s28 + $0xe8] sm:$0xff] %v14969_v53  ;;  %v20506_v43 = vadd.f32 %v20275_v41, %v24743_v26  ;;  %v14060_v49 = vpop.f32.mrb[31].mxu0 }
 0x4ac   : > { %15096 = vst [vmem:[%s24943_s28 + $0xe0] sm:$0xff] %v14968_v27  ;;  %v20507_v44 = vadd.f32 %v14060_v49, %v24746_v30 }
 0x4ad   : > { %v14971_v0 = vadd.f32 %v20506_v43, %v24933_v2  ;;  %v25561_v43 = vld [vmem:[#allocation32_spill] sm:$0xff] }
 0x4ae   : > { %v14970_v3 = vadd.f32 %v20507_v44, %v24933_v2  ;;  %v20278_v6 = vpop.f32.mrb[32].mxu0 }
 0x4af   : > { %15099 = vst [vmem:[%s24943_s28 + $0xf8] sm:$0xff] %v14971_v0  ;;  %v20508_v14 = vadd.f32 %v20278_v6, %v24753_v34  ;;  %v14070_v60 = vpop.f32.mrb[33].mxu0  ;;  %v25562_v0 = vld [vmem:[#allocation5_spill] sm:$0xff] }
 0x4b0   : > { %15098 = vst [vmem:[%s24943_s28 + $0xf0] sm:$0xff] %v14970_v3  ;;  %v20509_v15 = vadd.f32 %v14070_v60, %v24756_v31 }
 0x4b1   : > { %v14973_v26 = vadd.f32 %v20508_v14, %v24933_v2 }
 0x4b2   : > { %v14972_v45 = vadd.f32 %v20509_v15, %v24933_v2  ;;  %v20281_v62 = vpop.f32.mrb[34].mxu0  ;;  %v25563_v15 = vld [vmem:[#allocation34_spill] sm:$0xff] }
 0x4b3   : > { %15101 = vst [vmem:[%s24943_s28 + $0x108] sm:$0xff] %v14973_v26  ;;  %v20510_v30 = vadd.f32 %v20281_v62, %v24763_v54  ;;  %v14080_v57 = vpop.f32.mrb[35].mxu0  ;;  %v25564_v62 = vld [vmem:[#allocation6_spill] sm:$0xff] }
 0x4b4   : > { %15100 = vst [vmem:[%s24943_s28 + $0x100] sm:$0xff] %v14972_v45  ;;  %v20511_v40 = vadd.f32 %v14080_v57, %v24766_v8 }
 0x4b5   : > { %v14975_v34 = vadd.f32 %v20510_v30, %v24933_v2 }
 0x4b6   : > { %v14974_v50 = vadd.f32 %v20511_v40, %v24933_v2  ;;  %v20284_v23 = vpop.f32.mrb[36].mxu0 }
 0x4b7   : > { %15103 = vst [vmem:[%s24943_s28 + $0x118] sm:$0xff] %v14975_v34  ;;  %v20512_v31 = vadd.f32 %v20284_v23, %v24774_v16  ;;  %v14090_v59 = vpop.f32.mrb[37].mxu0 }
 0x4b8   : > { %15102 = vst [vmem:[%s24943_s28 + $0x110] sm:$0xff] %v14974_v50  ;;  %v20513_v38 = vadd.f32 %v14090_v59, %v24777_v39  ;;  %v25565_v50 = vld [vmem:[#allocation36_spill] sm:$0xff]  ;;  %v25566_v59 = vld [vmem:[#allocation7_spill] sm:$0xff] }
 0x4b9   : > { %v14977_v54 = vadd.f32 %v20512_v31, %v24933_v2 }
 0x4ba   : > { %v14976_v12 = vadd.f32 %v20513_v38, %v24933_v2  ;;  %v20287_v22 = vpop.f32.mrb[38].mxu0 }
 0x4bb   : > { %15105 = vst [vmem:[%s24943_s28 + $0x128] sm:$0xff] %v14977_v54  ;;  %v20514_v8 = vadd.f32 %v20287_v22, %v24784_v46  ;;  %v14100_v48 = vpop.f32.mrb[39].mxu0 }
 0x4bc   : > { %15104 = vst [vmem:[%s24943_s28 + $0x120] sm:$0xff] %v14976_v12  ;;  %v20515_v36 = vadd.f32 %v14100_v48, %v24787_v42 }
 0x4bd   : > { %v14979_v16 = vadd.f32 %v20514_v8, %v24933_v2  ;;  %v25567_v8 = vld [vmem:[#allocation38_spill] sm:$0xff] }
 0x4be   : > { %v14978_v32 = vadd.f32 %v20515_v36, %v24933_v2  ;;  %v20290_v63 = vpop.f32.mrb[40].mxu0 }
 0x4bf   : > { %15107 = vst [vmem:[%s24943_s28 + $0x138] sm:$0xff] %v14979_v16  ;;  %v20516_v39 = vadd.f32 %v20290_v63, %v24794_v24  ;;  %v14110_v4 = vpop.f32.mrb[41].mxu0  ;;  %v25568_v16 = vld [vmem:[#allocation8_spill] sm:$0xff] }
 0x4c0   : > { %15106 = vst [vmem:[%s24943_s28 + $0x130] sm:$0xff] %v14978_v32  ;;  %v20517_v1 = vadd.f32 %v14110_v4, %v24797_v7 }
 0x4c1   : > { %v14981_v46 = vadd.f32 %v20516_v39, %v24933_v2 }
 0x4c2   : > { %v14980_v9 = vadd.f32 %v20517_v1, %v24933_v2  ;;  %v20293_v5 = vpop.f32.mrb[42].mxu0  ;;  %v25569_v1 = vld [vmem:[#allocation40_spill] sm:$0xff] }
 0x4c3   : > { %15109 = vst [vmem:[%s24943_s28 + $0x148] sm:$0xff] %v14981_v46  ;;  %v20518_v42 = vadd.f32 %v20293_v5, %v24804_v55  ;;  %v14120_v25 = vpop.f32.mrb[43].mxu0  ;;  %v25570_v5 = vld [vmem:[#allocation9_spill] sm:$0xff] }
 0x4c4   : > { %15108 = vst [vmem:[%s24943_s28 + $0x140] sm:$0xff] %v14980_v9  ;;  %v20519_v52 = vadd.f32 %v14120_v25, %v24807_v28 }
 0x4c5   : > { %v14983_v24 = vadd.f32 %v20518_v42, %v24933_v2 }
 0x4c6   : > { %v14982_v29 = vadd.f32 %v20519_v52, %v24933_v2  ;;  %v20296_v33 = vpop.f32.mrb[44].mxu0 }
 0x4c7   : > { %15111 = vst [vmem:[%s24943_s28 + $0x158] sm:$0xff] %v14983_v24  ;;  %v20520_v7 = vadd.f32 %v20296_v33, %v24815_v35  ;;  %v14130_v11 = vpop.f32.mrb[45].mxu0 }
 0x4c8   : > { %15110 = vst [vmem:[%s24943_s28 + $0x150] sm:$0xff] %v14982_v29  ;;  %v20521_v47 = vadd.f32 %v14130_v11, %v24818_v10  ;;  %v25559_v10 = vld [vmem:[#allocation31_spill] sm:$0xff]  ;;  %v25571_v29 = vld [vmem:[#allocation42_spill] sm:$0xff] }
 0x4c9   : > { %v14985_v55 = vadd.f32 %v20520_v7, %v24933_v2  ;;  %v25572_v11 = vld [vmem:[#allocation10_spill] sm:$0xff] }
 0x4ca   : > { %v14984_v58 = vadd.f32 %v20521_v47, %v24933_v2  ;;  %v20299_v19 = vpop.f32.mrb[46].mxu0 }
 0x4cb   : > { %15113 = vst [vmem:[%s24943_s28 + $0x168] sm:$0xff] %v14985_v55  ;;  %v20522_v28 = vadd.f32 %v20299_v19, %v24825_v20  ;;  %v14140_v61 = vpop.f32.mrb[47].mxu0 }
 0x4cc   : > { %15112 = vst [vmem:[%s24943_s28 + $0x160] sm:$0xff] %v14984_v58  ;;  %v20523_v56 = vadd.f32 %v14140_v61, %v25558_v21 }
 0x4cd   : > { %v14987_v35 = vadd.f32 %v20522_v28, %v24933_v2  ;;  %v25573_v28 = vld [vmem:[#allocation44_spill] sm:$0xff] }
 0x4ce   : > { %v14986_v37 = vadd.f32 %v20523_v56, %v24933_v2  ;;  %v20302_v18 = vpop.f32.mrb[48].mxu0  ;;  %v25574_v56 = vld [vmem:[#allocation29_spill] sm:$0xff] }
 0x4cf   : > { %15115 = vst [vmem:[%s24943_s28 + $0x178] sm:$0xff] %v14987_v35  ;;  %v20524_v51 = vadd.f32 %v20302_v18, %v25559_v10  ;;  %v14150_v13 = vpop.f32.mrb[49].mxu0 }
 0x4d0   : > { %15114 = vst [vmem:[%s24943_s28 + $0x170] sm:$0xff] %v14986_v37  ;;  %v20525_v53 = vadd.f32 %v14150_v13, %v25560_v17 }
 0x4d1   : > { %v14989_v20 = vadd.f32 %v20524_v51, %v24933_v2 }
 0x4d2   : > { %v14988_v27 = vadd.f32 %v20525_v53, %v24933_v2  ;;  %v20305_v41 = vpop.f32.mrb[50].mxu0 }
 0x4d3   : > { %15117 = vst [vmem:[%s24943_s28 + $0x188] sm:$0xff] %v14989_v20  ;;  %v20526_v49 = vadd.f32 %v20305_v41, %v25561_v43  ;;  %v14160_v44 = vpop.f32.mrb[51].mxu0 }
 0x4d4   : > { %15116 = vst [vmem:[%s24943_s28 + $0x180] sm:$0xff] %v14988_v27  ;;  %v20527_v3 = vadd.f32 %v14160_v44, %v25562_v0 }
 0x4d5   : > { %v14991_v6 = vadd.f32 %v20526_v49, %v24933_v2 }
 0x4d6   : > { %v14990_v14 = vadd.f32 %v20527_v3, %v24933_v2  ;;  %v20308_v60 = vpop.f32.mrb[52].mxu0 }
 0x4d7   : > { %15119 = vst [vmem:[%s24943_s28 + $0x198] sm:$0xff] %v14991_v6  ;;  %v20528_v26 = vadd.f32 %v20308_v60, %v25563_v15  ;;  %v14170_v45 = vpop.f32.mrb[53].mxu0 }
 0x4d8   : > { %15118 = vst [vmem:[%s24943_s28 + $0x190] sm:$0xff] %v14990_v14  ;;  %v20529_v30 = vadd.f32 %v14170_v45, %v25564_v62 }
 0x4d9   : > { %v14993_v57 = vadd.f32 %v20528_v26, %v24933_v2 }
 0x4da   : > { %v14992_v40 = vadd.f32 %v20529_v30, %v24933_v2  ;;  %v20311_v34 = vpop.f32.mrb[54].mxu0 }
 0x4db   : > { %15121 = vst [vmem:[%s24943_s28 + $0x1a8] sm:$0xff] %v14993_v57  ;;  %v20530_v23 = vadd.f32 %v20311_v34, %v25565_v50  ;;  %v14180_v31 = vpop.f32.mrb[55].mxu0 }
 0x4dc   : > { %15120 = vst [vmem:[%s24943_s28 + $0x1a0] sm:$0xff] %v14992_v40  ;;  %v20531_v38 = vadd.f32 %v14180_v31, %v25566_v59 }
 0x4dd   : > { %v14995_v54 = vadd.f32 %v20530_v23, %v24933_v2 }
 0x4de   : > { %v14994_v12 = vadd.f32 %v20531_v38, %v24933_v2  ;;  %v20314_v22 = vpop.f32.mrb[56].mxu0 }
 0x4df   : > { %15123 = vst [vmem:[%s24943_s28 + $0x1b8] sm:$0xff] %v14995_v54  ;;  %v20532_v48 = vadd.f32 %v20314_v22, %v25567_v8  ;;  %v14190_v36 = vpop.f32.mrb[57].mxu0 }
 0x4e0   : > { %15122 = vst [vmem:[%s24943_s28 + $0x1b0] sm:$0xff] %v14994_v12  ;;  %v20533_v32 = vadd.f32 %v14190_v36, %v25568_v16 }
 0x4e1   : > { %v14997_v63 = vadd.f32 %v20532_v48, %v24933_v2 }
 0x4e2   : > { %v14996_v39 = vadd.f32 %v20533_v32, %v24933_v2  ;;  %v20317_v4 = vpop.f32.mrb[58].mxu0 }
 0x4e3   : > { %15125 = vst [vmem:[%s24943_s28 + $0x1c8] sm:$0xff] %v14997_v63  ;;  %v20534_v46 = vadd.f32 %v20317_v4, %v25569_v1  ;;  %v14200_v9 = vpop.f32.mrb[59].mxu0 }
 0x4e4   : > { %15124 = vst [vmem:[%s24943_s28 + $0x1c0] sm:$0xff] %v14996_v39  ;;  %v20535_v42 = vadd.f32 %v14200_v9, %v25570_v5 }
 0x4e5   : > { %v14999_v25 = vadd.f32 %v20534_v46, %v24933_v2 }
 0x4e6   : > { %v14998_v52 = vadd.f32 %v20535_v42, %v24933_v2  ;;  %v20320_v24 = vpop.f32.mrb[60].mxu0 }
 0x4e7   : > { %15127 = vst [vmem:[%s24943_s28 + $0x1d8] sm:$0xff] %v14999_v25  ;;  %v20536_v33 = vadd.f32 %v20320_v24, %v25571_v29  ;;  %v14210_v7 = vpop.f32.mrb[61].mxu0 }
 0x4e8   : > { %15126 = vst [vmem:[%s24943_s28 + $0x1d0] sm:$0xff] %v14998_v52  ;;  %v20537_v47 = vadd.f32 %v14210_v7, %v25572_v11 }
 0x4e9   : > { %v15001_v55 = vadd.f32 %v20536_v33, %v24933_v2 }
 0x4ea   : > { %v15000_v58 = vadd.f32 %v20537_v47, %v24933_v2  ;;  %v20323_v19 = vpop.f32.mrb[62].mxu0 }
 0x4eb   : > { %15129 = vst [vmem:[%s24943_s28 + $0x1e8] sm:$0xff] %v15001_v55  ;;  %v20538_v61 = vadd.f32 %v20323_v19, %v25573_v28  ;;  %v14220_v21 = vpop.f32.mrb[63].mxu0 }
 0x4ec   : > { %15128 = vst [vmem:[%s24943_s28 + $0x1e0] sm:$0xff] %v15000_v58  ;;  %v20539_v35 = vadd.f32 %v14220_v21, %v25574_v56 }
 0x4ed   : > { %v15003_v37 = vadd.f32 %v20538_v61, %v24933_v2  ;;  %v19542_v18 = vpop.f32.mrb[64].mxu1 }
 0x4ee   : > { %v15002_v10 = vadd.f32 %v20539_v35, %v24933_v2  ;;  %v20326_v51 = vpop.f32.mrb[64].mxu0  ;;  %v7798_v13 = vpop.f32.mrb[65].mxu1 }
 0x4ef   : > { %15131 = vst [vmem:[%s24943_s28 + $0x1f8] sm:$0xff] %v15003_v37  ;;  %v20540_v17 = vadd.f32 %v20326_v51, %v19542_v18  ;;  %v14230_v53 = vpop.f32.mrb[65].mxu0 }
 0x4f0   : > { %15130 = vst [vmem:[%s24943_s28 + $0x1f0] sm:$0xff] %v15002_v10  ;;  %v20541_v20 = vadd.f32 %v14230_v53, %v7798_v13 }
 0x4f1   : > { %v15005_v27 = vadd.f32 %v20540_v17, %v24933_v2  ;;  %v19545_v41 = vpop.f32.mrb[66].mxu1 }
 0x4f2   : > { %v15004_v43 = vadd.f32 %v20541_v20, %v24933_v2  ;;  %v20329_v49 = vpop.f32.mrb[66].mxu0  ;;  %v7808_v44 = vpop.f32.mrb[67].mxu1 }
 0x4f3   : > { %15133 = vst [vmem:[%s24943_s28 + $0x208] sm:$0xff] %v15005_v27  ;;  %v20542_v0 = vadd.f32 %v20329_v49, %v19545_v41  ;;  %v14240_v3 = vpop.f32.mrb[67].mxu0 }
 0x4f4   : > { %15132 = vst [vmem:[%s24943_s28 + $0x200] sm:$0xff] %v15004_v43  ;;  %v20543_v6 = vadd.f32 %v14240_v3, %v7808_v44 }
 0x4f5   : > { %v15007_v14 = vadd.f32 %v20542_v0, %v24933_v2  ;;  %v19548_v60 = vpop.f32.mrb[68].mxu1 }
 0x4f6   : > { %v15006_v15 = vadd.f32 %v20543_v6, %v24933_v2  ;;  %v20332_v26 = vpop.f32.mrb[68].mxu0  ;;  %v7818_v45 = vpop.f32.mrb[69].mxu1 }
 0x4f7   : > { %15135 = vst [vmem:[%s24943_s28 + $0x218] sm:$0xff] %v15007_v14  ;;  %v20544_v62 = vadd.f32 %v20332_v26, %v19548_v60  ;;  %v14250_v30 = vpop.f32.mrb[69].mxu0 }
 0x4f8   : > { %15134 = vst [vmem:[%s24943_s28 + $0x210] sm:$0xff] %v15006_v15  ;;  %v20545_v57 = vadd.f32 %v14250_v30, %v7818_v45 }
 0x4f9   : > { %v15009_v40 = vadd.f32 %v20544_v62, %v24933_v2  ;;  %v19551_v34 = vpop.f32.mrb[70].mxu1 }
 0x4fa   : > { %v15008_v50 = vadd.f32 %v20545_v57, %v24933_v2  ;;  %v20335_v23 = vpop.f32.mrb[70].mxu0  ;;  %v7828_v31 = vpop.f32.mrb[71].mxu1 }
 0x4fb   : > { %15137 = vst [vmem:[%s24943_s28 + $0x228] sm:$0xff] %v15009_v40  ;;  %v20546_v59 = vadd.f32 %v20335_v23, %v19551_v34  ;;  %v14260_v38 = vpop.f32.mrb[71].mxu0 }
 0x4fc   : > { %15136 = vst [vmem:[%s24943_s28 + $0x220] sm:$0xff] %v15008_v50  ;;  %v20547_v54 = vadd.f32 %v14260_v38, %v7828_v31 }
 0x4fd   : > { %v15011_v12 = vadd.f32 %v20546_v59, %v24933_v2  ;;  %v19554_v22 = vpop.f32.mrb[72].mxu1 }
 0x4fe   : > { %v15010_v8 = vadd.f32 %v20547_v54, %v24933_v2  ;;  %v20338_v48 = vpop.f32.mrb[72].mxu0  ;;  %v7838_v36 = vpop.f32.mrb[73].mxu1 }
 0x4ff   : > { %15139 = vst [vmem:[%s24943_s28 + $0x238] sm:$0xff] %v15011_v12  ;;  %v20548_v16 = vadd.f32 %v20338_v48, %v19554_v22  ;;  %v14270_v32 = vpop.f32.mrb[73].mxu0 }
 0x500   : > { %15138 = vst [vmem:[%s24943_s28 + $0x230] sm:$0xff] %v15010_v8  ;;  %v20549_v63 = vadd.f32 %v14270_v32, %v7838_v36 }
 0x501   : > { %v15013_v39 = vadd.f32 %v20548_v16, %v24933_v2  ;;  %v19557_v4 = vpop.f32.mrb[74].mxu1 }
 0x502   : > { %v15012_v1 = vadd.f32 %v20549_v63, %v24933_v2  ;;  %v20341_v46 = vpop.f32.mrb[74].mxu0  ;;  %v7848_v9 = vpop.f32.mrb[75].mxu1 }
 0x503   : > { %15141 = vst [vmem:[%s24943_s28 + $0x248] sm:$0xff] %v15013_v39  ;;  %v20550_v5 = vadd.f32 %v20341_v46, %v19557_v4  ;;  %v14280_v42 = vpop.f32.mrb[75].mxu0 }
 0x504   : > { %15140 = vst [vmem:[%s24943_s28 + $0x240] sm:$0xff] %v15012_v1  ;;  %v20551_v25 = vadd.f32 %v14280_v42, %v7848_v9 }
 0x505   : > { %v15015_v52 = vadd.f32 %v20550_v5, %v24933_v2  ;;  %v19560_v24 = vpop.f32.mrb[76].mxu1 }
 0x506   : > { %v15014_v29 = vadd.f32 %v20551_v25, %v24933_v2  ;;  %v20344_v33 = vpop.f32.mrb[76].mxu0  ;;  %v7858_v7 = vpop.f32.mrb[77].mxu1 }
 0x507   : > { %15143 = vst [vmem:[%s24943_s28 + $0x258] sm:$0xff] %v15015_v52  ;;  %v20552_v11 = vadd.f32 %v20344_v33, %v19560_v24  ;;  %v14290_v47 = vpop.f32.mrb[77].mxu0 }
 0x508   : > { %15142 = vst [vmem:[%s24943_s28 + $0x250] sm:$0xff] %v15014_v29  ;;  %v20553_v55 = vadd.f32 %v14290_v47, %v7858_v7 }
 0x509   : > { %v15017_v58 = vadd.f32 %v20552_v11, %v24933_v2  ;;  %v19563_v19 = vpop.f32.mrb[78].mxu1 }
 0x50a   : > { %v15016_v28 = vadd.f32 %v20553_v55, %v24933_v2  ;;  %v20347_v61 = vpop.f32.mrb[78].mxu0  ;;  %v7868_v21 = vpop.f32.mrb[79].mxu1 }
 0x50b   : > { %15145 = vst [vmem:[%s24943_s28 + $0x268] sm:$0xff] %v15017_v58  ;;  %v20554_v56 = vadd.f32 %v20347_v61, %v19563_v19  ;;  %v14300_v35 = vpop.f32.mrb[79].mxu0 }
 0x50c   : > { %15144 = vst [vmem:[%s24943_s28 + $0x260] sm:$0xff] %v15016_v28  ;;  %v20555_v37 = vadd.f32 %v14300_v35, %v7868_v21 }
 0x50d   : > { %v15019_v18 = vadd.f32 %v20554_v56, %v24933_v2  ;;  %v19566_v10 = vpop.f32.mrb[80].mxu1 }
 0x50e   : > { %v15018_v51 = vadd.f32 %v20555_v37, %v24933_v2  ;;  %v20350_v13 = vpop.f32.mrb[80].mxu0  ;;  %v7878_v17 = vpop.f32.mrb[81].mxu1 }
 0x50f   : > { %15147 = vst [vmem:[%s24943_s28 + $0x278] sm:$0xff] %v15019_v18  ;;  %v20556_v53 = vadd.f32 %v20350_v13, %v19566_v10  ;;  %v14310_v20 = vpop.f32.mrb[81].mxu0 }
 0x510   : > { %15146 = vst [vmem:[%s24943_s28 + $0x270] sm:$0xff] %v15018_v51  ;;  %v20557_v27 = vadd.f32 %v14310_v20, %v7878_v17 }
 0x511   : > { %v15021_v41 = vadd.f32 %v20556_v53, %v24933_v2  ;;  %v19569_v43 = vpop.f32.mrb[82].mxu1 }
 0x512   : > { %v15020_v49 = vadd.f32 %v20557_v27, %v24933_v2  ;;  %v20353_v44 = vpop.f32.mrb[82].mxu0  ;;  %v7888_v0 = vpop.f32.mrb[83].mxu1 }
 0x513   : > { %15149 = vst [vmem:[%s24943_s28 + $0x288] sm:$0xff] %v15021_v41  ;;  %v20558_v3 = vadd.f32 %v20353_v44, %v19569_v43  ;;  %v14320_v6 = vpop.f32.mrb[83].mxu0 }
 0x514   : > { %15148 = vst [vmem:[%s24943_s28 + $0x280] sm:$0xff] %v15020_v49  ;;  %v20559_v14 = vadd.f32 %v14320_v6, %v7888_v0 }
 0x515   : > { %v15023_v60 = vadd.f32 %v20558_v3, %v24933_v2  ;;  %v19572_v15 = vpop.f32.mrb[84].mxu1 }
 0x516   : > { %v15022_v26 = vadd.f32 %v20559_v14, %v24933_v2  ;;  %v20356_v45 = vpop.f32.mrb[84].mxu0  ;;  %v7898_v62 = vpop.f32.mrb[85].mxu1 }
 0x517   : > { %15151 = vst [vmem:[%s24943_s28 + $0x298] sm:$0xff] %v15023_v60  ;;  %v20560_v30 = vadd.f32 %v20356_v45, %v19572_v15  ;;  %v14330_v57 = vpop.f32.mrb[85].mxu0 }
 0x518   : > { %15150 = vst [vmem:[%s24943_s28 + $0x290] sm:$0xff] %v15022_v26  ;;  %v20561_v40 = vadd.f32 %v14330_v57, %v7898_v62 }
 0x519   : > { %v15025_v34 = vadd.f32 %v20560_v30, %v24933_v2  ;;  %v19575_v50 = vpop.f32.mrb[86].mxu1 }
 0x51a   : > { %v15024_v23 = vadd.f32 %v20561_v40, %v24933_v2  ;;  %v20359_v31 = vpop.f32.mrb[86].mxu0  ;;  %v7908_v59 = vpop.f32.mrb[87].mxu1 }
 0x51b   : > { %15153 = vst [vmem:[%s24943_s28 + $0x2a8] sm:$0xff] %v15025_v34  ;;  %v20562_v38 = vadd.f32 %v20359_v31, %v19575_v50  ;;  %v14340_v54 = vpop.f32.mrb[87].mxu0 }
 0x51c   : > { %15152 = vst [vmem:[%s24943_s28 + $0x2a0] sm:$0xff] %v15024_v23  ;;  %v20563_v12 = vadd.f32 %v14340_v54, %v7908_v59 }
 0x51d   : > { %v15027_v22 = vadd.f32 %v20562_v38, %v24933_v2  ;;  %v19578_v8 = vpop.f32.mrb[88].mxu1 }
 0x51e   : > { %v15026_v48 = vadd.f32 %v20563_v12, %v24933_v2  ;;  %v20362_v36 = vpop.f32.mrb[88].mxu0  ;;  %v7918_v16 = vpop.f32.mrb[89].mxu1 }
 0x51f   : > { %15155 = vst [vmem:[%s24943_s28 + $0x2b8] sm:$0xff] %v15027_v22  ;;  %v20564_v32 = vadd.f32 %v20362_v36, %v19578_v8  ;;  %v14350_v63 = vpop.f32.mrb[89].mxu0  ;;  %v25313_v8 = vld [vmem:[%s24921_s24] ss:$0 sm:$0xff] }
 0x520   : > { %15154 = vst [vmem:[%s24943_s28 + $0x2b0] sm:$0xff] %v15026_v48  ;;  %v20565_v39 = vadd.f32 %v14350_v63, %v7918_v16 }
 0x521   : > { %v15029_v4 = vadd.f32 %v20564_v32, %v24933_v2  ;;  %v19581_v1 = vpop.f32.mrb[90].mxu1 }
 0x522   : > { %v15028_v46 = vadd.f32 %v20565_v39, %v24933_v2  ;;  %v20365_v9 = vpop.f32.mrb[90].mxu0  ;;  %v7928_v5 = vpop.f32.mrb[91].mxu1 }
 0x523   : > { %15157 = vst [vmem:[%s24943_s28 + $0x2c8] sm:$0xff] %v15029_v4  ;;  %v20566_v42 = vadd.f32 %v20365_v9, %v19581_v1  ;;  %v14360_v25 = vpop.f32.mrb[91].mxu0 }
 0x524   : > { %15156 = vst [vmem:[%s24943_s28 + $0x2c0] sm:$0xff] %v15028_v46  ;;  %v20567_v52 = vadd.f32 %v14360_v25, %v7928_v5 }
 0x525   : > { %v15031_v24 = vadd.f32 %v20566_v42, %v24933_v2  ;;  %v19584_v29 = vpop.f32.mrb[92].mxu1 }
 0x526   : > { %v15030_v33 = vadd.f32 %v20567_v52, %v24933_v2  ;;  %v20368_v7 = vpop.f32.mrb[92].mxu0  ;;  %v7938_v11 = vpop.f32.mrb[93].mxu1 }
 0x527   : > { %15159 = vst [vmem:[%s24943_s28 + $0x2d8] sm:$0xff] %v15031_v24  ;;  %v20568_v47 = vadd.f32 %v20368_v7, %v19584_v29  ;;  %v14370_v55 = vpop.f32.mrb[93].mxu0 }
 0x528   : > { %15158 = vst [vmem:[%s24943_s28 + $0x2d0] sm:$0xff] %v15030_v33  ;;  %v20569_v58 = vadd.f32 %v14370_v55, %v7938_v11 }
 0x529   : > { %v15033_v19 = vadd.f32 %v20568_v47, %v24933_v2  ;;  %v19587_v28 = vpop.f32.mrb[94].mxu1 }
 0x52a   : > { %v15032_v61 = vadd.f32 %v20569_v58, %v24933_v2  ;;  %v20371_v21 = vpop.f32.mrb[94].mxu0  ;;  %v7948_v56 = vpop.f32.mrb[95].mxu1 }
 0x52b   : > { %15161 = vst [vmem:[%s24943_s28 + $0x2e8] sm:$0xff] %v15033_v19  ;;  %v20570_v35 = vadd.f32 %v20371_v21, %v19587_v28  ;;  %v14380_v37 = vpop.f32.mrb[95].mxu0 }
 0x52c   : > { %15160 = vst [vmem:[%s24943_s28 + $0x2e0] sm:$0xff] %v15032_v61  ;;  %v20571_v18 = vadd.f32 %v14380_v37, %v7948_v56 }
 0x52d   : > { %v15035_v10 = vadd.f32 %v20570_v35, %v24933_v2  ;;  %v19590_v51 = vpop.f32.mrb[96].mxu1 }
 0x52e   : > { %v15034_v13 = vadd.f32 %v20571_v18, %v24933_v2  ;;  %v20374_v17 = vpop.f32.mrb[96].mxu0  ;;  %v7958_v53 = vpop.f32.mrb[97].mxu1 }
 0x52f   : > { %15163 = vst [vmem:[%s24943_s28 + $0x2f8] sm:$0xff] %v15035_v10  ;;  %v20572_v20 = vadd.f32 %v20374_v17, %v19590_v51  ;;  %v14390_v27 = vpop.f32.mrb[97].mxu0 }
 0x530   : > { %15162 = vst [vmem:[%s24943_s28 + $0x2f0] sm:$0xff] %v15034_v13  ;;  %v20573_v41 = vadd.f32 %v14390_v27, %v7958_v53 }
 0x531   : > { %v15037_v43 = vadd.f32 %v20572_v20, %v24933_v2  ;;  %v19593_v49 = vpop.f32.mrb[98].mxu1 }
 0x532   : > { %v15036_v44 = vadd.f32 %v20573_v41, %v24933_v2  ;;  %v20377_v0 = vpop.f32.mrb[98].mxu0  ;;  %v7968_v3 = vpop.f32.mrb[99].mxu1 }
 0x533   : > { %15165 = vst [vmem:[%s24943_s28 + $0x308] sm:$0xff] %v15037_v43  ;;  %v20574_v6 = vadd.f32 %v20377_v0, %v19593_v49  ;;  %v14400_v14 = vpop.f32.mrb[99].mxu0 }
 0x534   : > { %15164 = vst [vmem:[%s24943_s28 + $0x300] sm:$0xff] %v15036_v44  ;;  %v20575_v60 = vadd.f32 %v14400_v14, %v7968_v3 }
 0x535   : > { %v15039_v15 = vadd.f32 %v20574_v6, %v24933_v2  ;;  %v19596_v26 = vpop.f32.mrb[100].mxu1 }
 0x536   : > { %v15038_v45 = vadd.f32 %v20575_v60, %v24933_v2  ;;  %v20380_v62 = vpop.f32.mrb[100].mxu0  ;;  %v7978_v30 = vpop.f32.mrb[101].mxu1 }
 0x537   : > { %15167 = vst [vmem:[%s24943_s28 + $0x318] sm:$0xff] %v15039_v15  ;;  %v20576_v57 = vadd.f32 %v20380_v62, %v19596_v26  ;;  %v14410_v40 = vpop.f32.mrb[101].mxu0 }
 0x538   : > { %15166 = vst [vmem:[%s24943_s28 + $0x310] sm:$0xff] %v15038_v45  ;;  %v20577_v34 = vadd.f32 %v14410_v40, %v7978_v30 }
 0x539   : > { %v15041_v50 = vadd.f32 %v20576_v57, %v24933_v2  ;;  %v19599_v23 = vpop.f32.mrb[102].mxu1 }
 0x53a   : > { %v15040_v31 = vadd.f32 %v20577_v34, %v24933_v2  ;;  %v20383_v59 = vpop.f32.mrb[102].mxu0  ;;  %v7988_v38 = vpop.f32.mrb[103].mxu1 }
 0x53b   : > { %15169 = vst [vmem:[%s24943_s28 + $0x328] sm:$0xff] %v15041_v50  ;;  %v20578_v54 = vadd.f32 %v20383_v59, %v19599_v23  ;;  %v14420_v12 = vpop.f32.mrb[103].mxu0 }
 0x53c   : > { %15168 = vst [vmem:[%s24943_s28 + $0x320] sm:$0xff] %v15040_v31  ;;  %v20579_v22 = vadd.f32 %v14420_v12, %v7988_v38 }
 0x53d   : > { %v15043_v48 = vadd.f32 %v25313_v8, %v20578_v54  ;;  %v19602_v36 = vpop.f32.mrb[104].mxu1 }
 0x53e   : > { %v15042_v16 = vadd.f32 %v25313_v8, %v20579_v22  ;;  %v20386_v32 = vpop.f32.mrb[104].mxu0  ;;  %v7998_v63 = vpop.f32.mrb[105].mxu1 }
 0x53f   : > { %15171 = vst [vmem:[%s24943_s28 + $0x338] sm:$0xff] %v15043_v48  ;;  %v20580_v2 = vadd.f32 %v20386_v32, %v19602_v36  ;;  %v14430_v39 = vpop.f32.mrb[105].mxu0 }
 0x540   : > { %15170 = vst [vmem:[%s24943_s28 + $0x330] sm:$0xff] %v15042_v16  ;;  %v20581_v4 = vadd.f32 %v14430_v39, %v7998_v63 }
 0x541   : > { %v15045_v1 = vadd.f32 %v25313_v8, %v20580_v2  ;;  %v19605_v46 = vpop.f32.mrb[106].mxu1 }
 0x542   : > { %v15044_v9 = vadd.f32 %v25313_v8, %v20581_v4  ;;  %v20389_v5 = vpop.f32.mrb[106].mxu0  ;;  %v8008_v42 = vpop.f32.mrb[107].mxu1 }
 0x543   : > { %15173 = vst [vmem:[%s24943_s28 + $0x348] sm:$0xff] %v15045_v1  ;;  %v20582_v25 = vadd.f32 %v20389_v5, %v19605_v46  ;;  %v14440_v52 = vpop.f32.mrb[107].mxu0 }
 0x544   : > { %15172 = vst [vmem:[%s24943_s28 + $0x340] sm:$0xff] %v15044_v9  ;;  %v20583_v24 = vadd.f32 %v14440_v52, %v8008_v42 }
 0x545   : > { %v15047_v29 = vadd.f32 %v25313_v8, %v20582_v25  ;;  %v19608_v33 = vpop.f32.mrb[108].mxu1 }
 0x546   : > { %v15046_v7 = vadd.f32 %v25313_v8, %v20583_v24  ;;  %v20392_v11 = vpop.f32.mrb[108].mxu0  ;;  %v8018_v47 = vpop.f32.mrb[109].mxu1 }
 0x547   : > { %15175 = vst [vmem:[%s24943_s28 + $0x358] sm:$0xff] %v15047_v29  ;;  %v20584_v55 = vadd.f32 %v20392_v11, %v19608_v33  ;;  %v14450_v58 = vpop.f32.mrb[109].mxu0 }
 0x548   : > { %15174 = vst [vmem:[%s24943_s28 + $0x350] sm:$0xff] %v15046_v7  ;;  %v20585_v19 = vadd.f32 %v14450_v58, %v8018_v47 }
 0x549   : > { %v15049_v28 = vadd.f32 %v25313_v8, %v20584_v55  ;;  %v19611_v61 = vpop.f32.mrb[110].mxu1 }
 0x54a   : > { %v15048_v21 = vadd.f32 %v25313_v8, %v20585_v19  ;;  %v20395_v56 = vpop.f32.mrb[110].mxu0  ;;  %v8028_v35 = vpop.f32.mrb[111].mxu1 }
 0x54b   : > { %15177 = vst [vmem:[%s24943_s28 + $0x368] sm:$0xff] %v15049_v28  ;;  %v20586_v37 = vadd.f32 %v20395_v56, %v19611_v61  ;;  %v14460_v18 = vpop.f32.mrb[111].mxu0 }
 0x54c   : > { %15176 = vst [vmem:[%s24943_s28 + $0x360] sm:$0xff] %v15048_v21  ;;  %v20587_v10 = vadd.f32 %v14460_v18, %v8028_v35 }
 0x54d   : > { %v15051_v51 = vadd.f32 %v25313_v8, %v20586_v37  ;;  %v19614_v13 = vpop.f32.mrb[112].mxu1 }
 0x54e   : > { %v15050_v17 = vadd.f32 %v25313_v8, %v20587_v10  ;;  %v20398_v53 = vpop.f32.mrb[112].mxu0  ;;  %v8038_v20 = vpop.f32.mrb[113].mxu1 }
 0x54f   : > { %15179 = vst [vmem:[%s24943_s28 + $0x378] sm:$0xff] %v15051_v51  ;;  %v20588_v27 = vadd.f32 %v20398_v53, %v19614_v13  ;;  %v14470_v41 = vpop.f32.mrb[113].mxu0 }
 0x550   : > { %15178 = vst [vmem:[%s24943_s28 + $0x370] sm:$0xff] %v15050_v17  ;;  %v20589_v43 = vadd.f32 %v14470_v41, %v8038_v20 }
 0x551   : > { %v15053_v49 = vadd.f32 %v25313_v8, %v20588_v27  ;;  %v19617_v44 = vpop.f32.mrb[114].mxu1 }
 0x552   : > { %v15052_v0 = vadd.f32 %v25313_v8, %v20589_v43  ;;  %v20401_v3 = vpop.f32.mrb[114].mxu0  ;;  %v8048_v6 = vpop.f32.mrb[115].mxu1 }
 0x553   : > { %15181 = vst [vmem:[%s24943_s28 + $0x388] sm:$0xff] %v15053_v49  ;;  %v20590_v14 = vadd.f32 %v20401_v3, %v19617_v44  ;;  %v14480_v60 = vpop.f32.mrb[115].mxu0 }
 0x554   : > { %15180 = vst [vmem:[%s24943_s28 + $0x380] sm:$0xff] %v15052_v0  ;;  %v20591_v15 = vadd.f32 %v14480_v60, %v8048_v6 }
 0x555   : > { %v15055_v26 = vadd.f32 %v25313_v8, %v20590_v14  ;;  %v19620_v45 = vpop.f32.mrb[116].mxu1 }
 0x556   : > { %v15054_v62 = vadd.f32 %v25313_v8, %v20591_v15  ;;  %v20404_v30 = vpop.f32.mrb[116].mxu0  ;;  %v8058_v57 = vpop.f32.mrb[117].mxu1 }
 0x557   : > { %15183 = vst [vmem:[%s24943_s28 + $0x398] sm:$0xff] %v15055_v26  ;;  %v20592_v40 = vadd.f32 %v20404_v30, %v19620_v45  ;;  %v14490_v34 = vpop.f32.mrb[117].mxu0 }
 0x558   : > { %15182 = vst [vmem:[%s24943_s28 + $0x390] sm:$0xff] %v15054_v62  ;;  %v20593_v50 = vadd.f32 %v14490_v34, %v8058_v57 }
 0x559   : > { %v15057_v23 = vadd.f32 %v25313_v8, %v20592_v40  ;;  %v19623_v31 = vpop.f32.mrb[118].mxu1 }
 0x55a   : > { %v15056_v59 = vadd.f32 %v25313_v8, %v20593_v50  ;;  %v20407_v38 = vpop.f32.mrb[118].mxu0  ;;  %v8068_v54 = vpop.f32.mrb[119].mxu1 }
 0x55b   : > { %15185 = vst [vmem:[%s24943_s28 + $0x3a8] sm:$0xff] %v15057_v23  ;;  %v20594_v12 = vadd.f32 %v20407_v38, %v19623_v31  ;;  %v14500_v22 = vpop.f32.mrb[119].mxu0 }
 0x55c   : > { %15184 = vst [vmem:[%s24943_s28 + $0x3a0] sm:$0xff] %v15056_v59  ;;  %v20595_v48 = vadd.f32 %v14500_v22, %v8068_v54 }
 0x55d   : > { %v15059_v36 = vadd.f32 %v25313_v8, %v20594_v12  ;;  %v19626_v16 = vpop.f32.mrb[120].mxu1 }
 0x55e   : > { %v15058_v32 = vadd.f32 %v25313_v8, %v20595_v48  ;;  %v20410_v63 = vpop.f32.mrb[120].mxu0  ;;  %v8078_v2 = vpop.f32.mrb[121].mxu1 }
 0x55f   : > { %15187 = vst [vmem:[%s24943_s28 + $0x3b8] sm:$0xff] %v15059_v36  ;;  %v20596_v39 = vadd.f32 %v20410_v63, %v19626_v16  ;;  %v14510_v4 = vpop.f32.mrb[121].mxu0 }
 0x560   : > { %15186 = vst [vmem:[%s24943_s28 + $0x3b0] sm:$0xff] %v15058_v32  ;;  %v20597_v1 = vadd.f32 %v14510_v4, %v8078_v2 }
 0x561   : > { %v15061_v46 = vadd.f32 %v25313_v8, %v20596_v39  ;;  %v19629_v9 = vpop.f32.mrb[122].mxu1 }
 0x562   : > { %v15060_v5 = vadd.f32 %v25313_v8, %v20597_v1  ;;  %v20413_v42 = vpop.f32.mrb[122].mxu0  ;;  %v8088_v25 = vpop.f32.mrb[123].mxu1 }
 0x563   : > { %15189 = vst [vmem:[%s24943_s28 + $0x3c8] sm:$0xff] %v15061_v46  ;;  %v20598_v52 = vadd.f32 %v20413_v42, %v19629_v9  ;;  %v14520_v24 = vpop.f32.mrb[123].mxu0 }
 0x564   : > { %15188 = vst [vmem:[%s24943_s28 + $0x3c0] sm:$0xff] %v15060_v5  ;;  %v20599_v29 = vadd.f32 %v14520_v24, %v8088_v25 }
 0x565   : > { %v15063_v33 = vadd.f32 %v25313_v8, %v20598_v52  ;;  %v19632_v7 = vpop.f32.mrb[124].mxu1 }
 0x566   : > { %v15062_v11 = vadd.f32 %v25313_v8, %v20599_v29  ;;  %v20416_v47 = vpop.f32.mrb[124].mxu0  ;;  %v8098_v55 = vpop.f32.mrb[125].mxu1 }
 0x567   : > { %15191 = vst [vmem:[%s24943_s28 + $0x3d8] sm:$0xff] %v15063_v33  ;;  %v20600_v58 = vadd.f32 %v20416_v47, %v19632_v7  ;;  %v14530_v19 = vpop.f32.mrb[125].mxu0 }
 0x568   : > { %15190 = vst [vmem:[%s24943_s28 + $0x3d0] sm:$0xff] %v15062_v11  ;;  %v20601_v28 = vadd.f32 %v14530_v19, %v8098_v55 }
 0x569   : > { %v15065_v61 = vadd.f32 %v25313_v8, %v20600_v58  ;;  %v19635_v21 = vpop.f32.mrb[126].mxu1 }
 0x56a   : > { %v15064_v56 = vadd.f32 %v25313_v8, %v20601_v28  ;;  %v20419_v35 = vpop.f32.mrb[126].mxu0  ;;  %v8108_v37 = vpop.f32.mrb[127].mxu1 }
 0x56b   : > { %15193 = vst [vmem:[%s24943_s28 + $0x3e8] sm:$0xff] %v15065_v61  ;;  %v20602_v18 = vadd.f32 %v20419_v35, %v19635_v21  ;;  %v14540_v10 = vpop.f32.mrb[127].mxu0 }
 0x56c   : > { %15192 = vst [vmem:[%s24943_s28 + $0x3e0] sm:$0xff] %v15064_v56  ;;  %v20603_v51 = vadd.f32 %v14540_v10, %v8108_v37 }
 0x56d   : > { %v15067_v13 = vadd.f32 %v25313_v8, %v20602_v18 }
 0x56e   : > { %v15066_v17 = vadd.f32 %v25313_v8, %v20603_v51 }
 0x56f   : > { %15195 = vst [vmem:[%s24943_s28 + $0x3f8] sm:$0xff] %v15067_v13 }
 0x570   : > { %15194 = vst [vmem:[%s24943_s28 + $0x3f0] sm:$0xff] %v15066_v17 }
 0x571 PF: > { %s13_s12 = sadd.s32 1, %s21518_s12  }
 0x572   : > { %p10_p4 = scmp.ge.s32.totalorder %s13_s12, 4  }
 0x574   :  { %12 = sbr.rel (!%p10_p4) target bundleno = 1 (0x1), region = 84 }

</bundles_post_ra>
